<compile_context>
chip_gen: v5e
topology: v5e:2x2
jax: 0.10.0
libtpu: 0.0.40
codegen_flags: <defaults>
</compile_context>

<pallas_src>
import functools

import jax
import jax.numpy as jnp
from jax import lax
from jax.experimental import pallas as pl
from jax.experimental.pallas import tpu as pltpu

HIDDEN = 128
FC_FEAT2 = 128
LEAKY_SLOPE = 0.01   # nn.LeakyReLU default
BN_EPS = 1e-5        # nn.BatchNorm1d default
LANE = 128
SUBLANE = 8


def _sigmoid(x):
    # Exact sigmoid via a single EUP tanh launch (avoids exp + divide).
    return 0.5 * jnp.tanh(0.5 * x) + 0.5


def _gates_to_hc(gates, c, H):
    """Gate columns pre-permuted host-side to [i, f, o, g]: one contiguous
    (B, 3H) sigmoid slab + one (B, H) tanh -> fewer EUP launches per step."""
    s = _sigmoid(gates[:, :3 * H])
    g = jnp.tanh(gates[:, 3 * H:])
    i = s[:, 0 * H:1 * H]
    f = s[:, 1 * H:2 * H]
    o = s[:, 2 * H:3 * H]
    c_new = f * c + i * g
    h_new = o * jnp.tanh(c_new)
    return h_new, c_new


def movie_lstm_kernel(
    # inputs
    x_ref,       # (Tc, Bp, D)  time-major chunk, matmul dtype (zero-padded rows)
    wih1_ref,    # (D, 4H)      layer-1 input weights, gate cols [i,f,o,g]
    b1_ref,      # (1, 4H) f32  b_ih0 + b_hh0 (permuted)
    wbig_ref,    # (2H, 8H)     [[W_hh1, W_ih2], [0, W_hh2]] (permuted cols)
    b2_ref,      # (1, 4H) f32  b_ih1 + b_hh1 (permuted)
    fcw_ref,     # (H, 128)
    fcb_ref,     # (1, 128) f32
    gamma_ref,   # (1, 128) f32
    beta_ref,    # (1, 128) f32
    fc2w_ref,    # (128, C_pad)
    fc2b_ref,    # (1, C_pad) f32
    # output
    out_ref,     # (Bp, C_pad) f32
    # scratch (persists across grid steps)
    g1hh_ref,    # (Bp, 4H) f32   h1 @ W_hh1 carried to the next step / chunk
    c1_ref, h2_ref, c2_ref,       # (Bp, H) f32 recurrent state
    xg_ref,      # (Tc, Bp, 4H) f32  precomputed x @ W_ih1 + b1
    *, seq_chunk, batch_pad, batch, unroll,
):
    Tc, Bp, H = seq_chunk, batch_pad, HIDDEN
    D = x_ref.shape[-1]
    chunk = pl.program_id(0)
    last_chunk = pl.num_programs(0) - 1

    @pl.when(chunk == 0)
    def _init():
        g1hh_ref[...] = jnp.zeros_like(g1hh_ref)   # h1(-1) = 0  =>  h1@W_hh1 = 0
        c1_ref[...] = jnp.zeros_like(c1_ref)
        h2_ref[...] = jnp.zeros_like(h2_ref)
        c2_ref[...] = jnp.zeros_like(c2_ref)

    # Hoisted layer-1 input projection for the whole chunk: one
    # (Tc*Bp, D) @ (D, 4H) MXU matmul with b1 folded in, stored tile-aligned
    # as (Tc, Bp, 4H) so the per-step read is a plain leading-index vld.
    x2d = x_ref[...].reshape(Tc * Bp, D)
    xg = jnp.dot(x2d, wih1_ref[...], preferred_element_type=jnp.float32) + b1_ref[...]
    xg_ref[...] = xg.reshape(Tc, Bp, 4 * H)

    wbig = wbig_ref[...]
    mm = wbig.dtype                                    # MXU input dtype
    b2 = jnp.broadcast_to(b2_ref[...], (Bp, 4 * H))    # hoisted broadcast

    def step(t, carry):
        g1hh, c1, h2, c2 = carry
        # layer 1: hh-part comes from the previous step's fused matmul
        g1 = xg_ref[t] + g1hh
        h1, c1 = _gates_to_hc(g1, c1, H)
        # single fused matmul: [h1(t) | h2(t-1)] @ [[W_hh1, W_ih2],[0, W_hh2]]
        lhs = jnp.concatenate([h1.astype(mm), h2.astype(mm)], axis=-1)
        big = jnp.dot(lhs, wbig, preferred_element_type=jnp.float32)
        g1hh = big[:, :4 * H]                 # h1(t)@W_hh1  (for step t+1)
        g2 = big[:, 4 * H:] + b2              # layer-2 gates for step t
        h2, c2 = _gates_to_hc(g2, c2, H)
        return g1hh, c1, h2, c2

    carry = (g1hh_ref[...], c1_ref[...], h2_ref[...], c2_ref[...])
    if Tc <= 32:
        # short chunk: full static unroll (LLO cross-step visibility)
        for t in range(Tc):
            carry = step(t, carry)
    else:
        carry = lax.fori_loop(0, Tc, step, carry, unroll=unroll)
    g1hh, c1, h2, c2 = carry

    g1hh_ref[...] = g1hh
    c1_ref[...] = c1
    h2_ref[...] = h2
    c2_ref[...] = c2

    # Head: fc -> BatchNorm1d (training-mode batch stats over the REAL B rows)
    # -> LeakyReLU -> fc2 -> sigmoid. Only on the last chunk; the constant
    # output block index keeps out_ref resident until grid end (accumulator
    # pattern), so only this final value is written back to HBM.
    @pl.when(chunk == last_chunk)
    def _head():
        z = jnp.dot(h2.astype(mm), fcw_ref[...],
                    preferred_element_type=jnp.float32) + fcb_ref[...]
        row = lax.broadcasted_iota(jnp.int32, (Bp, 1), 0)
        mask = (row < batch).astype(jnp.float32)
        mean = jnp.sum(z * mask, axis=0, keepdims=True) / batch
        d = (z - mean) * mask
        var = jnp.sum(d * d, axis=0, keepdims=True) / batch   # biased variance
        zn = (z - mean) * lax.rsqrt(var + BN_EPS) * gamma_ref[...] + beta_ref[...]
        a = jnp.where(zn > 0, zn, LEAKY_SLOPE * zn)
        logits = jnp.dot(a.astype(mm), fc2w_ref[...],
                         preferred_element_type=jnp.float32) + fc2b_ref[...]
        out_ref[...] = _sigmoid(logits)


def _permute_gate_cols(wt):
    """(K, 4H) with gate column blocks [i|f|g|o] -> [i|f|o|g]."""
    H = wt.shape[1] // 4
    return jnp.concatenate([wt[:, :2 * H], wt[:, 3 * H:], wt[:, 2 * H:3 * H]], axis=1)


def _permute_gate_vec(b):
    H = b.shape[0] // 4
    return jnp.concatenate([b[:2 * H], b[3 * H:], b[2 * H:3 * H]])


def _pick_seq_chunk(T, cap=256):
    """Largest divisor of T not exceeding cap (batch rows are always 8-padded)."""
    for d in range(min(cap, T), 0, -1):
        if T % d == 0:
            return d
    return T


@functools.partial(jax.jit, static_argnames=("seq_chunk", "use_bf16"))
def movie_lstm_forward(x_btd, params, *, seq_chunk=None, use_bf16=True):
    """x_btd: (B, T, D_in) float32, like the PyTorch batch_first input."""
    B, T, D = x_btd.shape
    H = HIDDEN
    C = params["fc2_w"].shape[0]
    C_pad = LANE * pl.cdiv(C, LANE)
    Bp = ((B + SUBLANE - 1) // SUBLANE) * SUBLANE

    if seq_chunk is None:
        seq_chunk = _pick_seq_chunk(T)
    assert T % seq_chunk == 0, "sequence length must be divisible by seq_chunk"
    Tc = seq_chunk
    num_chunks = T // Tc

    mm = jnp.bfloat16 if use_bf16 else jnp.float32

    # ---- glue: time-major, batch padded to 8 sublanes, fused/permuted weights
    x_tbd = jnp.transpose(x_btd, (1, 0, 2))                          # (T, B, D)
    x_pad = jnp.pad(x_tbd, ((0, 0), (0, Bp - B), (0, 0))).astype(mm)  # (T, Bp, D)

    wih1 = _permute_gate_cols(params["w_ih0"].T).astype(mm)          # (D, 4H)
    whh1_p = _permute_gate_cols(params["w_hh0"].T)                   # (H, 4H) f32
    wih2_p = _permute_gate_cols(params["w_ih1"].T)                   # (H, 4H) f32
    whh2_p = _permute_gate_cols(params["w_hh1"].T)                   # (H, 4H) f32
    b1 = _permute_gate_vec(params["b_ih0"] + params["b_hh0"]).reshape(1, -1)
    b2 = _permute_gate_vec(params["b_ih1"] + params["b_hh1"]).reshape(1, -1)

    # Fused recurrent weight: [h1 | h2] @ [[W_hh1, W_ih2], [0, W_hh2]]
    wbig = jnp.concatenate(
        [jnp.concatenate([whh1_p, wih2_p], axis=1),
         jnp.concatenate([jnp.zeros((H, 4 * H), jnp.float32), whh2_p], axis=1)],
        axis=0).astype(mm)                                           # (2H, 8H)

    fcw = params["fc_w"].T.astype(mm)                                # (H, 128)
    fcb = params["fc_b"].reshape(1, -1)
    gamma = params["bn_gamma"].reshape(1, -1)
    beta = params["bn_beta"].reshape(1, -1)
    fc2w = jnp.pad(params["fc2_w"].T, ((0, 0), (0, C_pad - C))).astype(mm)  # (128, C_pad)
    fc2b = jnp.pad(params["fc2_b"], (0, C_pad - C)).reshape(1, -1)          # (1, C_pad)

    kernel = functools.partial(movie_lstm_kernel, seq_chunk=Tc,
                               batch_pad=Bp, batch=B, unroll=8)

    def w_spec(a):  # whole invariant 2-D array resident in VMEM every step
        return pl.BlockSpec(a.shape, lambda i: (0, 0))

    grid_spec = pltpu.PrefetchScalarGridSpec(
        num_scalar_prefetch=0,
        grid=(num_chunks,),
        in_specs=[
            pl.BlockSpec((Tc, Bp, D), lambda i: (i, 0, 0)),   # pipelined x chunks
            w_spec(wih1), w_spec(b1),
            w_spec(wbig), w_spec(b2),
            w_spec(fcw), w_spec(fcb), w_spec(gamma), w_spec(beta),
            w_spec(fc2w), w_spec(fc2b),
        ],
        out_specs=pl.BlockSpec((Bp, C_pad), lambda i: (0, 0)),
        scratch_shapes=[
            pltpu.VMEM((Bp, 4 * H), jnp.float32),        # g1hh carry
            pltpu.VMEM((Bp, H), jnp.float32),            # c1
            pltpu.VMEM((Bp, H), jnp.float32),            # h2
            pltpu.VMEM((Bp, H), jnp.float32),            # c2
            pltpu.VMEM((Tc, Bp, 4 * H), jnp.float32),    # precomputed x-gates (+ b1)
        ],
    )

    out = pl.pallas_call(
        kernel,
        out_shape=jax.ShapeDtypeStruct((Bp, C_pad), jnp.float32),
        grid_spec=grid_spec,
        compiler_params=pltpu.CompilerParams(
            dimension_semantics=("arbitrary",),   # time chunks carry state -> sequential
        ),
    )(x_pad, wih1, b1, wbig, b2, fcw, fcb, gamma, beta, fc2w, fc2b)

    return out[:B, :C]


def init_params(key, d_in, hidden, num_chars):
    """Deterministic synthetic parameters (shapes match the PyTorch module)."""
    ks = jax.random.split(key, 16)
    k = 1.0 / jnp.sqrt(hidden)

    def u(kk, shape):
        return jax.random.uniform(kk, shape, jnp.float32, -k, k)

    p = {}
    # LSTM layer 0
    p["w_ih0"] = u(ks[0], (4 * hidden, d_in))
    p["w_hh0"] = u(ks[1], (4 * hidden, hidden))
    p["b_ih0"] = u(ks[2], (4 * hidden,))
    p["b_hh0"] = u(ks[3], (4 * hidden,))
    # LSTM layer 1
    p["w_ih1"] = u(ks[4], (4 * hidden, hidden))
    p["w_hh1"] = u(ks[5], (4 * hidden, hidden))
    p["b_ih1"] = u(ks[6], (4 * hidden,))
    p["b_hh1"] = u(ks[7], (4 * hidden,))
    # fc: Linear(hidden, 128)
    p["fc_w"] = u(ks[8], (FC_FEAT2, hidden))
    p["fc_b"] = u(ks[9], (FC_FEAT2,))
    # BatchNorm1d(128): default init gamma=1, beta=0
    p["bn_gamma"] = jnp.ones((FC_FEAT2,), jnp.float32)
    p["bn_beta"] = jnp.zeros((FC_FEAT2,), jnp.float32)
    # fc2: Linear(128, num_chars)
    p["fc2_w"] = u(ks[10], (num_chars, FC_FEAT2))
    p["fc2_b"] = u(ks[11], (num_chars,))
    return p


def movie_lstm_reference(x_btd, params, *, use_bf16=True):
    """Pure-JAX reference mirroring the PyTorch forward (same matmul dtype)."""
    mm = jnp.bfloat16 if use_bf16 else jnp.float32
    B, T, D = x_btd.shape
    H = HIDDEN

    def dot(a, b):
        return jnp.dot(a.astype(mm), b.astype(mm),
                       preferred_element_type=jnp.float32)

    def cell(x_t, h, c, wih, whh, b):
        g = dot(x_t, wih.T) + dot(h, whh.T) + b       # PyTorch order i, f, g, o
        i = jax.nn.sigmoid(g[:, 0 * H:1 * H])
        f = jax.nn.sigmoid(g[:, 1 * H:2 * H])
        gg = jnp.tanh(g[:, 2 * H:3 * H])
        o = jax.nn.sigmoid(g[:, 3 * H:4 * H])
        c = f * c + i * gg
        return o * jnp.tanh(c), c

    b1 = params["b_ih0"] + params["b_hh0"]
    b2 = params["b_ih1"] + params["b_hh1"]
    h1 = c1 = h2 = c2 = jnp.zeros((B, H), jnp.float32)
    for t in range(T):
        h1, c1 = cell(x_btd[:, t, :], h1, c1, params["w_ih0"], params["w_hh0"], b1)
        h2, c2 = cell(h1, h2, c2, params["w_ih1"], params["w_hh1"], b2)

    z = dot(h2, params["fc_w"].T) + params["fc_b"]
    mean = jnp.mean(z, axis=0, keepdims=True)
    var = jnp.mean((z - mean) ** 2, axis=0, keepdims=True)
    zn = (z - mean) / jnp.sqrt(var + BN_EPS) * params["bn_gamma"] + params["bn_beta"]
    a = jnp.where(zn > 0, zn, LEAKY_SLOPE * zn)
    return jax.nn.sigmoid(dot(a, params["fc2_w"].T) + params["fc2_b"])


if __name__ == "__main__":
    # Small config: num_frame = 8 -> num_neurons = 16 input features; num_labels = 4
    B, T, D_IN, NUM_CHARS = 2, 8, 16, 4

    key = jax.random.PRNGKey(0)
    kx, kp = jax.random.split(key)
    x = jax.random.normal(kx, (B, T, D_IN), jnp.float32)
    params = init_params(kp, D_IN, HIDDEN, NUM_CHARS)

    out = movie_lstm_forward(x, params)
    out = jax.block_until_ready(out)

    ref = movie_lstm_reference(x, params)
    assert out.shape == (B, NUM_CHARS)
    assert jnp.allclose(out, ref, rtol=5e-3, atol=5e-3), (
        "mismatch vs reference; max abs diff = "
        f"{float(jnp.max(jnp.abs(out - ref)))}")

    print("KERNEL_OK")
</pallas_src>

<mosaic_0001>
module attributes {stable_mosaic.version = 11 : i64} {
  func.func @movie_lstm_kernel(%arg0: i32, %arg1: memref<8x8x16xbf16, #tpu.memory_space<vmem>>, %arg2: memref<16x512xbf16, #tpu.memory_space<vmem>>, %arg3: memref<1x512xf32, #tpu.memory_space<vmem>>, %arg4: memref<256x1024xbf16, #tpu.memory_space<vmem>>, %arg5: memref<1x512xf32, #tpu.memory_space<vmem>>, %arg6: memref<128x128xbf16, #tpu.memory_space<vmem>>, %arg7: memref<1x128xf32, #tpu.memory_space<vmem>>, %arg8: memref<1x128xf32, #tpu.memory_space<vmem>>, %arg9: memref<1x128xf32, #tpu.memory_space<vmem>>, %arg10: memref<128x128xbf16, #tpu.memory_space<vmem>>, %arg11: memref<1x128xf32, #tpu.memory_space<vmem>>, %arg12: memref<8x128xf32, #tpu.memory_space<vmem>>, %arg13: memref<8x512xf32, #tpu.memory_space<vmem>>, %arg14: memref<8x128xf32, #tpu.memory_space<vmem>>, %arg15: memref<8x128xf32, #tpu.memory_space<vmem>>, %arg16: memref<8x128xf32, #tpu.memory_space<vmem>>, %arg17: memref<8x8x512xf32, #tpu.memory_space<vmem>>) attributes {dimension_semantics = [#tpu.dimension_semantics<arbitrary>], iteration_bounds = array<i64: 1>, scalar_prefetch = 0 : i64, scratch_operands = 5 : i64, tpu.core_type = #tpu.core_type<tc>, window_params = [{transform_indices = @transform_0, window_bounds = array<i64: 8, 8, 16>}, {pipeline_mode = #tpu.pipeline_mode<synchronous>, transform_indices = @transform_1, window_bounds = array<i64: 16, 512>}, {pipeline_mode = #tpu.pipeline_mode<synchronous>, transform_indices = @transform_2, window_bounds = array<i64: 1, 512>}, {pipeline_mode = #tpu.pipeline_mode<synchronous>, transform_indices = @transform_3, window_bounds = array<i64: 256, 1024>}, {pipeline_mode = #tpu.pipeline_mode<synchronous>, transform_indices = @transform_4, window_bounds = array<i64: 1, 512>}, {pipeline_mode = #tpu.pipeline_mode<synchronous>, transform_indices = @transform_5, window_bounds = array<i64: 128, 128>}, {pipeline_mode = #tpu.pipeline_mode<synchronous>, transform_indices = @transform_6, window_bounds = array<i64: 1, 128>}, {pipeline_mode = #tpu.pipeline_mode<synchronous>, transform_indices = @transform_7, window_bounds = array<i64: 1, 128>}, {pipeline_mode = #tpu.pipeline_mode<synchronous>, transform_indices = @transform_8, window_bounds = array<i64: 1, 128>}, {pipeline_mode = #tpu.pipeline_mode<synchronous>, transform_indices = @transform_9, window_bounds = array<i64: 128, 128>}, {pipeline_mode = #tpu.pipeline_mode<synchronous>, transform_indices = @transform_10, window_bounds = array<i64: 1, 128>}, {pipeline_mode = #tpu.pipeline_mode<synchronous>, transform_indices = @transform_11, window_bounds = array<i64: 8, 128>}]} {
    %c0_i32 = arith.constant 0 : i32
    %0 = arith.cmpi eq, %arg0, %c0_i32 : i32
    %1 = arith.extui %0 : i1 to i32
    %c0_i32_0 = arith.constant 0 : i32
    %2 = arith.cmpi ne, %1, %c0_i32_0 : i32
    scf.if %2 {
      %cst_105 = arith.constant 0.000000e+00 : f32
      %395 = vector.broadcast %cst_105 : f32 to vector<8x512xf32>
      %c0_106 = arith.constant 0 : index
      %c0_107 = arith.constant 0 : index
      %396 = vector.load %arg13[%c0_106, %c0_107] : memref<8x512xf32, #tpu.memory_space<vmem>>, vector<8x512xf32>
      tpu.vector_store %arg13[%c0_106, %c0_107], %395 {strides = array<i32>} : memref<8x512xf32, #tpu.memory_space<vmem>>, vector<8x512xf32>,
      %cst_108 = arith.constant 0.000000e+00 : f32
      %397 = vector.broadcast %cst_108 : f32 to vector<8x128xf32>
      %c0_109 = arith.constant 0 : index
      %c0_110 = arith.constant 0 : index
      %398 = vector.load %arg14[%c0_109, %c0_110] : memref<8x128xf32, #tpu.memory_space<vmem>>, vector<8x128xf32>
      tpu.vector_store %arg14[%c0_109, %c0_110], %397 {strides = array<i32>} : memref<8x128xf32, #tpu.memory_space<vmem>>, vector<8x128xf32>,
      %cst_111 = arith.constant 0.000000e+00 : f32
      %399 = vector.broadcast %cst_111 : f32 to vector<8x128xf32>
      %c0_112 = arith.constant 0 : index
      %c0_113 = arith.constant 0 : index
      %400 = vector.load %arg15[%c0_112, %c0_113] : memref<8x128xf32, #tpu.memory_space<vmem>>, vector<8x128xf32>
      tpu.vector_store %arg15[%c0_112, %c0_113], %399 {strides = array<i32>} : memref<8x128xf32, #tpu.memory_space<vmem>>, vector<8x128xf32>,
      %cst_114 = arith.constant 0.000000e+00 : f32
      %401 = vector.broadcast %cst_114 : f32 to vector<8x128xf32>
      %c0_115 = arith.constant 0 : index
      %c0_116 = arith.constant 0 : index
      %402 = vector.load %arg16[%c0_115, %c0_116] : memref<8x128xf32, #tpu.memory_space<vmem>>, vector<8x128xf32>
      tpu.vector_store %arg16[%c0_115, %c0_116], %401 {strides = array<i32>} : memref<8x128xf32, #tpu.memory_space<vmem>>, vector<8x128xf32>,
    } else {
    }
    %c0 = arith.constant 0 : index
    %c0_1 = arith.constant 0 : index
    %c0_2 = arith.constant 0 : index
    %3 = vector.load %arg1[%c0, %c0_1, %c0_2] : memref<8x8x16xbf16, #tpu.memory_space<vmem>>, vector<8x8x16xbf16>
    %4 = vector.shape_cast %3 : vector<8x8x16xbf16> to vector<64x16xbf16>
    %c0_3 = arith.constant 0 : index
    %c0_4 = arith.constant 0 : index
    %5 = vector.load %arg2[%c0_3, %c0_4] : memref<16x512xbf16, #tpu.memory_space<vmem>>, vector<16x512xbf16>
    %cst = arith.constant dense<0.000000e+00> : vector<64x512xf32>
    %6 = tpu.matmul %4, %5, %cst {dimension_numbers = #tpu.dot_dimension_numbers<[1], [0], [0], [1], [0, 0, 1, 1], [], []>} : vector<64x16xbf16>, vector<16x512xbf16>, vector<64x512xf32> -> vector<64x512xf32>
    %c0_5 = arith.constant 0 : index
    %c0_6 = arith.constant 0 : index
    %7 = vector.load %arg3[%c0_5, %c0_6] : memref<1x512xf32, #tpu.memory_space<vmem>>, vector<1x512xf32>
    %8 = vector.broadcast %7 : vector<1x512xf32> to vector<64x512xf32>
    %9 = arith.addf %6, %8 : vector<64x512xf32>
    %10 = vector.shape_cast %9 : vector<64x512xf32> to vector<8x8x512xf32>
    %c0_7 = arith.constant 0 : index
    %c0_8 = arith.constant 0 : index
    %c0_9 = arith.constant 0 : index
    %11 = vector.load %arg17[%c0_7, %c0_8, %c0_9] : memref<8x8x512xf32, #tpu.memory_space<vmem>>, vector<8x8x512xf32>
    tpu.vector_store %arg17[%c0_7, %c0_8, %c0_9], %10 {strides = array<i32>} : memref<8x8x512xf32, #tpu.memory_space<vmem>>, vector<8x8x512xf32>,
    %c0_10 = arith.constant 0 : index
    %c0_11 = arith.constant 0 : index
    %12 = vector.load %arg4[%c0_10, %c0_11] : memref<256x1024xbf16, #tpu.memory_space<vmem>>, vector<256x1024xbf16>
    %c0_12 = arith.constant 0 : index
    %c0_13 = arith.constant 0 : index
    %13 = vector.load %arg5[%c0_12, %c0_13] : memref<1x512xf32, #tpu.memory_space<vmem>>, vector<1x512xf32>
    %14 = vector.shape_cast %13 : vector<1x512xf32> to vector<1x512xf32>
    %15 = vector.broadcast %14 : vector<1x512xf32> to vector<8x512xf32>
    %c0_14 = arith.constant 0 : index
    %c0_15 = arith.constant 0 : index
    %16 = vector.load %arg13[%c0_14, %c0_15] : memref<8x512xf32, #tpu.memory_space<vmem>>, vector<8x512xf32>
    %c0_16 = arith.constant 0 : index
    %c0_17 = arith.constant 0 : index
    %17 = vector.load %arg14[%c0_16, %c0_17] : memref<8x128xf32, #tpu.memory_space<vmem>>, vector<8x128xf32>
    %c0_18 = arith.constant 0 : index
    %c0_19 = arith.constant 0 : index
    %18 = vector.load %arg15[%c0_18, %c0_19] : memref<8x128xf32, #tpu.memory_space<vmem>>, vector<8x128xf32>
    %c0_20 = arith.constant 0 : index
    %c0_21 = arith.constant 0 : index
    %19 = vector.load %arg16[%c0_20, %c0_21] : memref<8x128xf32, #tpu.memory_space<vmem>>, vector<8x128xf32>
    %c0_22 = arith.constant 0 : index
    %c0_23 = arith.constant 0 : index
    %c0_24 = arith.constant 0 : index
    %20 = vector.load %arg17[%c0_22, %c0_23, %c0_24] : memref<8x8x512xf32, #tpu.memory_space<vmem>>, vector<1x8x512xf32>
    %21 = vector.shape_cast %20 : vector<1x8x512xf32> to vector<8x512xf32>
    %22 = arith.addf %21, %16 : vector<8x512xf32>
    %23 = vector.extract_strided_slice %22 {offsets = [0, 0], sizes = [8, 384], strides = [1, 1]} : vector<8x512xf32> to vector<8x384xf32>
    %cst_25 = arith.constant 5.000000e-01 : f32
    %24 = vector.broadcast %cst_25 : f32 to vector<8x384xf32>
    %25 = arith.mulf %24, %23 : vector<8x384xf32>
    %26 = math.tanh %25 : vector<8x384xf32>
    %cst_26 = arith.constant 5.000000e-01 : f32
    %27 = vector.broadcast %cst_26 : f32 to vector<8x384xf32>
    %28 = arith.mulf %27, %26 : vector<8x384xf32>
    %cst_27 = arith.constant 5.000000e-01 : f32
    %29 = vector.broadcast %cst_27 : f32 to vector<8x384xf32>
    %30 = arith.addf %28, %29 : vector<8x384xf32>
    %31 = vector.extract_strided_slice %22 {offsets = [0, 384], sizes = [8, 128], strides = [1, 1]} : vector<8x512xf32> to vector<8x128xf32>
    %32 = math.tanh %31 : vector<8x128xf32>
    %33 = vector.extract_strided_slice %30 {offsets = [0, 0], sizes = [8, 128], strides = [1, 1]} : vector<8x384xf32> to vector<8x128xf32>
    %34 = vector.extract_strided_slice %30 {offsets = [0, 128], sizes = [8, 128], strides = [1, 1]} : vector<8x384xf32> to vector<8x128xf32>
    %35 = vector.extract_strided_slice %30 {offsets = [0, 256], sizes = [8, 128], strides = [1, 1]} : vector<8x384xf32> to vector<8x128xf32>
    %36 = arith.mulf %34, %17 : vector<8x128xf32>
    %37 = arith.mulf %33, %32 : vector<8x128xf32>
    %38 = arith.addf %36, %37 : vector<8x128xf32>
    %39 = math.tanh %38 : vector<8x128xf32>
    %40 = arith.mulf %35, %39 : vector<8x128xf32>
    %41 = arith.truncf %40 : vector<8x128xf32> to vector<8x128xbf16>
    %42 = arith.truncf %18 : vector<8x128xf32> to vector<8x128xbf16>
    %43 = tpu.concatenate %41, %42 in 1 : vector<8x128xbf16>, vector<8x128xbf16> -> vector<8x256xbf16>
    %cst_28 = arith.constant dense<0.000000e+00> : vector<8x1024xf32>
    %44 = tpu.matmul %43, %12, %cst_28 {dimension_numbers = #tpu.dot_dimension_numbers<[1], [0], [0], [1], [0, 0, 1, 1], [], []>} : vector<8x256xbf16>, vector<256x1024xbf16>, vector<8x1024xf32> -> vector<8x1024xf32>
    %45 = vector.extract_strided_slice %44 {offsets = [0, 0], sizes = [8, 512], strides = [1, 1]} : vector<8x1024xf32> to vector<8x512xf32>
    %46 = vector.extract_strided_slice %44 {offsets = [0, 512], sizes = [8, 512], strides = [1, 1]} : vector<8x1024xf32> to vector<8x512xf32>
    %47 = arith.addf %46, %15 : vector<8x512xf32>
    %48 = vector.extract_strided_slice %47 {offsets = [0, 0], sizes = [8, 384], strides = [1, 1]} : vector<8x512xf32> to vector<8x384xf32>
    %cst_29 = arith.constant 5.000000e-01 : f32
    %49 = vector.broadcast %cst_29 : f32 to vector<8x384xf32>
    %50 = arith.mulf %49, %48 : vector<8x384xf32>
    %51 = math.tanh %50 : vector<8x384xf32>
    %cst_30 = arith.constant 5.000000e-01 : f32
    %52 = vector.broadcast %cst_30 : f32 to vector<8x384xf32>
    %53 = arith.mulf %52, %51 : vector<8x384xf32>
    %cst_31 = arith.constant 5.000000e-01 : f32
    %54 = vector.broadcast %cst_31 : f32 to vector<8x384xf32>
    %55 = arith.addf %53, %54 : vector<8x384xf32>
    %56 = vector.extract_strided_slice %47 {offsets = [0, 384], sizes = [8, 128], strides = [1, 1]} : vector<8x512xf32> to vector<8x128xf32>
    %57 = math.tanh %56 : vector<8x128xf32>
    %58 = vector.extract_strided_slice %55 {offsets = [0, 0], sizes = [8, 128], strides = [1, 1]} : vector<8x384xf32> to vector<8x128xf32>
    %59 = vector.extract_strided_slice %55 {offsets = [0, 128], sizes = [8, 128], strides = [1, 1]} : vector<8x384xf32> to vector<8x128xf32>
    %60 = vector.extract_strided_slice %55 {offsets = [0, 256], sizes = [8, 128], strides = [1, 1]} : vector<8x384xf32> to vector<8x128xf32>
    %61 = arith.mulf %59, %19 : vector<8x128xf32>
    %62 = arith.mulf %58, %57 : vector<8x128xf32>
    %63 = arith.addf %61, %62 : vector<8x128xf32>
    %64 = math.tanh %63 : vector<8x128xf32>
    %65 = arith.mulf %60, %64 : vector<8x128xf32>
    %c1 = arith.constant 1 : index
    %c0_32 = arith.constant 0 : index
    %c0_33 = arith.constant 0 : index
    %66 = vector.load %arg17[%c1, %c0_32, %c0_33] : memref<8x8x512xf32, #tpu.memory_space<vmem>>, vector<1x8x512xf32>
    %67 = vector.shape_cast %66 : vector<1x8x512xf32> to vector<8x512xf32>
    %68 = arith.addf %67, %45 : vector<8x512xf32>
    %69 = vector.extract_strided_slice %68 {offsets = [0, 0], sizes = [8, 384], strides = [1, 1]} : vector<8x512xf32> to vector<8x384xf32>
    %cst_34 = arith.constant 5.000000e-01 : f32
    %70 = vector.broadcast %cst_34 : f32 to vector<8x384xf32>
    %71 = arith.mulf %70, %69 : vector<8x384xf32>
    %72 = math.tanh %71 : vector<8x384xf32>
    %cst_35 = arith.constant 5.000000e-01 : f32
    %73 = vector.broadcast %cst_35 : f32 to vector<8x384xf32>
    %74 = arith.mulf %73, %72 : vector<8x384xf32>
    %cst_36 = arith.constant 5.000000e-01 : f32
    %75 = vector.broadcast %cst_36 : f32 to vector<8x384xf32>
    %76 = arith.addf %74, %75 : vector<8x384xf32>
    %77 = vector.extract_strided_slice %68 {offsets = [0, 384], sizes = [8, 128], strides = [1, 1]} : vector<8x512xf32> to vector<8x128xf32>
    %78 = math.tanh %77 : vector<8x128xf32>
    %79 = vector.extract_strided_slice %76 {offsets = [0, 0], sizes = [8, 128], strides = [1, 1]} : vector<8x384xf32> to vector<8x128xf32>
    %80 = vector.extract_strided_slice %76 {offsets = [0, 128], sizes = [8, 128], strides = [1, 1]} : vector<8x384xf32> to vector<8x128xf32>
    %81 = vector.extract_strided_slice %76 {offsets = [0, 256], sizes = [8, 128], strides = [1, 1]} : vector<8x384xf32> to vector<8x128xf32>
    %82 = arith.mulf %80, %38 : vector<8x128xf32>
    %83 = arith.mulf %79, %78 : vector<8x128xf32>
    %84 = arith.addf %82, %83 : vector<8x128xf32>
    %85 = math.tanh %84 : vector<8x128xf32>
    %86 = arith.mulf %81, %85 : vector<8x128xf32>
    %87 = arith.truncf %86 : vector<8x128xf32> to vector<8x128xbf16>
    %88 = arith.truncf %65 : vector<8x128xf32> to vector<8x128xbf16>
    %89 = tpu.concatenate %87, %88 in 1 : vector<8x128xbf16>, vector<8x128xbf16> -> vector<8x256xbf16>
    %cst_37 = arith.constant dense<0.000000e+00> : vector<8x1024xf32>
    %90 = tpu.matmul %89, %12, %cst_37 {dimension_numbers = #tpu.dot_dimension_numbers<[1], [0], [0], [1], [0, 0, 1, 1], [], []>} : vector<8x256xbf16>, vector<256x1024xbf16>, vector<8x1024xf32> -> vector<8x1024xf32>
    %91 = vector.extract_strided_slice %90 {offsets = [0, 0], sizes = [8, 512], strides = [1, 1]} : vector<8x1024xf32> to vector<8x512xf32>
    %92 = vector.extract_strided_slice %90 {offsets = [0, 512], sizes = [8, 512], strides = [1, 1]} : vector<8x1024xf32> to vector<8x512xf32>
    %93 = arith.addf %92, %15 : vector<8x512xf32>
    %94 = vector.extract_strided_slice %93 {offsets = [0, 0], sizes = [8, 384], strides = [1, 1]} : vector<8x512xf32> to vector<8x384xf32>
    %cst_38 = arith.constant 5.000000e-01 : f32
    %95 = vector.broadcast %cst_38 : f32 to vector<8x384xf32>
    %96 = arith.mulf %95, %94 : vector<8x384xf32>
    %97 = math.tanh %96 : vector<8x384xf32>
    %cst_39 = arith.constant 5.000000e-01 : f32
    %98 = vector.broadcast %cst_39 : f32 to vector<8x384xf32>
    %99 = arith.mulf %98, %97 : vector<8x384xf32>
    %cst_40 = arith.constant 5.000000e-01 : f32
    %100 = vector.broadcast %cst_40 : f32 to vector<8x384xf32>
    %101 = arith.addf %99, %100 : vector<8x384xf32>
    %102 = vector.extract_strided_slice %93 {offsets = [0, 384], sizes = [8, 128], strides = [1, 1]} : vector<8x512xf32> to vector<8x128xf32>
    %103 = math.tanh %102 : vector<8x128xf32>
    %104 = vector.extract_strided_slice %101 {offsets = [0, 0], sizes = [8, 128], strides = [1, 1]} : vector<8x384xf32> to vector<8x128xf32>
    %105 = vector.extract_strided_slice %101 {offsets = [0, 128], sizes = [8, 128], strides = [1, 1]} : vector<8x384xf32> to vector<8x128xf32>
    %106 = vector.extract_strided_slice %101 {offsets = [0, 256], sizes = [8, 128], strides = [1, 1]} : vector<8x384xf32> to vector<8x128xf32>
    %107 = arith.mulf %105, %63 : vector<8x128xf32>
    %108 = arith.mulf %104, %103 : vector<8x128xf32>
    %109 = arith.addf %107, %108 : vector<8x128xf32>
    %110 = math.tanh %109 : vector<8x128xf32>
    %111 = arith.mulf %106, %110 : vector<8x128xf32>
    %c2 = arith.constant 2 : index
    %c0_41 = arith.constant 0 : index
    %c0_42 = arith.constant 0 : index
    %112 = vector.load %arg17[%c2, %c0_41, %c0_42] : memref<8x8x512xf32, #tpu.memory_space<vmem>>, vector<1x8x512xf32>
    %113 = vector.shape_cast %112 : vector<1x8x512xf32> to vector<8x512xf32>
    %114 = arith.addf %113, %91 : vector<8x512xf32>
    %115 = vector.extract_strided_slice %114 {offsets = [0, 0], sizes = [8, 384], strides = [1, 1]} : vector<8x512xf32> to vector<8x384xf32>
    %cst_43 = arith.constant 5.000000e-01 : f32
    %116 = vector.broadcast %cst_43 : f32 to vector<8x384xf32>
    %117 = arith.mulf %116, %115 : vector<8x384xf32>
    %118 = math.tanh %117 : vector<8x384xf32>
    %cst_44 = arith.constant 5.000000e-01 : f32
    %119 = vector.broadcast %cst_44 : f32 to vector<8x384xf32>
    %120 = arith.mulf %119, %118 : vector<8x384xf32>
    %cst_45 = arith.constant 5.000000e-01 : f32
    %121 = vector.broadcast %cst_45 : f32 to vector<8x384xf32>
    %122 = arith.addf %120, %121 : vector<8x384xf32>
    %123 = vector.extract_strided_slice %114 {offsets = [0, 384], sizes = [8, 128], strides = [1, 1]} : vector<8x512xf32> to vector<8x128xf32>
    %124 = math.tanh %123 : vector<8x128xf32>
    %125 = vector.extract_strided_slice %122 {offsets = [0, 0], sizes = [8, 128], strides = [1, 1]} : vector<8x384xf32> to vector<8x128xf32>
    %126 = vector.extract_strided_slice %122 {offsets = [0, 128], sizes = [8, 128], strides = [1, 1]} : vector<8x384xf32> to vector<8x128xf32>
    %127 = vector.extract_strided_slice %122 {offsets = [0, 256], sizes = [8, 128], strides = [1, 1]} : vector<8x384xf32> to vector<8x128xf32>
    %128 = arith.mulf %126, %84 : vector<8x128xf32>
    %129 = arith.mulf %125, %124 : vector<8x128xf32>
    %130 = arith.addf %128, %129 : vector<8x128xf32>
    %131 = math.tanh %130 : vector<8x128xf32>
    %132 = arith.mulf %127, %131 : vector<8x128xf32>
    %133 = arith.truncf %132 : vector<8x128xf32> to vector<8x128xbf16>
    %134 = arith.truncf %111 : vector<8x128xf32> to vector<8x128xbf16>
    %135 = tpu.concatenate %133, %134 in 1 : vector<8x128xbf16>, vector<8x128xbf16> -> vector<8x256xbf16>
    %cst_46 = arith.constant dense<0.000000e+00> : vector<8x1024xf32>
    %136 = tpu.matmul %135, %12, %cst_46 {dimension_numbers = #tpu.dot_dimension_numbers<[1], [0], [0], [1], [0, 0, 1, 1], [], []>} : vector<8x256xbf16>, vector<256x1024xbf16>, vector<8x1024xf32> -> vector<8x1024xf32>
    %137 = vector.extract_strided_slice %136 {offsets = [0, 0], sizes = [8, 512], strides = [1, 1]} : vector<8x1024xf32> to vector<8x512xf32>
    %138 = vector.extract_strided_slice %136 {offsets = [0, 512], sizes = [8, 512], strides = [1, 1]} : vector<8x1024xf32> to vector<8x512xf32>
    %139 = arith.addf %138, %15 : vector<8x512xf32>
    %140 = vector.extract_strided_slice %139 {offsets = [0, 0], sizes = [8, 384], strides = [1, 1]} : vector<8x512xf32> to vector<8x384xf32>
    %cst_47 = arith.constant 5.000000e-01 : f32
    %141 = vector.broadcast %cst_47 : f32 to vector<8x384xf32>
    %142 = arith.mulf %141, %140 : vector<8x384xf32>
    %143 = math.tanh %142 : vector<8x384xf32>
    %cst_48 = arith.constant 5.000000e-01 : f32
    %144 = vector.broadcast %cst_48 : f32 to vector<8x384xf32>
    %145 = arith.mulf %144, %143 : vector<8x384xf32>
    %cst_49 = arith.constant 5.000000e-01 : f32
    %146 = vector.broadcast %cst_49 : f32 to vector<8x384xf32>
    %147 = arith.addf %145, %146 : vector<8x384xf32>
    %148 = vector.extract_strided_slice %139 {offsets = [0, 384], sizes = [8, 128], strides = [1, 1]} : vector<8x512xf32> to vector<8x128xf32>
    %149 = math.tanh %148 : vector<8x128xf32>
    %150 = vector.extract_strided_slice %147 {offsets = [0, 0], sizes = [8, 128], strides = [1, 1]} : vector<8x384xf32> to vector<8x128xf32>
    %151 = vector.extract_strided_slice %147 {offsets = [0, 128], sizes = [8, 128], strides = [1, 1]} : vector<8x384xf32> to vector<8x128xf32>
    %152 = vector.extract_strided_slice %147 {offsets = [0, 256], sizes = [8, 128], strides = [1, 1]} : vector<8x384xf32> to vector<8x128xf32>
    %153 = arith.mulf %151, %109 : vector<8x128xf32>
    %154 = arith.mulf %150, %149 : vector<8x128xf32>
    %155 = arith.addf %153, %154 : vector<8x128xf32>
    %156 = math.tanh %155 : vector<8x128xf32>
    %157 = arith.mulf %152, %156 : vector<8x128xf32>
    %c3 = arith.constant 3 : index
    %c0_50 = arith.constant 0 : index
    %c0_51 = arith.constant 0 : index
    %158 = vector.load %arg17[%c3, %c0_50, %c0_51] : memref<8x8x512xf32, #tpu.memory_space<vmem>>, vector<1x8x512xf32>
    %159 = vector.shape_cast %158 : vector<1x8x512xf32> to vector<8x512xf32>
    %160 = arith.addf %159, %137 : vector<8x512xf32>
    %161 = vector.extract_strided_slice %160 {offsets = [0, 0], sizes = [8, 384], strides = [1, 1]} : vector<8x512xf32> to vector<8x384xf32>
    %cst_52 = arith.constant 5.000000e-01 : f32
    %162 = vector.broadcast %cst_52 : f32 to vector<8x384xf32>
    %163 = arith.mulf %162, %161 : vector<8x384xf32>
    %164 = math.tanh %163 : vector<8x384xf32>
    %cst_53 = arith.constant 5.000000e-01 : f32
    %165 = vector.broadcast %cst_53 : f32 to vector<8x384xf32>
    %166 = arith.mulf %165, %164 : vector<8x384xf32>
    %cst_54 = arith.constant 5.000000e-01 : f32
    %167 = vector.broadcast %cst_54 : f32 to vector<8x384xf32>
    %168 = arith.addf %166, %167 : vector<8x384xf32>
    %169 = vector.extract_strided_slice %160 {offsets = [0, 384], sizes = [8, 128], strides = [1, 1]} : vector<8x512xf32> to vector<8x128xf32>
    %170 = math.tanh %169 : vector<8x128xf32>
    %171 = vector.extract_strided_slice %168 {offsets = [0, 0], sizes = [8, 128], strides = [1, 1]} : vector<8x384xf32> to vector<8x128xf32>
    %172 = vector.extract_strided_slice %168 {offsets = [0, 128], sizes = [8, 128], strides = [1, 1]} : vector<8x384xf32> to vector<8x128xf32>
    %173 = vector.extract_strided_slice %168 {offsets = [0, 256], sizes = [8, 128], strides = [1, 1]} : vector<8x384xf32> to vector<8x128xf32>
    %174 = arith.mulf %172, %130 : vector<8x128xf32>
    %175 = arith.mulf %171, %170 : vector<8x128xf32>
    %176 = arith.addf %174, %175 : vector<8x128xf32>
    %177 = math.tanh %176 : vector<8x128xf32>
    %178 = arith.mulf %173, %177 : vector<8x128xf32>
    %179 = arith.truncf %178 : vector<8x128xf32> to vector<8x128xbf16>
    %180 = arith.truncf %157 : vector<8x128xf32> to vector<8x128xbf16>
    %181 = tpu.concatenate %179, %180 in 1 : vector<8x128xbf16>, vector<8x128xbf16> -> vector<8x256xbf16>
    %cst_55 = arith.constant dense<0.000000e+00> : vector<8x1024xf32>
    %182 = tpu.matmul %181, %12, %cst_55 {dimension_numbers = #tpu.dot_dimension_numbers<[1], [0], [0], [1], [0, 0, 1, 1], [], []>} : vector<8x256xbf16>, vector<256x1024xbf16>, vector<8x1024xf32> -> vector<8x1024xf32>
    %183 = vector.extract_strided_slice %182 {offsets = [0, 0], sizes = [8, 512], strides = [1, 1]} : vector<8x1024xf32> to vector<8x512xf32>
    %184 = vector.extract_strided_slice %182 {offsets = [0, 512], sizes = [8, 512], strides = [1, 1]} : vector<8x1024xf32> to vector<8x512xf32>
    %185 = arith.addf %184, %15 : vector<8x512xf32>
    %186 = vector.extract_strided_slice %185 {offsets = [0, 0], sizes = [8, 384], strides = [1, 1]} : vector<8x512xf32> to vector<8x384xf32>
    %cst_56 = arith.constant 5.000000e-01 : f32
    %187 = vector.broadcast %cst_56 : f32 to vector<8x384xf32>
    %188 = arith.mulf %187, %186 : vector<8x384xf32>
    %189 = math.tanh %188 : vector<8x384xf32>
    %cst_57 = arith.constant 5.000000e-01 : f32
    %190 = vector.broadcast %cst_57 : f32 to vector<8x384xf32>
    %191 = arith.mulf %190, %189 : vector<8x384xf32>
    %cst_58 = arith.constant 5.000000e-01 : f32
    %192 = vector.broadcast %cst_58 : f32 to vector<8x384xf32>
    %193 = arith.addf %191, %192 : vector<8x384xf32>
    %194 = vector.extract_strided_slice %185 {offsets = [0, 384], sizes = [8, 128], strides = [1, 1]} : vector<8x512xf32> to vector<8x128xf32>
    %195 = math.tanh %194 : vector<8x128xf32>
    %196 = vector.extract_strided_slice %193 {offsets = [0, 0], sizes = [8, 128], strides = [1, 1]} : vector<8x384xf32> to vector<8x128xf32>
    %197 = vector.extract_strided_slice %193 {offsets = [0, 128], sizes = [8, 128], strides = [1, 1]} : vector<8x384xf32> to vector<8x128xf32>
    %198 = vector.extract_strided_slice %193 {offsets = [0, 256], sizes = [8, 128], strides = [1, 1]} : vector<8x384xf32> to vector<8x128xf32>
    %199 = arith.mulf %197, %155 : vector<8x128xf32>
    %200 = arith.mulf %196, %195 : vector<8x128xf32>
    %201 = arith.addf %199, %200 : vector<8x128xf32>
    %202 = math.tanh %201 : vector<8x128xf32>
    %203 = arith.mulf %198, %202 : vector<8x128xf32>
    %c4 = arith.constant 4 : index
    %c0_59 = arith.constant 0 : index
    %c0_60 = arith.constant 0 : index
    %204 = vector.load %arg17[%c4, %c0_59, %c0_60] : memref<8x8x512xf32, #tpu.memory_space<vmem>>, vector<1x8x512xf32>
    %205 = vector.shape_cast %204 : vector<1x8x512xf32> to vector<8x512xf32>
    %206 = arith.addf %205, %183 : vector<8x512xf32>
    %207 = vector.extract_strided_slice %206 {offsets = [0, 0], sizes = [8, 384], strides = [1, 1]} : vector<8x512xf32> to vector<8x384xf32>
    %cst_61 = arith.constant 5.000000e-01 : f32
    %208 = vector.broadcast %cst_61 : f32 to vector<8x384xf32>
    %209 = arith.mulf %208, %207 : vector<8x384xf32>
    %210 = math.tanh %209 : vector<8x384xf32>
    %cst_62 = arith.constant 5.000000e-01 : f32
    %211 = vector.broadcast %cst_62 : f32 to vector<8x384xf32>
    %212 = arith.mulf %211, %210 : vector<8x384xf32>
    %cst_63 = arith.constant 5.000000e-01 : f32
    %213 = vector.broadcast %cst_63 : f32 to vector<8x384xf32>
    %214 = arith.addf %212, %213 : vector<8x384xf32>
    %215 = vector.extract_strided_slice %206 {offsets = [0, 384], sizes = [8, 128], strides = [1, 1]} : vector<8x512xf32> to vector<8x128xf32>
    %216 = math.tanh %215 : vector<8x128xf32>
    %217 = vector.extract_strided_slice %214 {offsets = [0, 0], sizes = [8, 128], strides = [1, 1]} : vector<8x384xf32> to vector<8x128xf32>
    %218 = vector.extract_strided_slice %214 {offsets = [0, 128], sizes = [8, 128], strides = [1, 1]} : vector<8x384xf32> to vector<8x128xf32>
    %219 = vector.extract_strided_slice %214 {offsets = [0, 256], sizes = [8, 128], strides = [1, 1]} : vector<8x384xf32> to vector<8x128xf32>
    %220 = arith.mulf %218, %176 : vector<8x128xf32>
    %221 = arith.mulf %217, %216 : vector<8x128xf32>
    %222 = arith.addf %220, %221 : vector<8x128xf32>
    %223 = math.tanh %222 : vector<8x128xf32>
    %224 = arith.mulf %219, %223 : vector<8x128xf32>
    %225 = arith.truncf %224 : vector<8x128xf32> to vector<8x128xbf16>
    %226 = arith.truncf %203 : vector<8x128xf32> to vector<8x128xbf16>
    %227 = tpu.concatenate %225, %226 in 1 : vector<8x128xbf16>, vector<8x128xbf16> -> vector<8x256xbf16>
    %cst_64 = arith.constant dense<0.000000e+00> : vector<8x1024xf32>
    %228 = tpu.matmul %227, %12, %cst_64 {dimension_numbers = #tpu.dot_dimension_numbers<[1], [0], [0], [1], [0, 0, 1, 1], [], []>} : vector<8x256xbf16>, vector<256x1024xbf16>, vector<8x1024xf32> -> vector<8x1024xf32>
    %229 = vector.extract_strided_slice %228 {offsets = [0, 0], sizes = [8, 512], strides = [1, 1]} : vector<8x1024xf32> to vector<8x512xf32>
    %230 = vector.extract_strided_slice %228 {offsets = [0, 512], sizes = [8, 512], strides = [1, 1]} : vector<8x1024xf32> to vector<8x512xf32>
    %231 = arith.addf %230, %15 : vector<8x512xf32>
    %232 = vector.extract_strided_slice %231 {offsets = [0, 0], sizes = [8, 384], strides = [1, 1]} : vector<8x512xf32> to vector<8x384xf32>
    %cst_65 = arith.constant 5.000000e-01 : f32
    %233 = vector.broadcast %cst_65 : f32 to vector<8x384xf32>
    %234 = arith.mulf %233, %232 : vector<8x384xf32>
    %235 = math.tanh %234 : vector<8x384xf32>
    %cst_66 = arith.constant 5.000000e-01 : f32
    %236 = vector.broadcast %cst_66 : f32 to vector<8x384xf32>
    %237 = arith.mulf %236, %235 : vector<8x384xf32>
    %cst_67 = arith.constant 5.000000e-01 : f32
    %238 = vector.broadcast %cst_67 : f32 to vector<8x384xf32>
    %239 = arith.addf %237, %238 : vector<8x384xf32>
    %240 = vector.extract_strided_slice %231 {offsets = [0, 384], sizes = [8, 128], strides = [1, 1]} : vector<8x512xf32> to vector<8x128xf32>
    %241 = math.tanh %240 : vector<8x128xf32>
    %242 = vector.extract_strided_slice %239 {offsets = [0, 0], sizes = [8, 128], strides = [1, 1]} : vector<8x384xf32> to vector<8x128xf32>
    %243 = vector.extract_strided_slice %239 {offsets = [0, 128], sizes = [8, 128], strides = [1, 1]} : vector<8x384xf32> to vector<8x128xf32>
    %244 = vector.extract_strided_slice %239 {offsets = [0, 256], sizes = [8, 128], strides = [1, 1]} : vector<8x384xf32> to vector<8x128xf32>
    %245 = arith.mulf %243, %201 : vector<8x128xf32>
    %246 = arith.mulf %242, %241 : vector<8x128xf32>
    %247 = arith.addf %245, %246 : vector<8x128xf32>
    %248 = math.tanh %247 : vector<8x128xf32>
    %249 = arith.mulf %244, %248 : vector<8x128xf32>
    %c5 = arith.constant 5 : index
    %c0_68 = arith.constant 0 : index
    %c0_69 = arith.constant 0 : index
    %250 = vector.load %arg17[%c5, %c0_68, %c0_69] : memref<8x8x512xf32, #tpu.memory_space<vmem>>, vector<1x8x512xf32>
    %251 = vector.shape_cast %250 : vector<1x8x512xf32> to vector<8x512xf32>
    %252 = arith.addf %251, %229 : vector<8x512xf32>
    %253 = vector.extract_strided_slice %252 {offsets = [0, 0], sizes = [8, 384], strides = [1, 1]} : vector<8x512xf32> to vector<8x384xf32>
    %cst_70 = arith.constant 5.000000e-01 : f32
    %254 = vector.broadcast %cst_70 : f32 to vector<8x384xf32>
    %255 = arith.mulf %254, %253 : vector<8x384xf32>
    %256 = math.tanh %255 : vector<8x384xf32>
    %cst_71 = arith.constant 5.000000e-01 : f32
    %257 = vector.broadcast %cst_71 : f32 to vector<8x384xf32>
    %258 = arith.mulf %257, %256 : vector<8x384xf32>
    %cst_72 = arith.constant 5.000000e-01 : f32
    %259 = vector.broadcast %cst_72 : f32 to vector<8x384xf32>
    %260 = arith.addf %258, %259 : vector<8x384xf32>
    %261 = vector.extract_strided_slice %252 {offsets = [0, 384], sizes = [8, 128], strides = [1, 1]} : vector<8x512xf32> to vector<8x128xf32>
    %262 = math.tanh %261 : vector<8x128xf32>
    %263 = vector.extract_strided_slice %260 {offsets = [0, 0], sizes = [8, 128], strides = [1, 1]} : vector<8x384xf32> to vector<8x128xf32>
    %264 = vector.extract_strided_slice %260 {offsets = [0, 128], sizes = [8, 128], strides = [1, 1]} : vector<8x384xf32> to vector<8x128xf32>
    %265 = vector.extract_strided_slice %260 {offsets = [0, 256], sizes = [8, 128], strides = [1, 1]} : vector<8x384xf32> to vector<8x128xf32>
    %266 = arith.mulf %264, %222 : vector<8x128xf32>
    %267 = arith.mulf %263, %262 : vector<8x128xf32>
    %268 = arith.addf %266, %267 : vector<8x128xf32>
    %269 = math.tanh %268 : vector<8x128xf32>
    %270 = arith.mulf %265, %269 : vector<8x128xf32>
    %271 = arith.truncf %270 : vector<8x128xf32> to vector<8x128xbf16>
    %272 = arith.truncf %249 : vector<8x128xf32> to vector<8x128xbf16>
    %273 = tpu.concatenate %271, %272 in 1 : vector<8x128xbf16>, vector<8x128xbf16> -> vector<8x256xbf16>
    %cst_73 = arith.constant dense<0.000000e+00> : vector<8x1024xf32>
    %274 = tpu.matmul %273, %12, %cst_73 {dimension_numbers = #tpu.dot_dimension_numbers<[1], [0], [0], [1], [0, 0, 1, 1], [], []>} : vector<8x256xbf16>, vector<256x1024xbf16>, vector<8x1024xf32> -> vector<8x1024xf32>
    %275 = vector.extract_strided_slice %274 {offsets = [0, 0], sizes = [8, 512], strides = [1, 1]} : vector<8x1024xf32> to vector<8x512xf32>
    %276 = vector.extract_strided_slice %274 {offsets = [0, 512], sizes = [8, 512], strides = [1, 1]} : vector<8x1024xf32> to vector<8x512xf32>
    %277 = arith.addf %276, %15 : vector<8x512xf32>
    %278 = vector.extract_strided_slice %277 {offsets = [0, 0], sizes = [8, 384], strides = [1, 1]} : vector<8x512xf32> to vector<8x384xf32>
    %cst_74 = arith.constant 5.000000e-01 : f32
    %279 = vector.broadcast %cst_74 : f32 to vector<8x384xf32>
    %280 = arith.mulf %279, %278 : vector<8x384xf32>
    %281 = math.tanh %280 : vector<8x384xf32>
    %cst_75 = arith.constant 5.000000e-01 : f32
    %282 = vector.broadcast %cst_75 : f32 to vector<8x384xf32>
    %283 = arith.mulf %282, %281 : vector<8x384xf32>
    %cst_76 = arith.constant 5.000000e-01 : f32
    %284 = vector.broadcast %cst_76 : f32 to vector<8x384xf32>
    %285 = arith.addf %283, %284 : vector<8x384xf32>
    %286 = vector.extract_strided_slice %277 {offsets = [0, 384], sizes = [8, 128], strides = [1, 1]} : vector<8x512xf32> to vector<8x128xf32>
    %287 = math.tanh %286 : vector<8x128xf32>
    %288 = vector.extract_strided_slice %285 {offsets = [0, 0], sizes = [8, 128], strides = [1, 1]} : vector<8x384xf32> to vector<8x128xf32>
    %289 = vector.extract_strided_slice %285 {offsets = [0, 128], sizes = [8, 128], strides = [1, 1]} : vector<8x384xf32> to vector<8x128xf32>
    %290 = vector.extract_strided_slice %285 {offsets = [0, 256], sizes = [8, 128], strides = [1, 1]} : vector<8x384xf32> to vector<8x128xf32>
    %291 = arith.mulf %289, %247 : vector<8x128xf32>
    %292 = arith.mulf %288, %287 : vector<8x128xf32>
    %293 = arith.addf %291, %292 : vector<8x128xf32>
    %294 = math.tanh %293 : vector<8x128xf32>
    %295 = arith.mulf %290, %294 : vector<8x128xf32>
    %c6 = arith.constant 6 : index
    %c0_77 = arith.constant 0 : index
    %c0_78 = arith.constant 0 : index
    %296 = vector.load %arg17[%c6, %c0_77, %c0_78] : memref<8x8x512xf32, #tpu.memory_space<vmem>>, vector<1x8x512xf32>
    %297 = vector.shape_cast %296 : vector<1x8x512xf32> to vector<8x512xf32>
    %298 = arith.addf %297, %275 : vector<8x512xf32>
    %299 = vector.extract_strided_slice %298 {offsets = [0, 0], sizes = [8, 384], strides = [1, 1]} : vector<8x512xf32> to vector<8x384xf32>
    %cst_79 = arith.constant 5.000000e-01 : f32
    %300 = vector.broadcast %cst_79 : f32 to vector<8x384xf32>
    %301 = arith.mulf %300, %299 : vector<8x384xf32>
    %302 = math.tanh %301 : vector<8x384xf32>
    %cst_80 = arith.constant 5.000000e-01 : f32
    %303 = vector.broadcast %cst_80 : f32 to vector<8x384xf32>
    %304 = arith.mulf %303, %302 : vector<8x384xf32>
    %cst_81 = arith.constant 5.000000e-01 : f32
    %305 = vector.broadcast %cst_81 : f32 to vector<8x384xf32>
    %306 = arith.addf %304, %305 : vector<8x384xf32>
    %307 = vector.extract_strided_slice %298 {offsets = [0, 384], sizes = [8, 128], strides = [1, 1]} : vector<8x512xf32> to vector<8x128xf32>
    %308 = math.tanh %307 : vector<8x128xf32>
    %309 = vector.extract_strided_slice %306 {offsets = [0, 0], sizes = [8, 128], strides = [1, 1]} : vector<8x384xf32> to vector<8x128xf32>
    %310 = vector.extract_strided_slice %306 {offsets = [0, 128], sizes = [8, 128], strides = [1, 1]} : vector<8x384xf32> to vector<8x128xf32>
    %311 = vector.extract_strided_slice %306 {offsets = [0, 256], sizes = [8, 128], strides = [1, 1]} : vector<8x384xf32> to vector<8x128xf32>
    %312 = arith.mulf %310, %268 : vector<8x128xf32>
    %313 = arith.mulf %309, %308 : vector<8x128xf32>
    %314 = arith.addf %312, %313 : vector<8x128xf32>
    %315 = math.tanh %314 : vector<8x128xf32>
    %316 = arith.mulf %311, %315 : vector<8x128xf32>
    %317 = arith.truncf %316 : vector<8x128xf32> to vector<8x128xbf16>
    %318 = arith.truncf %295 : vector<8x128xf32> to vector<8x128xbf16>
    %319 = tpu.concatenate %317, %318 in 1 : vector<8x128xbf16>, vector<8x128xbf16> -> vector<8x256xbf16>
    %cst_82 = arith.constant dense<0.000000e+00> : vector<8x1024xf32>
    %320 = tpu.matmul %319, %12, %cst_82 {dimension_numbers = #tpu.dot_dimension_numbers<[1], [0], [0], [1], [0, 0, 1, 1], [], []>} : vector<8x256xbf16>, vector<256x1024xbf16>, vector<8x1024xf32> -> vector<8x1024xf32>
    %321 = vector.extract_strided_slice %320 {offsets = [0, 0], sizes = [8, 512], strides = [1, 1]} : vector<8x1024xf32> to vector<8x512xf32>
    %322 = vector.extract_strided_slice %320 {offsets = [0, 512], sizes = [8, 512], strides = [1, 1]} : vector<8x1024xf32> to vector<8x512xf32>
    %323 = arith.addf %322, %15 : vector<8x512xf32>
    %324 = vector.extract_strided_slice %323 {offsets = [0, 0], sizes = [8, 384], strides = [1, 1]} : vector<8x512xf32> to vector<8x384xf32>
    %cst_83 = arith.constant 5.000000e-01 : f32
    %325 = vector.broadcast %cst_83 : f32 to vector<8x384xf32>
    %326 = arith.mulf %325, %324 : vector<8x384xf32>
    %327 = math.tanh %326 : vector<8x384xf32>
    %cst_84 = arith.constant 5.000000e-01 : f32
    %328 = vector.broadcast %cst_84 : f32 to vector<8x384xf32>
    %329 = arith.mulf %328, %327 : vector<8x384xf32>
    %cst_85 = arith.constant 5.000000e-01 : f32
    %330 = vector.broadcast %cst_85 : f32 to vector<8x384xf32>
    %331 = arith.addf %329, %330 : vector<8x384xf32>
    %332 = vector.extract_strided_slice %323 {offsets = [0, 384], sizes = [8, 128], strides = [1, 1]} : vector<8x512xf32> to vector<8x128xf32>
    %333 = math.tanh %332 : vector<8x128xf32>
    %334 = vector.extract_strided_slice %331 {offsets = [0, 0], sizes = [8, 128], strides = [1, 1]} : vector<8x384xf32> to vector<8x128xf32>
    %335 = vector.extract_strided_slice %331 {offsets = [0, 128], sizes = [8, 128], strides = [1, 1]} : vector<8x384xf32> to vector<8x128xf32>
    %336 = vector.extract_strided_slice %331 {offsets = [0, 256], sizes = [8, 128], strides = [1, 1]} : vector<8x384xf32> to vector<8x128xf32>
    %337 = arith.mulf %335, %293 : vector<8x128xf32>
    %338 = arith.mulf %334, %333 : vector<8x128xf32>
    %339 = arith.addf %337, %338 : vector<8x128xf32>
    %340 = math.tanh %339 : vector<8x128xf32>
    %341 = arith.mulf %336, %340 : vector<8x128xf32>
    %c7 = arith.constant 7 : index
    %c0_86 = arith.constant 0 : index
    %c0_87 = arith.constant 0 : index
    %342 = vector.load %arg17[%c7, %c0_86, %c0_87] : memref<8x8x512xf32, #tpu.memory_space<vmem>>, vector<1x8x512xf32>
    %343 = vector.shape_cast %342 : vector<1x8x512xf32> to vector<8x512xf32>
    %344 = arith.addf %343, %321 : vector<8x512xf32>
    %345 = vector.extract_strided_slice %344 {offsets = [0, 0], sizes = [8, 384], strides = [1, 1]} : vector<8x512xf32> to vector<8x384xf32>
    %cst_88 = arith.constant 5.000000e-01 : f32
    %346 = vector.broadcast %cst_88 : f32 to vector<8x384xf32>
    %347 = arith.mulf %346, %345 : vector<8x384xf32>
    %348 = math.tanh %347 : vector<8x384xf32>
    %cst_89 = arith.constant 5.000000e-01 : f32
    %349 = vector.broadcast %cst_89 : f32 to vector<8x384xf32>
    %350 = arith.mulf %349, %348 : vector<8x384xf32>
    %cst_90 = arith.constant 5.000000e-01 : f32
    %351 = vector.broadcast %cst_90 : f32 to vector<8x384xf32>
    %352 = arith.addf %350, %351 : vector<8x384xf32>
    %353 = vector.extract_strided_slice %344 {offsets = [0, 384], sizes = [8, 128], strides = [1, 1]} : vector<8x512xf32> to vector<8x128xf32>
    %354 = math.tanh %353 : vector<8x128xf32>
    %355 = vector.extract_strided_slice %352 {offsets = [0, 0], sizes = [8, 128], strides = [1, 1]} : vector<8x384xf32> to vector<8x128xf32>
    %356 = vector.extract_strided_slice %352 {offsets = [0, 128], sizes = [8, 128], strides = [1, 1]} : vector<8x384xf32> to vector<8x128xf32>
    %357 = vector.extract_strided_slice %352 {offsets = [0, 256], sizes = [8, 128], strides = [1, 1]} : vector<8x384xf32> to vector<8x128xf32>
    %358 = arith.mulf %356, %314 : vector<8x128xf32>
    %359 = arith.mulf %355, %354 : vector<8x128xf32>
    %360 = arith.addf %358, %359 : vector<8x128xf32>
    %361 = math.tanh %360 : vector<8x128xf32>
    %362 = arith.mulf %357, %361 : vector<8x128xf32>
    %363 = arith.truncf %362 : vector<8x128xf32> to vector<8x128xbf16>
    %364 = arith.truncf %341 : vector<8x128xf32> to vector<8x128xbf16>
    %365 = tpu.concatenate %363, %364 in 1 : vector<8x128xbf16>, vector<8x128xbf16> -> vector<8x256xbf16>
    %cst_91 = arith.constant dense<0.000000e+00> : vector<8x1024xf32>
    %366 = tpu.matmul %365, %12, %cst_91 {dimension_numbers = #tpu.dot_dimension_numbers<[1], [0], [0], [1], [0, 0, 1, 1], [], []>} : vector<8x256xbf16>, vector<256x1024xbf16>, vector<8x1024xf32> -> vector<8x1024xf32>
    %367 = vector.extract_strided_slice %366 {offsets = [0, 0], sizes = [8, 512], strides = [1, 1]} : vector<8x1024xf32> to vector<8x512xf32>
    %368 = vector.extract_strided_slice %366 {offsets = [0, 512], sizes = [8, 512], strides = [1, 1]} : vector<8x1024xf32> to vector<8x512xf32>
    %369 = arith.addf %368, %15 : vector<8x512xf32>
    %370 = vector.extract_strided_slice %369 {offsets = [0, 0], sizes = [8, 384], strides = [1, 1]} : vector<8x512xf32> to vector<8x384xf32>
    %cst_92 = arith.constant 5.000000e-01 : f32
    %371 = vector.broadcast %cst_92 : f32 to vector<8x384xf32>
    %372 = arith.mulf %371, %370 : vector<8x384xf32>
    %373 = math.tanh %372 : vector<8x384xf32>
    %cst_93 = arith.constant 5.000000e-01 : f32
    %374 = vector.broadcast %cst_93 : f32 to vector<8x384xf32>
    %375 = arith.mulf %374, %373 : vector<8x384xf32>
    %cst_94 = arith.constant 5.000000e-01 : f32
    %376 = vector.broadcast %cst_94 : f32 to vector<8x384xf32>
    %377 = arith.addf %375, %376 : vector<8x384xf32>
    %378 = vector.extract_strided_slice %369 {offsets = [0, 384], sizes = [8, 128], strides = [1, 1]} : vector<8x512xf32> to vector<8x128xf32>
    %379 = math.tanh %378 : vector<8x128xf32>
    %380 = vector.extract_strided_slice %377 {offsets = [0, 0], sizes = [8, 128], strides = [1, 1]} : vector<8x384xf32> to vector<8x128xf32>
    %381 = vector.extract_strided_slice %377 {offsets = [0, 128], sizes = [8, 128], strides = [1, 1]} : vector<8x384xf32> to vector<8x128xf32>
    %382 = vector.extract_strided_slice %377 {offsets = [0, 256], sizes = [8, 128], strides = [1, 1]} : vector<8x384xf32> to vector<8x128xf32>
    %383 = arith.mulf %381, %339 : vector<8x128xf32>
    %384 = arith.mulf %380, %379 : vector<8x128xf32>
    %385 = arith.addf %383, %384 : vector<8x128xf32>
    %386 = math.tanh %385 : vector<8x128xf32>
    %387 = arith.mulf %382, %386 : vector<8x128xf32>
    %c0_95 = arith.constant 0 : index
    %c0_96 = arith.constant 0 : index
    %388 = vector.load %arg13[%c0_95, %c0_96] : memref<8x512xf32, #tpu.memory_space<vmem>>, vector<8x512xf32>
    tpu.vector_store %arg13[%c0_95, %c0_96], %367 {strides = array<i32>} : memref<8x512xf32, #tpu.memory_space<vmem>>, vector<8x512xf32>,
    %c0_97 = arith.constant 0 : index
    %c0_98 = arith.constant 0 : index
    %389 = vector.load %arg14[%c0_97, %c0_98] : memref<8x128xf32, #tpu.memory_space<vmem>>, vector<8x128xf32>
    tpu.vector_store %arg14[%c0_97, %c0_98], %360 {strides = array<i32>} : memref<8x128xf32, #tpu.memory_space<vmem>>, vector<8x128xf32>,
    %c0_99 = arith.constant 0 : index
    %c0_100 = arith.constant 0 : index
    %390 = vector.load %arg15[%c0_99, %c0_100] : memref<8x128xf32, #tpu.memory_space<vmem>>, vector<8x128xf32>
    tpu.vector_store %arg15[%c0_99, %c0_100], %387 {strides = array<i32>} : memref<8x128xf32, #tpu.memory_space<vmem>>, vector<8x128xf32>,
    %c0_101 = arith.constant 0 : index
    %c0_102 = arith.constant 0 : index
    %391 = vector.load %arg16[%c0_101, %c0_102] : memref<8x128xf32, #tpu.memory_space<vmem>>, vector<8x128xf32>
    tpu.vector_store %arg16[%c0_101, %c0_102], %385 {strides = array<i32>} : memref<8x128xf32, #tpu.memory_space<vmem>>, vector<8x128xf32>,
    %c0_i32_103 = arith.constant 0 : i32
    %392 = arith.cmpi eq, %arg0, %c0_i32_103 : i32
    %393 = arith.extui %392 : i1 to i32
    %c0_i32_104 = arith.constant 0 : i32
    %394 = arith.cmpi ne, %393, %c0_i32_104 : i32
    scf.if %394 {
      %395 = arith.truncf %387 : vector<8x128xf32> to vector<8x128xbf16>
      %c0_105 = arith.constant 0 : index
      %c0_106 = arith.constant 0 : index
      %396 = vector.load %arg6[%c0_105, %c0_106] : memref<128x128xbf16, #tpu.memory_space<vmem>>, vector<128x128xbf16>
      %cst_107 = arith.constant dense<0.000000e+00> : vector<8x128xf32>
      %397 = tpu.matmul %395, %396, %cst_107 {dimension_numbers = #tpu.dot_dimension_numbers<[1], [0], [0], [1], [0, 0, 1, 1], [], []>} : vector<8x128xbf16>, vector<128x128xbf16>, vector<8x128xf32> -> vector<8x128xf32>
      %c0_108 = arith.constant 0 : index
      %c0_109 = arith.constant 0 : index
      %398 = vector.load %arg7[%c0_108, %c0_109] : memref<1x128xf32, #tpu.memory_space<vmem>>, vector<1x128xf32>
      %399 = vector.broadcast %398 : vector<1x128xf32> to vector<8x128xf32>
      %400 = arith.addf %397, %399 : vector<8x128xf32>
      %401 = tpu.iota {dimensions = array<i32: 0>} : vector<8x1xi32>
      %c2_i32 = arith.constant 2 : i32
      %402 = vector.broadcast %c2_i32 : i32 to vector<8x1xi32>
      %403 = arith.cmpi slt, %401, %402 : vector<8x1xi32>
      %404 = arith.extui %403 : vector<8x1xi1> to vector<8x1xi32>
      %405 = arith.sitofp %404 : vector<8x1xi32> to vector<8x1xf32>
      %406 = vector.broadcast %405 : vector<8x1xf32> to vector<8x128xf32>
      %407 = arith.mulf %400, %406 : vector<8x128xf32>
      %cst_110 = arith.constant dense<0.000000e+00> : vector<128xf32>
      %408 = vector.multi_reduction <add>, %407, %cst_110 [0] : vector<8x128xf32> to vector<128xf32>
      %409 = vector.shape_cast %408 : vector<128xf32> to vector<1x128xf32>
      %cst_111 = arith.constant 2.000000e+00 : f32
      %410 = vector.broadcast %cst_111 : f32 to vector<1x128xf32>
      %411 = arith.divf %409, %410 : vector<1x128xf32>
      %412 = vector.broadcast %411 : vector<1x128xf32> to vector<8x128xf32>
      %413 = arith.subf %400, %412 : vector<8x128xf32>
      %414 = vector.broadcast %405 : vector<8x1xf32> to vector<8x128xf32>
      %415 = arith.mulf %413, %414 : vector<8x128xf32>
      %416 = arith.mulf %415, %415 : vector<8x128xf32>
      %cst_112 = arith.constant dense<0.000000e+00> : vector<128xf32>
      %417 = vector.multi_reduction <add>, %416, %cst_112 [0] : vector<8x128xf32> to vector<128xf32>
      %418 = vector.shape_cast %417 : vector<128xf32> to vector<1x128xf32>
      %cst_113 = arith.constant 2.000000e+00 : f32
      %419 = vector.broadcast %cst_113 : f32 to vector<1x128xf32>
      %420 = arith.divf %418, %419 : vector<1x128xf32>
      %421 = vector.broadcast %411 : vector<1x128xf32> to vector<8x128xf32>
      %422 = arith.subf %400, %421 : vector<8x128xf32>
      %cst_114 = arith.constant 9.99999974E-6 : f32
      %423 = vector.broadcast %cst_114 : f32 to vector<1x128xf32>
      %424 = arith.addf %420, %423 : vector<1x128xf32>
      %425 = math.rsqrt %424 : vector<1x128xf32>
      %426 = vector.broadcast %425 : vector<1x128xf32> to vector<8x128xf32>
      %427 = arith.mulf %422, %426 : vector<8x128xf32>
      %c0_115 = arith.constant 0 : index
      %c0_116 = arith.constant 0 : index
      %428 = vector.load %arg8[%c0_115, %c0_116] : memref<1x128xf32, #tpu.memory_space<vmem>>, vector<1x128xf32>
      %429 = vector.broadcast %428 : vector<1x128xf32> to vector<8x128xf32>
      %430 = arith.mulf %427, %429 : vector<8x128xf32>
      %c0_117 = arith.constant 0 : index
      %c0_118 = arith.constant 0 : index
      %431 = vector.load %arg9[%c0_117, %c0_118] : memref<1x128xf32, #tpu.memory_space<vmem>>, vector<1x128xf32>
      %432 = vector.broadcast %431 : vector<1x128xf32> to vector<8x128xf32>
      %433 = arith.addf %430, %432 : vector<8x128xf32>
      %cst_119 = arith.constant 0.000000e+00 : f32
      %434 = vector.broadcast %cst_119 : f32 to vector<8x128xf32>
      %435 = arith.cmpf ogt, %433, %434 : vector<8x128xf32>
      %cst_120 = arith.constant 0.00999999977 : f32
      %436 = vector.broadcast %cst_120 : f32 to vector<8x128xf32>
      %437 = arith.mulf %436, %433 : vector<8x128xf32>
      %438 = arith.select %435, %433, %437 : vector<8x128xi1>, vector<8x128xf32>
      %439 = arith.truncf %438 : vector<8x128xf32> to vector<8x128xbf16>
      %c0_121 = arith.constant 0 : index
      %c0_122 = arith.constant 0 : index
      %440 = vector.load %arg10[%c0_121, %c0_122] : memref<128x128xbf16, #tpu.memory_space<vmem>>, vector<128x128xbf16>
      %cst_123 = arith.constant dense<0.000000e+00> : vector<8x128xf32>
      %441 = tpu.matmul %439, %440, %cst_123 {dimension_numbers = #tpu.dot_dimension_numbers<[1], [0], [0], [1], [0, 0, 1, 1], [], []>} : vector<8x128xbf16>, vector<128x128xbf16>, vector<8x128xf32> -> vector<8x128xf32>
      %c0_124 = arith.constant 0 : index
      %c0_125 = arith.constant 0 : index
      %442 = vector.load %arg11[%c0_124, %c0_125] : memref<1x128xf32, #tpu.memory_space<vmem>>, vector<1x128xf32>
      %443 = vector.broadcast %442 : vector<1x128xf32> to vector<8x128xf32>
      %444 = arith.addf %441, %443 : vector<8x128xf32>
      %cst_126 = arith.constant 5.000000e-01 : f32
      %445 = vector.broadcast %cst_126 : f32 to vector<8x128xf32>
      %446 = arith.mulf %445, %444 : vector<8x128xf32>
      %447 = math.tanh %446 : vector<8x128xf32>
      %cst_127 = arith.constant 5.000000e-01 : f32
      %448 = vector.broadcast %cst_127 : f32 to vector<8x128xf32>
      %449 = arith.mulf %448, %447 : vector<8x128xf32>
      %cst_128 = arith.constant 5.000000e-01 : f32
      %450 = vector.broadcast %cst_128 : f32 to vector<8x128xf32>
      %451 = arith.addf %449, %450 : vector<8x128xf32>
      %c0_129 = arith.constant 0 : index
      %c0_130 = arith.constant 0 : index
      %452 = vector.load %arg12[%c0_129, %c0_130] : memref<8x128xf32, #tpu.memory_space<vmem>>, vector<8x128xf32>
      tpu.vector_store %arg12[%c0_129, %c0_130], %451 {strides = array<i32>} : memref<8x128xf32, #tpu.memory_space<vmem>>, vector<8x128xf32>,
    } else {
    }
    return
  }
  func.func @transform_0(%arg0: i32) -> (i32, i32, i32) {
    %c0_i32 = arith.constant 0 : i32
    %c0_i32_0 = arith.constant 0 : i32
    %c0_i32_1 = arith.constant 0 : i32
    return %arg0, %c0_i32, %c0_i32_0 : i32, i32, i32
  }
  func.func @transform_1(%arg0: i32) -> (i32, i32) {
    %c0_i32 = arith.constant 0 : i32
    %c0_i32_0 = arith.constant 0 : i32
    %c0_i32_1 = arith.constant 0 : i32
    return %c0_i32, %c0_i32_0 : i32, i32
  }
  func.func @transform_2(%arg0: i32) -> (i32, i32) {
    %c0_i32 = arith.constant 0 : i32
    %c0_i32_0 = arith.constant 0 : i32
    %c0_i32_1 = arith.constant 0 : i32
    return %c0_i32, %c0_i32_0 : i32, i32
  }
  func.func @transform_3(%arg0: i32) -> (i32, i32) {
    %c0_i32 = arith.constant 0 : i32
    %c0_i32_0 = arith.constant 0 : i32
    %c0_i32_1 = arith.constant 0 : i32
    return %c0_i32, %c0_i32_0 : i32, i32
  }
  func.func @transform_4(%arg0: i32) -> (i32, i32) {
    %c0_i32 = arith.constant 0 : i32
    %c0_i32_0 = arith.constant 0 : i32
    %c0_i32_1 = arith.constant 0 : i32
    return %c0_i32, %c0_i32_0 : i32, i32
  }
  func.func @transform_5(%arg0: i32) -> (i32, i32) {
    %c0_i32 = arith.constant 0 : i32
    %c0_i32_0 = arith.constant 0 : i32
    %c0_i32_1 = arith.constant 0 : i32
    return %c0_i32, %c0_i32_0 : i32, i32
  }
  func.func @transform_6(%arg0: i32) -> (i32, i32) {
    %c0_i32 = arith.constant 0 : i32
    %c0_i32_0 = arith.constant 0 : i32
    %c0_i32_1 = arith.constant 0 : i32
    return %c0_i32, %c0_i32_0 : i32, i32
  }
  func.func @transform_7(%arg0: i32) -> (i32, i32) {
    %c0_i32 = arith.constant 0 : i32
    %c0_i32_0 = arith.constant 0 : i32
    %c0_i32_1 = arith.constant 0 : i32
    return %c0_i32, %c0_i32_0 : i32, i32
  }
  func.func @transform_8(%arg0: i32) -> (i32, i32) {
    %c0_i32 = arith.constant 0 : i32
    %c0_i32_0 = arith.constant 0 : i32
    %c0_i32_1 = arith.constant 0 : i32
    return %c0_i32, %c0_i32_0 : i32, i32
  }
  func.func @transform_9(%arg0: i32) -> (i32, i32) {
    %c0_i32 = arith.constant 0 : i32
    %c0_i32_0 = arith.constant 0 : i32
    %c0_i32_1 = arith.constant 0 : i32
    return %c0_i32, %c0_i32_0 : i32, i32
  }
  func.func @transform_10(%arg0: i32) -> (i32, i32) {
    %c0_i32 = arith.constant 0 : i32
    %c0_i32_0 = arith.constant 0 : i32
    %c0_i32_1 = arith.constant 0 : i32
    return %c0_i32, %c0_i32_0 : i32, i32
  }
  func.func @transform_11(%arg0: i32) -> (i32, i32) {
    %c0_i32 = arith.constant 0 : i32
    %c0_i32_0 = arith.constant 0 : i32
    %c0_i32_1 = arith.constant 0 : i32
    return %c0_i32, %c0_i32_0 : i32, i32
  }
}

</mosaic_0001>

<bundles_post_ra>
// kernel: movie_lstm_forward.1
= control target key start
LH: loop header
LB: loop body
LE: loop exit
PB: predicated region body
PF: predicated region fallthrough
CT: control target
= control target key end

     0   :  { %vm112_vm0 = vcmask 130048   ;;  %s6955_s1 = inlined_call_operand.vmem [shape: bf16[16,512], index: 1, kind: input, shape index: {}]   ;;  %s6956_s0 = inlined_call_operand.vmem [shape: bf16[8,8,16], index: 0, kind: input, shape index: {}]   ;;  %s6957_s3 = inlined_call_operand.vmem [shape: bf16[256,1024], index: 3, kind: input, shape index: {}]   ;;  %s6958_s2 = inlined_call_operand.vmem [shape: f32[1,512], index: 2, kind: input, shape index: {}]   ;;  %s6959_s4 = inlined_call_operand.vmem [shape: f32[1,512], index: 4, kind: input, shape index: {}]   ;;  %s6960_s6 = inlined_call_operand.vmem [shape: f32[1,128], index: 6, kind: input, shape index: {}]   ;;  %s6961_s7 = inlined_call_operand.vmem [shape: f32[1,128], index: 7, kind: input, shape index: {}]   ;;  %s6962_s8 = inlined_call_operand.vmem [shape: f32[1,128], index: 8, kind: input, shape index: {}]   ;;  %s6963_s5 = inlined_call_operand.vmem [shape: bf16[128,128], index: 5, kind: input, shape index: {}]   ;;  %s6964_s10 = inlined_call_operand.vmem [shape: f32[1,128], index: 10, kind: input, shape index: {}]   ;;  %s6965_s9 = inlined_call_operand.vmem [shape: bf16[128,128], index: 9, kind: input, shape index: {}]   ;;  %s6966_s11 = inlined_call_operand.vmem [shape: f32[8,128], index: 11, kind: output, shape index: {}]  }
   0x1   :  { %v3385_v0 = vld [vmem:[%s6955_s1] sm:$0xf]  ;;  %v3998_v1 = vld [vmem:[%s6955_s1 + $0xc] sm:$0xf0]  ;;  %v3996_v2 = vld [vmem:[%s6955_s1 + $0x4] sm:$0xf] }
   0x2   :  { %v3386_v3 = vor.u32 %v3998_v1, %v3385_v0  ;;  %v3387_v4 = vld [vmem:[%s6955_s1 + $0x10] sm:$0xf0]  ;;  %v4397_v5 = vld [vmem:[%s6956_s0 + $0x18] sm:$0xff]  ;;  %v4402_v6 = vld [vmem:[%s6956_s0] sm:$0xff] }
   0x3   :  { %v3390_v7 = vor.u32 %v3996_v2, %v3387_v4  ;;  %v3393_v8 = vld [vmem:[%s6955_s1 + $0x8] sm:$0xf]  ;;  %v3999_v9 = vld [vmem:[%s6955_s1 + $0x14] sm:$0xf0]  ;;  %v3997_v10 = vld [vmem:[%s6955_s1 + $0xc] sm:$0xf] }
   0x4   :  { %4144 = vmatpush.bf16.msra.mxu2 %v3386_v3  ;;  %132 = vmatpush.bf16.msra.mxu0 %v3386_v3  ;;  %v3394_v11 = vor.u32 %v3999_v9, %v3393_v8  ;;  %v3395_v12 = vld [vmem:[%s6955_s1 + $0x18] sm:$0xf0]  ;;  %v4120_v13 = vld [vmem:[%s6957_s3 + $0x3c4] sm:$0xf]  ;;  %v3641_v17 = vld [vmem:[%s6957_s3 + $0x1c0] sm:$0xf] }
   0x5   :  { %v3899_v14 = vld [vmem:[%s6957_s3 + $0x3e0] sm:$0xf0]  ;;  %4145 = vmatpush.bf16.msra.mxu3 %v3390_v7  ;;  %161 = vmatpush.bf16.msra.mxu1 %v3390_v7  ;;  %v3398_v15 = vor.u32 %v3997_v10, %v3395_v12  ;;  %v4060_v19 = vld [vmem:[%s6957_s3 + $0x1dc] sm:$0xf0]  ;;  %v3993_v4 = vld [vmem:[%s6956_s0 + $0x8] sm:$0xff] }
   0x6   :  { %v4112_v16 = vld [vmem:[%s6957_s3 + $0x384] sm:$0xf]  ;;  %v4428_v18 = vor.u32 %v4120_v13, %v3899_v14  ;;  %v3897_v20 = vld [vmem:[%s6957_s3 + $0x3c0] sm:$0xf]  ;;  %v4446_v23 = vor.u32 %v4060_v19, %v3641_v17  ;;  %v3994_v19 = vld [vmem:[%s6956_s0 + $0x10] sm:$0xff] }
   0x7   :  { %v4124_v21 = vld [vmem:[%s6957_s3 + $0x3dc] sm:$0xf0]  ;;  %3402 = vmatmul.msk.bf16.vlgmr.msra.gmra.mxu2 %vm112_vm0, %v4397_v5  ;;  %3399 = vmatmul.msk.bf16.vlgmr.msra.gmra.mxu0 %vm112_vm0, %v4402_v6  ;;  %v3867_v22 = vld [vmem:[%s6957_s3 + $0x3a0] sm:$0xf0] }
   0x8   :  { %190 = vmatpush.bf16.msrb.mxu2 %v3394_v11  ;;  %7216 = vst [vmem:[#allocation7_spill] sm:$0xff] %v4428_v18  ;;  %v4448_v24 = vor.u32 %v4124_v21, %v3897_v20  ;;  %v4056_v25 = vld [vmem:[%s6957_s3 + $0x1c4] sm:$0xf]  ;;  %3406 = vmatmul.msk.bf16.vlgmr.msra.gmra.mxu3 %vm112_vm0, %v4397_v5  ;;  %v3609_v28 = vld [vmem:[%s6957_s3 + $0x180] sm:$0xf]  ;;  %v4476_v32 = vor.u32 %v4112_v16, %v3867_v22 }
   0x9   :  { %7217 = vst [vmem:[#allocation8_spill] sm:$0xff] %v4446_v23  ;;  %v3643_v26 = vld [vmem:[%s6957_s3 + $0x1e0] sm:$0xf0]  ;;  %3403 = vmatmul.msk.bf16.vlgmr.msra.gmra.mxu1 %vm112_vm0, %v4402_v6  ;;  %219 = vmatpush.bf16.msrb.mxu3 %v3398_v15  ;;  %v4052_v29 = vld [vmem:[%s6957_s3 + $0x19c] sm:$0xf0] }
   0xa   :  { %7218 = vst [vmem:[#allocation9_spill] sm:$0xff] %v4448_v24  ;;  %v4460_v27 = vor.u32 %v4056_v25, %v3643_v26  ;;  %1086 = vmatpush.bf16.msrb.mxu0 %v4446_v23  ;;  %v3865_v30 = vld [vmem:[%s6957_s3 + $0x380] sm:$0xf]  ;;  %1099 = vmatpush.bf16.msrb.mxu1 %v4448_v24  ;;  %v4104_v33 = vld [vmem:[%s6957_s3 + $0x344] sm:$0xf]  ;;  %v4482_v34 = vor.u32 %v4052_v29, %v3609_v28 }
   0xb   :  { %v4116_v31 = vld [vmem:[%s6957_s3 + $0x39c] sm:$0xf0]  ;;  %7220 = vst [vmem:[#allocation11_spill] sm:$0xff] %v4476_v32  ;;  %v4048_v36 = vld [vmem:[%s6957_s3 + $0x184] sm:$0xf] }
   0xc   :  { %7219 = vst [vmem:[#allocation10_spill] sm:$0xff] %v4460_v27  ;;  %v4484_v35 = vor.u32 %v4116_v31, %v3865_v30  ;;  %v3611_v37 = vld [vmem:[%s6957_s3 + $0x1a0] sm:$0xf0]  ;;  %1112 = vmatpush.bf16.msra.mxu2 %v4460_v27  ;;  %v3577_v40 = vld [vmem:[%s6957_s3 + $0x140] sm:$0xf] }
   0xd   :  { %1125 = vmatpush.bf16.msra.mxu3 %v4428_v18  ;;  %7221 = vst [vmem:[#allocation12_spill] sm:$0xff] %v4482_v34  ;;  %v3835_v38 = vld [vmem:[%s6957_s3 + $0x360] sm:$0xf0]  ;;  %v4496_v39 = vor.u32 %v4048_v36, %v3611_v37  ;;  %v4044_v41 = vld [vmem:[%s6957_s3 + $0x15c] sm:$0xf0] }
   0xe   :  { %7222 = vst [vmem:[#allocation13_spill] sm:$0xff] %v4484_v35  ;;  %v3833_v42 = vld [vmem:[%s6957_s3 + $0x340] sm:$0xf]  ;;  %v4040_v44 = vld [vmem:[%s6957_s3 + $0x144] sm:$0xf]  ;;  %1087 = vmatpush.bf16.msrb.mxu0 %v4482_v34  ;;  %v4514_v45 = vor.u32 %v4044_v41, %v3577_v40  ;;  %v4520_v47 = vor.u32 %v4104_v33, %v3835_v38  ;;  %1100 = vmatpush.bf16.msrb.mxu1 %v4484_v35 }
   0xf   :  { %7223 = vst [vmem:[#allocation14_spill] sm:$0xff] %v4496_v39  ;;  %v4108_v43 = vld [vmem:[%s6957_s3 + $0x35c] sm:$0xf0]  ;;  %v3579_v46 = vld [vmem:[%s6957_s3 + $0x160] sm:$0xf0] }
  0x10   :  { %7224 = vst [vmem:[#allocation15_spill] sm:$0xff] %v4514_v45  ;;  %v4096_v48 = vld [vmem:[%s6957_s3 + $0x304] sm:$0xf]  ;;  %v4526_v49 = vor.u32 %v4108_v43, %v3833_v42  ;;  %v3545_v50 = vld [vmem:[%s6957_s3 + $0x100] sm:$0xf]  ;;  %1113 = vmatpush.bf16.msra.mxu2 %v4496_v39  ;;  %v4538_v53 = vor.u32 %v4040_v44, %v3579_v46 }
  0x11   :  { %1126 = vmatpush.bf16.msra.mxu3 %v4476_v32  ;;  %7225 = vst [vmem:[#allocation16_spill] sm:$0xff] %v4520_v47  ;;  %v4036_v51 = vld [vmem:[%s6957_s3 + $0x11c] sm:$0xf0]  ;;  %v3803_v52 = vld [vmem:[%s6957_s3 + $0x320] sm:$0xf0] }
  0x12   :  { %7226 = vst [vmem:[#allocation17_spill] sm:$0xff] %v4526_v49  ;;  %v3801_v54 = vld [vmem:[%s6957_s3 + $0x300] sm:$0xf]  ;;  %1088 = vmatpush.bf16.msrb.mxu0 %v4514_v45  ;;  %v4547_v56 = vor.u32 %v4036_v51, %v3545_v50  ;;  %v4032_v57 = vld [vmem:[%s6957_s3 + $0x104] sm:$0xf]  ;;  %v4556_v59 = vor.u32 %v4096_v48, %v3803_v52  ;;  %1101 = vmatpush.bf16.msrb.mxu1 %v4526_v49 }
  0x13   :  { %7227 = vst [vmem:[#allocation18_spill] sm:$0xff] %v4538_v53  ;;  %v4100_v55 = vld [vmem:[%s6957_s3 + $0x31c] sm:$0xf0]  ;;  %v3547_v58 = vld [vmem:[%s6957_s3 + $0x120] sm:$0xf0] }
  0x14   :  { %7228 = vst [vmem:[#allocation19_spill] sm:$0xff] %v4547_v56  ;;  %v4088_v60 = vld [vmem:[%s6957_s3 + $0x2c4] sm:$0xf]  ;;  %v4562_v61 = vor.u32 %v4100_v55, %v3801_v54  ;;  %v3513_v62 = vld [vmem:[%s6957_s3 + $0xc0] sm:$0xf]  ;;  %1114 = vmatpush.bf16.msra.mxu2 %v4538_v53  ;;  %v4580_v3 = vor.u32 %v4032_v57, %v3547_v58 }
  0x15   :  { %1127 = vmatpush.bf16.msra.mxu3 %v4520_v47  ;;  %7229 = vst [vmem:[#allocation20_spill] sm:$0xff] %v4556_v59  ;;  %v4028_v63 = vld [vmem:[%s6957_s3 + $0xdc] sm:$0xf0]  ;;  %v3771_v0 = vld [vmem:[%s6957_s3 + $0x2e0] sm:$0xf0] }
  0x16   :  { %7230 = vst [vmem:[#allocation21_spill] sm:$0xff] %v4562_v61  ;;  %v3769_v1 = vld [vmem:[%s6957_s3 + $0x2c0] sm:$0xf]  ;;  %1089 = vmatpush.bf16.msrb.mxu0 %v4547_v56  ;;  %v4586_v7 = vor.u32 %v4028_v63, %v3513_v62  ;;  %v4024_v8 = vld [vmem:[%s6957_s3 + $0xc4] sm:$0xf]  ;;  %v4595_v10 = vor.u32 %v4088_v60, %v3771_v0  ;;  %1102 = vmatpush.bf16.msrb.mxu1 %v4562_v61 }
  0x17   :  { %v4092_v2 = vld [vmem:[%s6957_s3 + $0x2dc] sm:$0xf0]  ;;  %7231 = vst [vmem:[#allocation22_spill] sm:$0xff] %v4580_v3  ;;  %v3515_v9 = vld [vmem:[%s6957_s3 + $0xe0] sm:$0xf0]  ;;  %3407 = vmatmul.msk.bf16.vlgmr.msrb.gmra.mxu2 %vm112_vm0, %v4402_v6  ;;  %3400 = vmatmul.msk.bf16.gmra.mxu0 %vm112_vm0, %v3993_v4 }
  0x18   :  { %7232 = vst [vmem:[#allocation23_spill] sm:$0xff] %v4586_v7  ;;  %v4598_v11 = vor.u32 %v4092_v2, %v3769_v1  ;;  %v4080_v12 = vld [vmem:[%s6957_s3 + $0x284] sm:$0xf]  ;;  %3411 = vmatmul.msk.bf16.vlgmr.msrb.gmra.mxu3 %vm112_vm0, %v4402_v6  ;;  %1115 = vmatpush.bf16.msra.mxu2 %v4580_v3  ;;  %v4612_v14 = vor.u32 %v4024_v8, %v3515_v9  ;;  %v3481_v20 = vld [vmem:[%s6957_s3 + $0x80] sm:$0xf] }
  0x19   :  { %1128 = vmatpush.bf16.msra.mxu3 %v4556_v59  ;;  %7233 = vst [vmem:[#allocation24_spill] sm:$0xff] %v4595_v10  ;;  %v3739_v13 = vld [vmem:[%s6957_s3 + $0x2a0] sm:$0xf0]  ;;  %3404 = vmatmul.msk.bf16.gmra.mxu1 %vm112_vm0, %v3993_v4  ;;  %v4020_v21 = vld [vmem:[%s6957_s3 + $0x9c] sm:$0xf0] }
  0x1a   :  { %7234 = vst [vmem:[#allocation25_spill] sm:$0xff] %v4598_v11  ;;  %1090 = vmatpush.bf16.msrb.mxu0 %v4586_v7  ;;  %v4617_v15 = vor.u32 %v4080_v12, %v3739_v13  ;;  %1103 = vmatpush.bf16.msrb.mxu1 %v4598_v11  ;;  %v4072_v16 = vld [vmem:[%s6957_s3 + $0x244] sm:$0xf]  ;;  %v3737_v22 = vld [vmem:[%s6957_s3 + $0x280] sm:$0xf]  ;;  %v4647_v25 = vor.u32 %v4020_v21, %v3481_v20 }
  0x1b   :  { %7235 = vst [vmem:[#allocation26_spill] sm:$0xff] %v4612_v14  ;;  %v3707_v6 = vld [vmem:[%s6957_s3 + $0x260] sm:$0xf0]  ;;  %v4084_v26 = vld [vmem:[%s6957_s3 + $0x29c] sm:$0xf0] }
  0x1c   :  { %7236 = vst [vmem:[#allocation27_spill] sm:$0xff] %v4617_v15  ;;  %1116 = vmatpush.bf16.msra.mxu2 %v4612_v14  ;;  %v4628_v17 = vor.u32 %v4072_v16, %v3707_v6  ;;  %v4016_v28 = vld [vmem:[%s6957_s3 + $0x84] sm:$0xf]  ;;  %v4658_v30 = vor.u32 %v4084_v26, %v3737_v22  ;;  %v4121_v37 = vld [vmem:[%s6957_s3 + $0x3cc] sm:$0xf] }
  0x1d   :  { %1129 = vmatpush.bf16.msra.mxu3 %v4595_v10  ;;  %7238 = vst [vmem:[#allocation29_spill] sm:$0xff] %v4647_v25  ;;  %v3483_v29 = vld [vmem:[%s6957_s3 + $0xa0] sm:$0xf0]  ;;  %v3907_v40 = vld [vmem:[%s6957_s3 + $0x3e8] sm:$0xf0] }
  0x1e   :  { %7237 = vst [vmem:[#allocation28_spill] sm:$0xff] %v4628_v17  ;;  %v4660_v31 = vor.u32 %v4016_v28, %v3483_v29  ;;  %v4064_v33 = vld [vmem:[%s6957_s3 + $0x204] sm:$0xf]  ;;  %1091 = vmatpush.bf16.msrb.mxu0 %v4647_v25  ;;  %1104 = vmatpush.bf16.msrb.mxu1 %v4658_v30  ;;  %v4681_v41 = vor.u32 %v4121_v37, %v3907_v40  ;;  %v3449_v42 = vld [vmem:[%s6957_s3 + $0x40] sm:$0xf] }
  0x1f   :  { %7239 = vst [vmem:[#allocation30_spill] sm:$0xff] %v4658_v30  ;;  %v3675_v36 = vld [vmem:[%s6957_s3 + $0x220] sm:$0xf0]  ;;  %v4012_v43 = vld [vmem:[%s6957_s3 + $0x5c] sm:$0xf0] }
  0x20   :  { %7240 = vst [vmem:[#allocation31_spill] sm:$0xff] %v4660_v31  ;;  %v4674_v38 = vor.u32 %v4064_v33, %v3675_v36  ;;  %1117 = vmatpush.bf16.msra.mxu2 %v4660_v31  ;;  %v3705_v44 = vld [vmem:[%s6957_s3 + $0x240] sm:$0xf]  ;;  %v4693_v46 = vor.u32 %v4012_v43, %v3449_v42  ;;  %v4008_v50 = vld [vmem:[%s6957_s3 + $0x44] sm:$0xf] }
  0x21   :  { %1130 = vmatpush.bf16.msra.mxu3 %v4617_v15  ;;  %7242 = vst [vmem:[#allocation33_spill] sm:$0xff] %v4681_v41  ;;  %v4076_v48 = vld [vmem:[%s6957_s3 + $0x25c] sm:$0xf0]  ;;  %v3451_v51 = vld [vmem:[%s6957_s3 + $0x60] sm:$0xf0] }
  0x22   :  { %7241 = vst [vmem:[#allocation32_spill] sm:$0xff] %v4674_v38  ;;  %v4705_v52 = vor.u32 %v4076_v48, %v3705_v44  ;;  %v4707_v54 = vor.u32 %v4008_v50, %v3451_v51  ;;  %v4113_v55 = vld [vmem:[%s6957_s3 + $0x38c] sm:$0xf]  ;;  %1092 = vmatpush.bf16.msrb.mxu0 %v4693_v46  ;;  %v3417_v60 = vld [vmem:[%s6957_s3] sm:$0xf] }
  0x23   :  { %7243 = vst [vmem:[#allocation34_spill] sm:$0xff] %v4693_v46  ;;  %v3875_v57 = vld [vmem:[%s6957_s3 + $0x3a8] sm:$0xf0]  ;;  %v4004_v62 = vld [vmem:[%s6957_s3 + $0x1c] sm:$0xf0] }
  0x24   :  { %7244 = vst [vmem:[#allocation35_spill] sm:$0xff] %v4705_v52  ;;  %v4716_v58 = vor.u32 %v4113_v55, %v3875_v57  ;;  %1105 = vmatpush.bf16.msrb.mxu1 %v4705_v52  ;;  %1118 = vmatpush.bf16.msra.mxu2 %v4707_v54  ;;  %v3673_v63 = vld [vmem:[%s6957_s3 + $0x200] sm:$0xf]  ;;  %v4729_v0 = vor.u32 %v4004_v62, %v3417_v60  ;;  %v4000_v2 = vld [vmem:[%s6957_s3 + $0x4] sm:$0xf] }
  0x25   :  { %1131 = vmatpush.bf16.msra.mxu3 %v4628_v17  ;;  %7245 = vst [vmem:[#allocation36_spill] sm:$0xff] %v4707_v54  ;;  %v4068_v1 = vld [vmem:[%s6957_s3 + $0x21c] sm:$0xf0]  ;;  %v3649_v12 = vld [vmem:[%s6957_s3 + $0x1c8] sm:$0xf] }
  0x26   :  { %7246 = vst [vmem:[#allocation37_spill] sm:$0xff] %v4716_v58  ;;  %v4741_v8 = vor.u32 %v4068_v1, %v3673_v63  ;;  %v4061_v13 = vld [vmem:[%s6957_s3 + $0x1e4] sm:$0xf0]  ;;  %1093 = vmatpush.bf16.msrb.mxu0 %v4729_v0  ;;  %v4057_v20 = vld [vmem:[%s6957_s3 + $0x1cc] sm:$0xf] }
  0x27   :  { %3408 = vmatmul.msk.bf16.gmra.mxu2 %vm112_vm0, %v3993_v4  ;;  %3401 = vmatmul.msk.bf16.gmra.mxu0 %vm112_vm0, %v3994_v19  ;;  %7247 = vst [vmem:[#allocation38_spill] sm:$0xff] %v4729_v0  ;;  %v3905_v16 = vld [vmem:[%s6957_s3 + $0x3c8] sm:$0xf]  ;;  %v4755_v6 = vor.u32 %v4061_v13, %v3649_v12  ;;  %v3651_v21 = vld [vmem:[%s6957_s3 + $0x1e8] sm:$0xf0] }
  0x28   :  { %3412 = vmatmul.msk.bf16.gmra.mxu3 %vm112_vm0, %v3993_v4  ;;  %v3419_v4 = vld [vmem:[%s6957_s3 + $0x20] sm:$0xf0]  ;;  %7248 = vst [vmem:[#allocation39_spill] sm:$0xff] %v4741_v8  ;;  %1106 = vmatpush.bf16.msrb.mxu1 %v4741_v8  ;;  %v4770_v26 = vor.u32 %v4057_v20, %v3651_v21  ;;  %v4105_v28 = vld [vmem:[%s6957_s3 + $0x34c] sm:$0xf] }
  0x29   :  { %3405 = vmatmul.msk.bf16.gmra.mxu1 %vm112_vm0, %v3994_v19  ;;  %1132 = vmatpush.bf16.msra.mxu3 %v4674_v38  ;;  %v4743_v9 = vor.u32 %v4000_v2, %v3419_v4  ;;  %7250 = vst [vmem:[#allocation41_spill] sm:$0xff] %v4755_v6  ;;  %v3843_v29 = vld [vmem:[%s6957_s3 + $0x368] sm:$0xf0]  ;;  %v3617_v36 = vld [vmem:[%s6957_s3 + $0x188] sm:$0xf] }
  0x2a   :  { %7252 = vst [vmem:[#allocation43_spill] sm:$0xff] %v4770_v26  ;;  %1138 = vmatpush.bf16.msra.mxu0 %v4755_v6  ;;  %v4779_v33 = vor.u32 %v4105_v28, %v3843_v29  ;;  %v4053_v37 = vld [vmem:[%s6957_s3 + $0x1a4] sm:$0xf0]  ;;  %v4049_v44 = vld [vmem:[%s6957_s3 + $0x18c] sm:$0xf] }
  0x2b   :  { %7249 = vst [vmem:[#allocation40_spill] sm:$0xff] %v4743_v9  ;;  %1119 = vmatpush.bf16.msra.mxu2 %v4743_v9  ;;  %v3873_v40 = vld [vmem:[%s6957_s3 + $0x388] sm:$0xf]  ;;  %v4792_v42 = vor.u32 %v4053_v37, %v3617_v36  ;;  %v3619_v48 = vld [vmem:[%s6957_s3 + $0x1a8] sm:$0xf0] }
  0x2c   :  { %7253 = vst [vmem:[#allocation44_spill] sm:$0xff] %v4779_v33  ;;  %v4117_v43 = vld [vmem:[%s6957_s3 + $0x3a4] sm:$0xf0]  ;;  %v4806_v51 = vor.u32 %v4049_v44, %v3619_v48  ;;  %v4097_v55 = vld [vmem:[%s6957_s3 + $0x30c] sm:$0xf] }
  0x2d   :  { %1177 = vmatpush.bf16.msrb.mxu3 %v4681_v41  ;;  %7254 = vst [vmem:[#allocation45_spill] sm:$0xff] %v4792_v42  ;;  %v4804_v50 = vor.u32 %v4117_v43, %v3873_v40  ;;  %v3811_v57 = vld [vmem:[%s6957_s3 + $0x328] sm:$0xf0]  ;;  %v3585_v62 = vld [vmem:[%s6957_s3 + $0x148] sm:$0xf] }
  0x2e   :  { %7256 = vst [vmem:[#allocation47_spill] sm:$0xff] %v4806_v51  ;;  %v4814_v60 = vor.u32 %v4097_v55, %v3811_v57  ;;  %1139 = vmatpush.bf16.msra.mxu0 %v4792_v42  ;;  %v4045_v63 = vld [vmem:[%s6957_s3 + $0x164] sm:$0xf0]  ;;  %v4041_v12 = vld [vmem:[%s6957_s3 + $0x14c] sm:$0xf] }
  0x2f   :  { %1164 = vmatpush.bf16.msrb.mxu2 %v4770_v26  ;;  %7255 = vst [vmem:[#allocation46_spill] sm:$0xff] %v4804_v50  ;;  %v3841_v1 = vld [vmem:[%s6957_s3 + $0x348] sm:$0xf]  ;;  %v4830_v2 = vor.u32 %v4045_v63, %v3585_v62  ;;  %v3587_v13 = vld [vmem:[%s6957_s3 + $0x168] sm:$0xf0] }
  0x30   :  { %7257 = vst [vmem:[#allocation48_spill] sm:$0xff] %v4814_v60  ;;  %v4109_v4 = vld [vmem:[%s6957_s3 + $0x364] sm:$0xf0]  ;;  %v4089_v20 = vld [vmem:[%s6957_s3 + $0x2cc] sm:$0xf] }
  0x31   :  { %1178 = vmatpush.bf16.msrb.mxu3 %v4716_v58  ;;  %7258 = vst [vmem:[#allocation49_spill] sm:$0xff] %v4830_v2  ;;  %v3779_v21 = vld [vmem:[%s6957_s3 + $0x2e8] sm:$0xf0]  ;;  %v3553_v29 = vld [vmem:[%s6957_s3 + $0x108] sm:$0xf] }
  0x32   :  { %v4854_v28 = vor.u32 %v4089_v20, %v3779_v21  ;;  %1140 = vmatpush.bf16.msra.mxu0 %v4830_v2  ;;  %v4037_v36 = vld [vmem:[%s6957_s3 + $0x124] sm:$0xf0]  ;;  %v4033_v43 = vld [vmem:[%s6957_s3 + $0x10c] sm:$0xf]  ;;  %v4893_v63 = vld [vmem:[%s6958_s2] sm:$0xf] }
  0x33   :  { %1165 = vmatpush.bf16.msrb.mxu2 %v4806_v51  ;;  %v3809_v37 = vld [vmem:[%s6957_s3 + $0x308] sm:$0xf]  ;;  %v3555_v44 = vld [vmem:[%s6957_s3 + $0x128] sm:$0xf0]  ;;  %v4034_v9 = vld [vmem:[%s6957_s3 + $0x114] sm:$0xf] }
  0x34   :  { %7261 = vst [vmem:[#allocation52_spill] sm:$0xff] %v4854_v28  ;;  %v4101_v40 = vld [vmem:[%s6957_s3 + $0x324] sm:$0xf0]  ;;  %v4882_v55 = vor.u32 %v4033_v43, %v3555_v44  ;;  %v4081_v57 = vld [vmem:[%s6957_s3 + $0x28c] sm:$0xf] }
  0x35   :  { %1179 = vmatpush.bf16.msrb.mxu3 %v4779_v33  ;;  %v4880_v48 = vor.u32 %v4101_v40, %v3809_v37  ;;  %v3747_v62 = vld [vmem:[%s6957_s3 + $0x2a8] sm:$0xf0]  ;;  %v4093_v21 = vld [vmem:[%s6957_s3 + $0x2e4] sm:$0xf0] }
  0x36   :  { %7264 = vst [vmem:[#allocation55_spill] sm:$0xff] %v4882_v55  ;;  %v4073_v43 = vld [vmem:[%s6957_s3 + $0x24c] sm:$0xf] }
  0x37   :  { %3409 = vmatmul.msk.bf16.gmra.mxu2 %vm112_vm0, %v3994_v19  ;;  %7263 = vst [vmem:[#allocation54_spill] sm:$0xff] %v4880_v48  ;;  %v3715_v44 = vld [vmem:[%s6957_s3 + $0x268] sm:$0xf0] }
  0x38   :  { %3413 = vmatmul.msk.bf16.gmra.mxu3 %vm112_vm0, %v3994_v19  ;;  %v4125_v19 = vld [vmem:[%s6957_s3 + $0x3e4] sm:$0xf0] }
  0x39   :  { %v4768_v22 = vor.u32 %v4125_v19, %v3905_v16  ;;  %1180 = vmatpush.bf16.msrb.mxu3 %v4814_v60  ;;  %v4842_v16 = vor.u32 %v4109_v4, %v3841_v1  ;;  %v4844_v19 = vor.u32 %v4041_v12, %v3587_v13  ;;  %v4895_v1 = vor.u32 %v4081_v57, %v3747_v62  ;;  %v3521_v4 = vld [vmem:[%s6957_s3 + $0xc8] sm:$0xf] }
  0x3a   :  { %v4029_v12 = vld [vmem:[%s6957_s3 + $0xe4] sm:$0xf0]  ;;  %v4931_v57 = vor.u32 %v4073_v43, %v3715_v44  ;;  %v4934_v62 = vperm.slane %v4893_v63, 0  ;;  %v4017_v44 = vld [vmem:[%s6957_s3 + $0x8c] sm:$0xf] }
  0x3b   :  { %7251 = vst [vmem:[#allocation42_spill] sm:$0xff] %v4768_v22  ;;  %1151 = vmatpush.bf16.msra.mxu1 %v4768_v22  ;;  %1166 = vmatpush.bf16.msrb.mxu2 %v4844_v19  ;;  %v3777_v13 = vld [vmem:[%s6957_s3 + $0x2c8] sm:$0xf]  ;;  %v4909_v20 = vor.u32 %v4029_v12, %v3521_v4  ;;  %v4937_v4 = vperm.slane %v4893_v63, 1 }
  0x3c   :  { %7259 = vst [vmem:[#allocation50_spill] sm:$0xff] %v4842_v16  ;;  %v4921_v37 = vor.u32 %v4093_v21, %v3777_v13  ;;  %v3489_v12 = vld [vmem:[%s6957_s3 + $0x88] sm:$0xf] }
  0x3d   :  { %7260 = vst [vmem:[#allocation51_spill] sm:$0xff] %v4844_v19  ;;  %1181 = vmatpush.bf16.msrb.mxu3 %v4854_v28  ;;  %v4021_v13 = vld [vmem:[%s6957_s3 + $0xa4] sm:$0xf0] }
  0x3e   :  { %7265 = vst [vmem:[#allocation56_spill] sm:$0xff] %v4895_v1  ;;  %v4085_v43 = vld [vmem:[%s6957_s3 + $0x2a4] sm:$0xf0] }
  0x3f   :  { %1152 = vmatpush.bf16.msra.mxu1 %v4804_v50  ;;  %1167 = vmatpush.bf16.msrb.mxu2 %v4882_v55  ;;  %7266 = vst [vmem:[#allocation57_spill] sm:$0xff] %v4909_v20 }
  0x40   :  { %7267 = vst [vmem:[#allocation58_spill] sm:$0xff] %v4921_v37 }
  0x41   :  { %1182 = vmatpush.bf16.msrb.mxu3 %v4895_v1  ;;  %7269 = vst [vmem:[#allocation60_spill] sm:$0xff] %v4931_v57 }
  0x42   :  { %7270 = vst [vmem:[#allocation61_spill] sm:$0xff] %v4934_v62 }
  0x43   :  { %1153 = vmatpush.bf16.msra.mxu1 %v4842_v16  ;;  %7271 = vst [vmem:[#allocation62_spill] sm:$0xff] %v4937_v4 }
  0x45   :  { %1183 = vmatpush.bf16.msrb.mxu3 %v4931_v57 }
  0x47   :  { %3410 = vmatmul.msk.bf16.gmra.mxu2 %vm112_vm0, %v4397_v5  ;;  %1154 = vmatpush.bf16.msra.mxu1 %v4880_v48 }
  0x48   :  { %3414 = vmatmul.msk.bf16.gmra.mxu3 %vm112_vm0, %v4397_v5  ;;  %v4868_v5 = vor.u32 %v4037_v36, %v3553_v29  ;;  %v4025_v29 = vld [vmem:[%s6957_s3 + $0xcc] sm:$0xf] }
  0x49   :  { %v3523_v36 = vld [vmem:[%s6957_s3 + $0xe8] sm:$0xf0] }
  0x4a   :  { %7262 = vst [vmem:[#allocation53_spill] sm:$0xff] %v4868_v5  ;;  %1141 = vmatpush.bf16.msra.mxu0 %v4868_v5  ;;  %v4923_v40 = vor.u32 %v4025_v29, %v3523_v36  ;;  %v4948_v29 = vor.u32 %v4021_v13, %v3489_v12  ;;  %v3745_v36 = vld [vmem:[%s6957_s3 + $0x288] sm:$0xf]  ;;  %v3491_v13 = vld [vmem:[%s6957_s3 + $0xa8] sm:$0xf0] }
  0x4b   :  { %1155 = vmatpush.bf16.msra.mxu1 %v4921_v37  ;;  %v4963_v12 = vor.u32 %v4085_v43, %v3745_v36  ;;  %v3683_v5 = vld [vmem:[%s6957_s3 + $0x228] sm:$0xf0]  ;;  %v4122_v36 = vld [vmem:[%s6957_s3 + $0x3d4] sm:$0xf] }
  0x4c   :  { %7268 = vst [vmem:[#allocation59_spill] sm:$0xff] %v4923_v40  ;;  %1168 = vmatpush.bf16.msrb.mxu2 %v4923_v40  ;;  %v4065_v40 = vld [vmem:[%s6957_s3 + $0x20c] sm:$0xf]  ;;  %v3915_v43 = vld [vmem:[%s6957_s3 + $0x3f0] sm:$0xf0] }
  0x4d   :  { %7272 = vst [vmem:[#allocation63_spill] sm:$0xff] %v4948_v29  ;;  %v4988_v51 = vor.u32 %v4122_v36, %v3915_v43  ;;  %v4077_v36 = vld [vmem:[%s6957_s3 + $0x264] sm:$0xf0]  ;;  %v4009_v43 = vld [vmem:[%s6957_s3 + $0x4c] sm:$0xf] }
  0x4e   :  { %1142 = vmatpush.bf16.msra.mxu0 %v4909_v20  ;;  %7274 = vst [vmem:[#allocation65_spill] sm:$0xff] %v4963_v12 }
  0x4f   :  { %7278 = vst [vmem:[#allocation69_spill] sm:$0xff] %v4988_v51  ;;  %1156 = vmatpush.bf16.msra.mxu1 %v4963_v12 }
  0x52   :  { %1143 = vmatpush.bf16.msra.mxu0 %v4948_v29  ;;  %v7282_v29 = vmov 0.0|0.0  }
  0x58   :  { %1133 = vmatmul.bf16.vlgmr.msra.gmra.mxu3 %v7282_v29 }
  0x86   :  { %v163_v21 = vpop.f32.mrf.mxu1 }
  0x87   :  { %v164_v55 = vadd.f32 %v163_v21, %v4937_v4  ;;  %v4976_v21 = vor.u32 %v4017_v44, %v3491_v13  ;;  %v4978_v4 = vor.u32 %v4065_v40, %v3683_v5  ;;  %v3457_v44 = vld [vmem:[%s6957_s3 + $0x48] sm:$0xf]  ;;  %v6985_v13 = vmov 0.0|0.0  }
  0x88   :  { %v4013_v5 = vld [vmem:[%s6957_s3 + $0x64] sm:$0xf0]  ;;  %1107 = vmatmul.bf16.vlgmr.msrb.gmra.mxu1 %v6985_v13 }
  0x89   :  { %7276 = vst [vmem:[#allocation67_spill] sm:$0xff] %v4976_v21  ;;  %v3713_v40 = vld [vmem:[%s6957_s3 + $0x248] sm:$0xf]  ;;  %1169 = vmatpush.bf16.msrb.mxu2 %v4976_v21  ;;  %1184 = vmatpush.bf16.msrb.mxu3 %v4978_v4 }
  0x8a   :  { %v4959_v20 = vpop.f32.mrf.mxu2  ;;  %7277 = vst [vmem:[#allocation68_spill] sm:$0xff] %v4978_v4  ;;  %v5014_v13 = vor.u32 %v4077_v36, %v3713_v40  ;;  %v4005_v40 = vld [vmem:[%s6957_s3 + $0x24] sm:$0xf0] }
  0x8b   :  { %7273 = vst [vmem:[#allocation64_spill] sm:$0xff] %v4959_v20  ;;  %v4974_v19 = vpop.f32.mrf.mxu3  ;;  %v134_v20 = vpop.f32.mrf.mxu0 }
  0x8c   :  { %7275 = vst [vmem:[#allocation66_spill] sm:$0xff] %v4974_v19  ;;  %v135_v2 = vadd.f32 %v134_v20, %v4934_v62  ;;  %v5002_v20 = vor.u32 %v4013_v5, %v3457_v44  ;;  %v3459_v19 = vld [vmem:[%s6957_s3 + $0x68] sm:$0xf0]  ;;  %v427_v62 = vmul.f32 0.5, %v164_v55  ;;  %v4114_v44 = vld [vmem:[%s6957_s3 + $0x394] sm:$0xf]  ;;  %1157 = vmatpush.bf16.msra.mxu1 %v5014_v13  ;;  %1185 = vmatmul.bf16.vlgmr.msrb.gmra.mxu3 %v7282_v29 }
  0x8d   :  { %7280 = vst [vmem:[#allocation71_spill] sm:$0xff] %v5014_v13  ;;  %v5016_v21 = vor.u32 %v4009_v43, %v3459_v19  ;;  %v3883_v5 = vld [vmem:[%s6957_s3 + $0x3b0] sm:$0xf0]  ;;  %1229 = vmatpush.bf16.msra.mxu3 %v4988_v51  ;;  %v3425_v19 = vld [vmem:[%s6957_s3 + $0x8] sm:$0xf] }
  0x8e   :  { %7279 = vst [vmem:[#allocation70_spill] sm:$0xff] %v5002_v20  ;;  %v426_v42 = vmul.f32 0.5, %v135_v2  ;;  %1144 = vmatpush.bf16.msra.mxu0 %v5002_v20  ;;  %v5027_v55 = vor.u32 %v4114_v44, %v3883_v5  ;;  %v5037_v36 = vor.u32 %v4005_v40, %v3425_v19  ;;  %v3681_v2 = vld [vmem:[%s6957_s3 + $0x208] sm:$0xf]  ;;  %4153 = vtanh.f32 %v427_v62  ;;  %v4001_v51 = vld [vmem:[%s6957_s3 + $0xc] sm:$0xf] }
  0x8f   :  { %7281 = vst [vmem:[#allocation72_spill] sm:$0xff] %v5016_v21  ;;  %1170 = vmatpush.bf16.msrb.mxu2 %v5016_v21  ;;  %v4069_v43 = vld [vmem:[%s6957_s3 + $0x224] sm:$0xf0]  ;;  %v3427_v19 = vld [vmem:[%s6957_s3 + $0x28] sm:$0xf0] }
  0x90   :  { %7283 = vst [vmem:[#allocation73_spill] sm:$0xff] %v5027_v55  ;;  %v5047_v5 = vor.u32 %v4069_v43, %v3681_v2  ;;  %v5057_v21 = vor.u32 %v4001_v51, %v3427_v19  ;;  %4155 = vtanh.f32 %v426_v42  ;;  %v3913_v62 = vld [vmem:[%s6957_s3 + $0x3d0] sm:$0xf]  ;;  %v4106_v42 = vld [vmem:[%s6957_s3 + $0x354] sm:$0xf]  ;;  %v5078_v19 = vperm.slane %v4893_v63, 2 }
  0x91   :  { %7284 = vst [vmem:[#allocation74_spill] sm:$0xff] %v5037_v36  ;;  %1230 = vmatpush.bf16.msra.mxu3 %v5027_v55  ;;  %v4126_v2 = vld [vmem:[%s6957_s3 + $0x3ec] sm:$0xf0]  ;;  %v3851_v51 = vld [vmem:[%s6957_s3 + $0x370] sm:$0xf0]  ;;  %v5090_v55 = vperm.slane %v4893_v63, 3 }
  0x92   :  { %v5045_v44 = vpop.f32.mrf.mxu2  ;;  %7286 = vst [vmem:[#allocation76_spill] sm:$0xff] %v5047_v5  ;;  %1145 = vmatpush.bf16.msra.mxu0 %v5037_v36  ;;  %1158 = vmatpush.bf16.msra.mxu1 %v5047_v5  ;;  %v5069_v43 = vor.u32 %v4126_v2, %v3913_v62  ;;  %v3881_v62 = vld [vmem:[%s6957_s3 + $0x390] sm:$0xf] }
  0x93   :  { %7285 = vst [vmem:[#allocation75_spill] sm:$0xff] %v5045_v44  ;;  %v5055_v40 = vpop.f32.mrf.mxu3  ;;  %1171 = vmatpush.bf16.msrb.mxu2 %v5057_v21  ;;  %v5081_v44 = vor.u32 %v4106_v42, %v3851_v51  ;;  %v4118_v2 = vld [vmem:[%s6957_s3 + $0x3ac] sm:$0xf0]  ;;  %v3819_v42 = vld [vmem:[%s6957_s3 + $0x330] sm:$0xf0] }
  0x94   :  { %7287 = vst [vmem:[#allocation77_spill] sm:$0xff] %v5055_v40  ;;  %v4154_v40 = vpop.eup %4153  ;;  %v3849_v63 = vld [vmem:[%s6957_s3 + $0x350] sm:$0xf] }
  0x95   :  { %7288 = vst [vmem:[#allocation78_spill] sm:$0xff] %v5057_v21  ;;  %v5092_v21 = vor.u32 %v4118_v2, %v3881_v62  ;;  %1231 = vmatpush.bf16.msra.mxu3 %v5081_v44  ;;  %v4110_v62 = vld [vmem:[%s6957_s3 + $0x36c] sm:$0xf0]  ;;  %v433_v2 = vmul.f32 0.5, %v4154_v40 }
  0x96   :  { %7289 = vst [vmem:[#allocation79_spill] sm:$0xff] %v5069_v43  ;;  %1203 = vmatpush.bf16.msrb.mxu1 %v5069_v43  ;;  %v4098_v43 = vld [vmem:[%s6957_s3 + $0x314] sm:$0xf]  ;;  %v4156_v36 = vpop.eup %4155  ;;  %v5111_v26 = vor.u32 %v4110_v62, %v3849_v63  ;;  %v3817_v63 = vld [vmem:[%s6957_s3 + $0x310] sm:$0xf] }
  0x97   :  { %7290 = vst [vmem:[#allocation80_spill] sm:$0xff] %v5078_v19  ;;  %v5101_v51 = vor.u32 %v4098_v43, %v3819_v42  ;;  %v4090_v43 = vld [vmem:[%s6957_s3 + $0x2d4] sm:$0xf]  ;;  %v432_v40 = vmul.f32 0.5, %v4156_v36  ;;  %v4102_v62 = vld [vmem:[%s6957_s3 + $0x32c] sm:$0xf0] }
  0x98   :  { %7291 = vst [vmem:[#allocation81_spill] sm:$0xff] %v5081_v44  ;;  %v3787_v42 = vld [vmem:[%s6957_s3 + $0x2f0] sm:$0xf0]  ;;  %1159 = vmatmul.bf16.vlgmr.msra.gmra.mxu1 %v7282_v29 }
  0x99   :  { %7292 = vst [vmem:[#allocation82_spill] sm:$0xff] %v5090_v55  ;;  %1232 = vmatpush.bf16.msra.mxu3 %v5101_v51  ;;  %v4082_v36 = vld [vmem:[%s6957_s3 + $0x294] sm:$0xf] }
  0x9a   :  { %7293 = vst [vmem:[#allocation83_spill] sm:$0xff] %v5092_v21  ;;  %v192_v20 = vpop.f32.mrf.mxu2  ;;  %1204 = vmatpush.bf16.msrb.mxu1 %v5092_v21  ;;  %v436_v21 = vadd.f32 0.5, %v433_v2 }
  0x9b   :  { %7294 = vst [vmem:[#allocation84_spill] sm:$0xff] %v5101_v51  ;;  %v193_v5 = vadd.f32 %v192_v20, %v5078_v19  ;;  %v221_v13 = vpop.f32.mrf.mxu3  ;;  %v5122_v20 = vor.u32 %v4090_v43, %v3787_v42  ;;  %v4094_v42 = vld [vmem:[%s6957_s3 + $0x2ec] sm:$0xf0]  ;;  %v4119_v19 = vld [vmem:[%s6957_s3 + $0x3b4] sm:$0xf0] }
  0x9c   :  { %7295 = vst [vmem:[#allocation85_spill] sm:$0xff] %v5111_v26  ;;  %v222_v44 = vadd.f32 %v221_v13, %v5090_v55  ;;  %v5131_v13 = vor.u32 %v4102_v62, %v3817_v63  ;;  %v439_v2 = vmul.f32 0.0, %v436_v21  ;;  %v3753_v51 = vld [vmem:[%s6957_s3 + $0x290] sm:$0xf] }
  0x9d   :  { %v428_v6 = vmul.f32 0.5, %v193_v5  ;;  %7296 = vst [vmem:[#allocation86_spill] sm:$0xff] %v5122_v20  ;;  %v435_v5 = vadd.f32 0.5, %v432_v40  ;;  %1233 = vmatpush.bf16.msra.mxu3 %v5122_v20  ;;  %v4074_v40 = vld [vmem:[%s6957_s3 + $0x254] sm:$0xf] }
  0x9e   :  { %4157 = vtanh.f32 %v222_v44  ;;  %1205 = vmatpush.bf16.msrb.mxu1 %v5111_v26  ;;  %7297 = vst [vmem:[#allocation87_spill] sm:$0xff] %v5131_v13  ;;  %v3755_v44 = vld [vmem:[%s6957_s3 + $0x2b0] sm:$0xf0] }
  0x9f   :  { %4159 = vtanh.f32 %v428_v6  ;;  %v5141_v43 = vor.u32 %v4082_v36, %v3755_v44  ;;  %v3785_v6 = vld [vmem:[%s6957_s3 + $0x2d0] sm:$0xf]  ;;  %v3723_v36 = vld [vmem:[%s6957_s3 + $0x270] sm:$0xf0] }
  0xa0   :  { %v5150_v62 = vor.u32 %v4094_v42, %v3785_v6  ;;  %v5159_v21 = vor.u32 %v4074_v40, %v3723_v36  ;;  %v4086_v6 = vld [vmem:[%s6957_s3 + $0x2ac] sm:$0xf0]  ;;  %v3691_v40 = vld [vmem:[%s6957_s3 + $0x230] sm:$0xf0]  ;;  %v4123_v36 = vld [vmem:[%s6957_s3 + $0x3dc] sm:$0xf] }
  0xa1   :  { %7298 = vst [vmem:[#allocation88_spill] sm:$0xff] %v5141_v43  ;;  %1234 = vmatpush.bf16.msra.mxu3 %v5141_v43 }
  0xa2   :  { %1206 = vmatpush.bf16.msrb.mxu1 %v5131_v13  ;;  %7299 = vst [vmem:[#allocation89_spill] sm:$0xff] %v5150_v62  ;;  %v5170_v13 = vor.u32 %v4086_v6, %v3753_v51  ;;  %v3923_v51 = vld [vmem:[%s6957_s3 + $0x3f8] sm:$0xf0]  ;;  %v4078_v6 = vld [vmem:[%s6957_s3 + $0x26c] sm:$0xf0] }
  0xa3   :  { %7300 = vst [vmem:[#allocation90_spill] sm:$0xff] %v5159_v21 }
  0xa4   :  { %v4158_v63 = vpop.eup %4157  ;;  %7302 = vst [vmem:[#allocation92_spill] sm:$0xff] %v5170_v13 }
  0xa5   :  { %v4160_v44 = vpop.eup %4159  ;;  %v440_v20 = vmul.f32 %v4158_v63, %v435_v5  ;;  %v4066_v5 = vld [vmem:[%s6957_s3 + $0x214] sm:$0xf]  ;;  %1235 = vmatpush.bf16.msra.mxu3 %v5159_v21  ;;  %v4062_v21 = vld [vmem:[%s6957_s3 + $0x1ec] sm:$0xf0] }
  0xa6   :  { %1207 = vmatpush.bf16.msrb.mxu1 %v5150_v62  ;;  %v434_v63 = vmul.f32 0.5, %v4160_v44  ;;  %v3721_v44 = vld [vmem:[%s6957_s3 + $0x250] sm:$0xf] }
  0xa7   :  { %v5167_v42 = vadd.f32 %v440_v20, %v439_v2  ;;  %v5183_v20 = vor.u32 %v4066_v5, %v3691_v40  ;;  %v5188_v2 = vor.u32 %v4123_v36, %v3923_v51  ;;  %v5197_v43 = vor.u32 %v4078_v6, %v3721_v44  ;;  %v4115_v5 = vld [vmem:[%s6957_s3 + $0x39c] sm:$0xf]  ;;  %v3657_v51 = vld [vmem:[%s6957_s3 + $0x1d0] sm:$0xf]  ;;  %v4058_v44 = vld [vmem:[%s6957_s3 + $0x1d4] sm:$0xf] }
  0xa8   :  { %v3891_v40 = vld [vmem:[%s6957_s3 + $0x3b8] sm:$0xf0]  ;;  %v437_v36 = vadd.f32 0.5, %v434_v63  ;;  %v3659_v6 = vld [vmem:[%s6957_s3 + $0x1f0] sm:$0xf0] }
  0xa9   :  { %7301 = vst [vmem:[#allocation91_spill] sm:$0xff] %v5167_v42  ;;  %4161 = vtanh.f32 %v5167_v42  ;;  %1236 = vmatpush.bf16.msra.mxu3 %v5183_v20  ;;  %v5219_v63 = vor.u32 %v4115_v5, %v3891_v40  ;;  %v4070_v62 = vld [vmem:[%s6957_s3 + $0x22c] sm:$0xf0]  ;;  %v4127_v5 = vld [vmem:[%s6957_s3 + $0x3f4] sm:$0xf0]  ;;  %v5237_v40 = vor.u32 %v4062_v21, %v3657_v51  ;;  %v5239_v55 = vor.u32 %v4058_v44, %v3659_v6 }
  0xaa   :  { %7303 = vst [vmem:[#allocation93_spill] sm:$0xff] %v5183_v20  ;;  %1208 = vmatpush.bf16.msrb.mxu1 %v5170_v13  ;;  %v3689_v13 = vld [vmem:[%s6957_s3 + $0x210] sm:$0xf]  ;;  %v4050_v51 = vld [vmem:[%s6957_s3 + $0x194] sm:$0xf] }
  0xab   :  { %7304 = vst [vmem:[#allocation94_spill] sm:$0xff] %v5188_v2  ;;  %v5228_v20 = vor.u32 %v4070_v62, %v3689_v13  ;;  %v3625_v13 = vld [vmem:[%s6957_s3 + $0x190] sm:$0xf]  ;;  %v3859_v62 = vld [vmem:[%s6957_s3 + $0x378] sm:$0xf0] }
  0xac   :  { %7305 = vst [vmem:[#allocation95_spill] sm:$0xff] %v5197_v43  ;;  %1237 = vmatmul.bf16.vlgmr.msra.gmra.mxu3 %v7282_v29  ;;  %v4054_v21 = vld [vmem:[%s6957_s3 + $0x1ac] sm:$0xf0]  ;;  %v3627_v44 = vld [vmem:[%s6957_s3 + $0x1b0] sm:$0xf0] }
  0xad   :  { %1281 = vmatpush.bf16.msrb.mxu3 %v5188_v2  ;;  %7306 = vst [vmem:[#allocation96_spill] sm:$0xff] %v5219_v63  ;;  %v3921_v2 = vld [vmem:[%s6957_s3 + $0x3d8] sm:$0xf] }
  0xae   :  { %1209 = vmatpush.bf16.msrb.mxu1 %v5197_v43  ;;  %7307 = vst [vmem:[#allocation97_spill] sm:$0xff] %v5228_v20  ;;  %v5262_v6 = vor.u32 %v4127_v5, %v3921_v2  ;;  %v5277_v2 = vor.u32 %v4054_v21, %v3625_v13  ;;  %v5279_v5 = vor.u32 %v4050_v51, %v3627_v44  ;;  %v4042_v13 = vld [vmem:[%s6957_s3 + $0x154] sm:$0xf] }
  0xaf   :  { %v4162_v26 = vpop.eup %4161  ;;  %7308 = vst [vmem:[#allocation98_spill] sm:$0xff] %v5237_v40  ;;  %v3595_v21 = vld [vmem:[%s6957_s3 + $0x170] sm:$0xf0] }
  0xb0   :  { %v443_v42 = vmul.f32 %v4162_v26, %v437_v36  ;;  %7309 = vst [vmem:[#allocation99_spill] sm:$0xff] %v5239_v55  ;;  %v4107_v26 = vld [vmem:[%s6957_s3 + $0x35c] sm:$0xf] }
  0xb1   :  { %1282 = vmatpush.bf16.msrb.mxu3 %v5219_v63  ;;  %7310 = vst [vmem:[#allocation100_spill] sm:$0xff] %v5262_v6  ;;  %v5264_v43 = vor.u32 %v4107_v26, %v3859_v62  ;;  %v3593_v26 = vld [vmem:[%s6957_s3 + $0x150] sm:$0xf]  ;;  %v4099_v62 = vld [vmem:[%s6957_s3 + $0x31c] sm:$0xf] }
  0xb2   :  { %v5250_v36 = vpack.c.bf16 %v443_v42, %v443_v42  ;;  %1210 = vmatpush.bf16.msrb.mxu1 %v5228_v20  ;;  %v3889_v42 = vld [vmem:[%s6957_s3 + $0x398] sm:$0xf]  ;;  %7312 = vst [vmem:[#allocation102_spill] sm:$0xff] %v5277_v2  ;;  %v3827_v63 = vld [vmem:[%s6957_s3 + $0x338] sm:$0xf0] }
  0xb3   :  { %7311 = vst [vmem:[#allocation101_spill] sm:$0xff] %v5264_v43  ;;  %v4046_v20 = vld [vmem:[%s6957_s3 + $0x16c] sm:$0xf0]  ;;  %v5301_v51 = vor.u32 %v4119_v19, %v3889_v42  ;;  %v5303_v44 = vor.u32 %v4099_v62, %v3827_v63  ;;  %v3795_v19 = vld [vmem:[%s6957_s3 + $0x2f8] sm:$0xf0]  ;;  %v5322_v42 = vor.u32 %v4042_v13, %v3595_v21 }
  0xb4   :  { %1094 = vmatmul.bf16.vlgmr.msrb.gmra.mxu0 %v5250_v36  ;;  %1120 = vmatmul.bf16.vlgmr.msra.gmra.mxu2 %v5250_v36  ;;  %7313 = vst [vmem:[#allocation103_spill] sm:$0xff] %v5279_v5  ;;  %v5320_v63 = vor.u32 %v4046_v20, %v3593_v26  ;;  %v3561_v62 = vld [vmem:[%s6957_s3 + $0x110] sm:$0xf]  ;;  %v3825_v13 = vld [vmem:[%s6957_s3 + $0x318] sm:$0xf] }
  0xb5   :  { %1190 = vmatpush.bf16.msrb.mxu0 %v5237_v40  ;;  %1216 = vmatpush.bf16.msra.mxu2 %v5239_v55  ;;  %7314 = vst [vmem:[#allocation104_spill] sm:$0xff] %v5301_v51  ;;  %v3857_v55 = vld [vmem:[%s6957_s3 + $0x358] sm:$0xf] }
  0xb6   :  { %1255 = vmatpush.bf16.msra.mxu1 %v5262_v6  ;;  %1283 = vmatpush.bf16.msrb.mxu3 %v5264_v43  ;;  %7315 = vst [vmem:[#allocation105_spill] sm:$0xff] %v5303_v44  ;;  %v4111_v40 = vld [vmem:[%s6957_s3 + $0x374] sm:$0xf0]  ;;  %v4091_v6 = vld [vmem:[%s6957_s3 + $0x2dc] sm:$0xf] }
  0xb7   :  { %1211 = vmatmul.bf16.vlgmr.msrb.gmra.mxu1 %v7282_v29  ;;  %7316 = vst [vmem:[#allocation106_spill] sm:$0xff] %v5320_v63  ;;  %v4038_v43 = vld [vmem:[%s6957_s3 + $0x12c] sm:$0xf0]  ;;  %v5338_v20 = vor.u32 %v4111_v40, %v3857_v55  ;;  %v5340_v26 = vor.u32 %v4091_v6, %v3795_v19  ;;  %v4103_v21 = vld [vmem:[%s6957_s3 + $0x334] sm:$0xf0] }
  0xb8   :  { %7317 = vst [vmem:[#allocation107_spill] sm:$0xff] %v5322_v42  ;;  %v5356_v55 = vor.u32 %v4038_v43, %v3561_v62  ;;  %v3529_v6 = vld [vmem:[%s6957_s3 + $0xd0] sm:$0xf]  ;;  %v4095_v62 = vld [vmem:[%s6957_s3 + $0x2f4] sm:$0xf0] }
  0xb9   :  { %1191 = vmatpush.bf16.msrb.mxu0 %v5277_v2  ;;  %1217 = vmatpush.bf16.msra.mxu2 %v5279_v5  ;;  %v3563_v5 = vld [vmem:[%s6957_s3 + $0x130] sm:$0xf0]  ;;  %7318 = vst [vmem:[#allocation108_spill] sm:$0xff] %v5338_v20  ;;  %v4083_v2 = vld [vmem:[%s6957_s3 + $0x29c] sm:$0xf] }
  0xba   :  { %1256 = vmatpush.bf16.msra.mxu1 %v5301_v51  ;;  %1284 = vmatpush.bf16.msrb.mxu3 %v5303_v44  ;;  %7319 = vst [vmem:[#allocation109_spill] sm:$0xff] %v5340_v26  ;;  %v3763_v44 = vld [vmem:[%s6957_s3 + $0x2b8] sm:$0xf0]  ;;  %v5358_v40 = vor.u32 %v4034_v9, %v3563_v5  ;;  %v4030_v19 = vld [vmem:[%s6957_s3 + $0xec] sm:$0xf0]  ;;  %v5374_v9 = vor.u32 %v4103_v21, %v3825_v13 }
  0xbb   :  { %7320 = vst [vmem:[#allocation110_spill] sm:$0xff] %v5356_v55  ;;  %v4026_v51 = vld [vmem:[%s6957_s3 + $0xd4] sm:$0xf]  ;;  %v5376_v43 = vor.u32 %v4083_v2, %v3763_v44  ;;  %v3793_v5 = vld [vmem:[%s6957_s3 + $0x2d8] sm:$0xf]  ;;  %v5392_v2 = vor.u32 %v4030_v19, %v3529_v6 }
  0xbc   :  { %7321 = vst [vmem:[#allocation111_spill] sm:$0xff] %v5358_v40  ;;  %v3497_v13 = vld [vmem:[%s6957_s3 + $0x90] sm:$0xf]  ;;  %v3761_v6 = vld [vmem:[%s6957_s3 + $0x298] sm:$0xf] }
  0xbd   :  { %1192 = vmatpush.bf16.msrb.mxu0 %v5320_v63  ;;  %1218 = vmatpush.bf16.msra.mxu2 %v5322_v42  ;;  %v3531_v42 = vld [vmem:[%s6957_s3 + $0xf0] sm:$0xf0]  ;;  %7322 = vst [vmem:[#allocation112_spill] sm:$0xff] %v5374_v9  ;;  %v4075_v63 = vld [vmem:[%s6957_s3 + $0x25c] sm:$0xf] }
  0xbe   :  { %1257 = vmatpush.bf16.msra.mxu1 %v5338_v20  ;;  %1285 = vmatpush.bf16.msrb.mxu3 %v5340_v26  ;;  %7323 = vst [vmem:[#allocation113_spill] sm:$0xff] %v5376_v43  ;;  %v3731_v26 = vld [vmem:[%s6957_s3 + $0x278] sm:$0xf0]  ;;  %v5394_v44 = vor.u32 %v4026_v51, %v3531_v42  ;;  %v4022_v21 = vld [vmem:[%s6957_s3 + $0xac] sm:$0xf0]  ;;  %v5410_v51 = vor.u32 %v4095_v62, %v3793_v5 }
  0xbf   :  { %7324 = vst [vmem:[#allocation114_spill] sm:$0xff] %v5392_v2  ;;  %v4018_v20 = vld [vmem:[%s6957_s3 + $0x94] sm:$0xf]  ;;  %v5412_v42 = vor.u32 %v4075_v63, %v3731_v26  ;;  %v4087_v19 = vld [vmem:[%s6957_s3 + $0x2b4] sm:$0xf0]  ;;  %v5430_v26 = vor.u32 %v4022_v21, %v3497_v13 }
  0xc0   :  { %7325 = vst [vmem:[#allocation115_spill] sm:$0xff] %v5394_v44  ;;  %v3699_v63 = vld [vmem:[%s6957_s3 + $0x238] sm:$0xf0]  ;;  %v3465_v62 = vld [vmem:[%s6957_s3 + $0x50] sm:$0xf] }
  0xc1   :  { %1193 = vmatpush.bf16.msrb.mxu0 %v5356_v55  ;;  %1219 = vmatpush.bf16.msra.mxu2 %v5358_v40  ;;  %v3499_v40 = vld [vmem:[%s6957_s3 + $0xb0] sm:$0xf0]  ;;  %7326 = vst [vmem:[#allocation116_spill] sm:$0xff] %v5410_v51  ;;  %v3729_v13 = vld [vmem:[%s6957_s3 + $0x258] sm:$0xf] }
  0xc2   :  { %1258 = vmatpush.bf16.msra.mxu1 %v5374_v9  ;;  %1286 = vmatpush.bf16.msrb.mxu3 %v5376_v43  ;;  %7327 = vst [vmem:[#allocation117_spill] sm:$0xff] %v5412_v42  ;;  %v4067_v43 = vld [vmem:[%s6957_s3 + $0x21c] sm:$0xf]  ;;  %v5432_v5 = vor.u32 %v4018_v20, %v3499_v40  ;;  %v4014_v9 = vld [vmem:[%s6957_s3 + $0x6c] sm:$0xf0]  ;;  %v5448_v20 = vor.u32 %v4087_v19, %v3761_v6 }
  0xc3   :  { %7328 = vst [vmem:[#allocation118_spill] sm:$0xff] %v5430_v26  ;;  %v4010_v55 = vld [vmem:[%s6957_s3 + $0x54] sm:$0xf]  ;;  %v5450_v40 = vor.u32 %v4067_v43, %v3699_v63  ;;  %v4079_v21 = vld [vmem:[%s6957_s3 + $0x274] sm:$0xf0] }
  0xc4   :  { %1146 = vmatmul.bf16.vlgmr.msra.gmra.mxu0 %v5250_v36  ;;  %1172 = vmatmul.bf16.vlgmr.msrb.gmra.mxu2 %v5250_v36  ;;  %7329 = vst [vmem:[#allocation119_spill] sm:$0xff] %v5432_v5  ;;  %v3433_v43 = vld [vmem:[%s6957_s3 + $0x10] sm:$0xf]  ;;  %v4002_v19 = vld [vmem:[%s6957_s3 + $0x14] sm:$0xf] }
  0xc5   :  { %1194 = vmatpush.bf16.msrb.mxu0 %v5392_v2  ;;  %1220 = vmatpush.bf16.msra.mxu2 %v5394_v44  ;;  %v3467_v44 = vld [vmem:[%s6957_s3 + $0x70] sm:$0xf0]  ;;  %7330 = vst [vmem:[#allocation120_spill] sm:$0xff] %v5448_v20  ;;  %v5460_v2 = vor.u32 %v4014_v9, %v3465_v62  ;;  %v4006_v6 = vld [vmem:[%s6957_s3 + $0x2c] sm:$0xf0]  ;;  %v5481_v9 = vor.u32 %v4079_v21, %v3729_v13 }
  0xc6   :  { %1259 = vmatpush.bf16.msra.mxu1 %v5410_v51  ;;  %1287 = vmatpush.bf16.msrb.mxu3 %v5412_v42  ;;  %7331 = vst [vmem:[#allocation121_spill] sm:$0xff] %v5450_v40  ;;  %v5462_v51 = vor.u32 %v4010_v55, %v3467_v44  ;;  %v3435_v63 = vld [vmem:[%s6957_s3 + $0x30] sm:$0xf0]  ;;  %v3665_v55 = vld [vmem:[%s6957_s3 + $0x1d8] sm:$0xf]  ;;  %v5501_v21 = vor.u32 %v4006_v6, %v3433_v43 }
  0xc7   :  { %7333 = vst [vmem:[#allocation123_spill] sm:$0xff] %v5481_v9  ;;  %v4063_v44 = vld [vmem:[%s6957_s3 + $0x1f4] sm:$0xf0]  ;;  %v4059_v62 = vld [vmem:[%s6957_s3 + $0x1dc] sm:$0xf] }
  0xc8   :  { %7332 = vst [vmem:[#allocation122_spill] sm:$0xff] %v5462_v51  ;;  %v3667_v42 = vld [vmem:[%s6957_s3 + $0x1f8] sm:$0xf0]  ;;  %v4071_v13 = vld [vmem:[%s6957_s3 + $0x234] sm:$0xf0] }
  0xc9   :  { %1195 = vmatpush.bf16.msrb.mxu0 %v5430_v26  ;;  %1221 = vmatpush.bf16.msra.mxu2 %v5432_v5  ;;  %v5505_v5 = vor.u32 %v4063_v44, %v3665_v55  ;;  %v5507_v26 = vor.u32 %v4059_v62, %v3667_v42  ;;  %v4051_v43 = vld [vmem:[%s6957_s3 + $0x19c] sm:$0xf]  ;;  %v3601_v55 = vld [vmem:[%s6957_s3 + $0x158] sm:$0xf] }
  0xca   :  { %1260 = vmatpush.bf16.msra.mxu1 %v5448_v20  ;;  %1288 = vmatpush.bf16.msrb.mxu3 %v5450_v40  ;;  %v3697_v40 = vld [vmem:[%s6957_s3 + $0x218] sm:$0xf]  ;;  %v5503_v20 = vor.u32 %v4002_v19, %v3435_v63  ;;  %v3635_v42 = vld [vmem:[%s6957_s3 + $0x1b8] sm:$0xf0] }
  0xcb   :  { %v5523_v6 = vor.u32 %v4071_v13, %v3697_v40  ;;  %v5532_v63 = vor.u32 %v4051_v43, %v3635_v42  ;;  %v5537_v40 = vpop.f32.mrf.mxu3  ;;  %v4047_v44 = vld [vmem:[%s6957_s3 + $0x174] sm:$0xf0]  ;;  %v4043_v62 = vld [vmem:[%s6957_s3 + $0x15c] sm:$0xf] }
  0xcc   :  { %v3569_v43 = vld [vmem:[%s6957_s3 + $0x118] sm:$0xf] }
  0xcd   :  { %1196 = vmatpush.bf16.msrb.mxu0 %v5460_v2  ;;  %1222 = vmatpush.bf16.msra.mxu2 %v5462_v51  ;;  %v4055_v51 = vld [vmem:[%s6957_s3 + $0x1b4] sm:$0xf0]  ;;  %7334 = vst [vmem:[#allocation124_spill] sm:$0xff] %v5523_v6 }
  0xce   :  { %1384 = vmatpush.bf16.msra.mxu3 %v4428_v18  ;;  %v3633_v18 = vld [vmem:[%s6957_s3 + $0x198] sm:$0xf]  ;;  %1261 = vmatpush.bf16.msra.mxu1 %v5481_v9  ;;  %v7381_v9 = vld [vmem:[#allocation61_spill] sm:$0xff] }
  0xcf   :  { %1289 = vmatmul.bf16.vlgmr.msrb.gmra.mxu3 %v7282_v29  ;;  %v5530_v19 = vor.u32 %v4055_v51, %v3633_v18  ;;  %v3603_v18 = vld [vmem:[%s6957_s3 + $0x178] sm:$0xf0]  ;;  %v5555_v51 = vor.u32 %v4047_v44, %v3601_v55  ;;  %v4039_v42 = vld [vmem:[%s6957_s3 + $0x134] sm:$0xf0] }
  0xd0   :  { %v5557_v13 = vor.u32 %v4043_v62, %v3603_v18  ;;  %v5576_v55 = vor.u32 %v4039_v42, %v3569_v43  ;;  %v3537_v62 = vld [vmem:[%s6957_s3 + $0xd8] sm:$0xf]  ;;  %v4027_v18 = vld [vmem:[%s6957_s3 + $0xdc] sm:$0xf] }
  0xd1   :  { %1197 = vmatpush.bf16.msrb.mxu0 %v5501_v21  ;;  %1223 = vmatpush.bf16.msra.mxu2 %v5503_v20  ;;  %v3505_v42 = vld [vmem:[%s6957_s3 + $0x98] sm:$0xf] }
  0xd2   :  { %1385 = vmatpush.bf16.msra.mxu3 %v4476_v32  ;;  %1262 = vmatpush.bf16.msra.mxu1 %v5523_v6  ;;  %v3571_v32 = vld [vmem:[%s6957_s3 + $0x138] sm:$0xf0] }
  0xd3   :  { %v5592_v43 = vpop.f32.mrf.mxu3 }
  0xd4   :  { %1198 = vmatmul.bf16.vlgmr.msrb.gmra.mxu0 %v5250_v36  ;;  %1224 = vmatmul.bf16.vlgmr.msra.gmra.mxu2 %v5250_v36  ;;  %7335 = vst [vmem:[#allocation125_spill] sm:$0xff] %v5592_v43  ;;  %v4023_v43 = vld [vmem:[%s6957_s3 + $0xb4] sm:$0xf0] }
  0xd5   :  { %1242 = vmatpush.bf16.msra.mxu0 %v5505_v5  ;;  %1268 = vmatpush.bf16.msrb.mxu2 %v5507_v26 }
  0xd6   :  { %1386 = vmatpush.bf16.msra.mxu3 %v4520_v47  ;;  %1358 = vmatpush.bf16.msrb.mxu1 %v4448_v24  ;;  %v4035_v47 = vld [vmem:[%s6957_s3 + $0x11c] sm:$0xf] }
  0xd7   :  { %1263 = vmatmul.bf16.vlgmr.msra.gmra.mxu1 %v7282_v29  ;;  %v5578_v44 = vor.u32 %v4035_v47, %v3571_v32  ;;  %v4031_v29 = vld [vmem:[%s6957_s3 + $0xf4] sm:$0xf0] }
  0xd8   :  { %v5598_v32 = vor.u32 %v4031_v29, %v3537_v62  ;;  %v5620_v62 = vor.u32 %v4023_v43, %v3505_v42  ;;  %v3441_v42 = vld [vmem:[%s6957_s3 + $0x18] sm:$0xf] }
  0xd9   :  { %1243 = vmatpush.bf16.msra.mxu0 %v5530_v19  ;;  %1269 = vmatpush.bf16.msrb.mxu2 %v5532_v63 }
  0xda   :  { %1387 = vmatpush.bf16.msra.mxu3 %v4556_v59  ;;  %1359 = vmatpush.bf16.msrb.mxu1 %v4484_v35  ;;  %v3539_v59 = vld [vmem:[%s6957_s3 + $0xf8] sm:$0xf0]  ;;  %7336 = vst [vmem:[#allocation126_spill] sm:$0xff] %v5620_v62 }
  0xdb   :  { %v5600_v47 = vor.u32 %v4027_v18, %v3539_v59  ;;  %v5615_v59 = vpop.f32.mrf.mxu1  ;;  %v3473_v18 = vld [vmem:[%s6957_s3 + $0x58] sm:$0xf]  ;;  %v3475_v35 = vld [vmem:[%s6957_s3 + $0x78] sm:$0xf0] }
  0xdd   :  { %1244 = vmatpush.bf16.msra.mxu0 %v5555_v51  ;;  %1270 = vmatpush.bf16.msrb.mxu2 %v5557_v13 }
  0xde   :  { %1388 = vmatpush.bf16.msra.mxu3 %v4595_v10  ;;  %1360 = vmatpush.bf16.msrb.mxu1 %v4526_v49  ;;  %v4019_v10 = vld [vmem:[%s6957_s3 + $0x9c] sm:$0xf] }
  0xdf   :  { %v3507_v49 = vld [vmem:[%s6957_s3 + $0xb8] sm:$0xf0] }
  0xe0   :  { %v5622_v29 = vor.u32 %v4019_v10, %v3507_v49  ;;  %v5637_v49 = vpop.f32.mrf.mxu3 }
  0xe1   :  { %1245 = vmatpush.bf16.msra.mxu0 %v5576_v55  ;;  %1271 = vmatpush.bf16.msrb.mxu2 %v5578_v44  ;;  %7338 = vst [vmem:[#allocation128_spill] sm:$0xff] %v5637_v49  ;;  %v4003_v49 = vld [vmem:[%s6957_s3 + $0x1c] sm:$0xf] }
  0xe2   :  { %1389 = vmatpush.bf16.msra.mxu3 %v4617_v15  ;;  %1361 = vmatpush.bf16.msrb.mxu1 %v4562_v61  ;;  %7337 = vst [vmem:[#allocation127_spill] sm:$0xff] %v5622_v29  ;;  %v4015_v15 = vld [vmem:[%s6957_s3 + $0x74] sm:$0xf0]  ;;  %v4011_v61 = vld [vmem:[%s6957_s3 + $0x5c] sm:$0xf] }
  0xe3   :  { %v5642_v10 = vor.u32 %v4015_v15, %v3473_v18  ;;  %v5644_v43 = vor.u32 %v4011_v61, %v3475_v35  ;;  %v5660_v35 = vpop.f32.mrf.mxu1 }
  0xe4   :  { %7341 = vst [vmem:[#allocation131_spill] sm:$0xff] %v5660_v35  ;;  %v7354_v35 = vld [vmem:[#allocation40_spill] sm:$0xff] }
  0xe5   :  { %1246 = vmatpush.bf16.msra.mxu0 %v5598_v32  ;;  %1272 = vmatpush.bf16.msrb.mxu2 %v5600_v47  ;;  %7339 = vst [vmem:[#allocation129_spill] sm:$0xff] %v5642_v10 }
  0xe6   :  { %1390 = vmatpush.bf16.msra.mxu3 %v4628_v17  ;;  %1362 = vmatpush.bf16.msrb.mxu1 %v4598_v11  ;;  %7340 = vst [vmem:[#allocation130_spill] sm:$0xff] %v5644_v43  ;;  %v4007_v17 = vld [vmem:[%s6957_s3 + $0x34] sm:$0xf0]  ;;  %v3443_v11 = vld [vmem:[%s6957_s3 + $0x38] sm:$0xf0] }
  0xe7   :  { %v5665_v61 = vor.u32 %v4007_v17, %v3441_v42  ;;  %v5667_v15 = vor.u32 %v4003_v49, %v3443_v11  ;;  %v5687_v17 = vpop.f32.mrf.mxu2 }
  0xe8   :  { %v5673_v18 = vpop.f32.mrf.mxu3 }
  0xe9   :  { %1247 = vmatpush.bf16.msra.mxu0 %v5620_v62  ;;  %1273 = vmatpush.bf16.msrb.mxu2 %v5622_v29  ;;  %7342 = vst [vmem:[#allocation132_spill] sm:$0xff] %v5665_v61 }
  0xea   :  { %1391 = vmatpush.bf16.msra.mxu3 %v4674_v38  ;;  %1363 = vmatpush.bf16.msrb.mxu1 %v4658_v30  ;;  %7343 = vst [vmem:[#allocation133_spill] sm:$0xff] %v5667_v15 }
  0xeb   :  { %7344 = vst [vmem:[#allocation134_spill] sm:$0xff] %v5673_v18  ;;  %v5681_v11 = vpop.f32.mrf.mxu1 }
  0xec   :  { %7345 = vst [vmem:[#allocation135_spill] sm:$0xff] %v5681_v11 }
  0xed   :  { %1248 = vmatpush.bf16.msra.mxu0 %v5642_v10  ;;  %1274 = vmatpush.bf16.msrb.mxu2 %v5644_v43 }
  0xee   :  { %1436 = vmatpush.bf16.msrb.mxu3 %v4681_v41  ;;  %1364 = vmatpush.bf16.msrb.mxu1 %v4705_v52  ;;  %v7368_v41 = vld [vmem:[#allocation57_spill] sm:$0xff]  ;;  %v7374_v52 = vld [vmem:[#allocation72_spill] sm:$0xff] }
  0xf0   :  { %v5691_v49 = vpop.f32.mrf.mxu3 }
  0xf1   :  { %1249 = vmatpush.bf16.msra.mxu0 %v5665_v61  ;;  %1275 = vmatpush.bf16.msrb.mxu2 %v5667_v15  ;;  %7346 = vst [vmem:[#allocation136_spill] sm:$0xff] %v5691_v49  ;;  %v136_v49 = vpop.f32.mrf.mxu0 }
  0xf2   :  { %1437 = vmatpush.bf16.msrb.mxu3 %v4716_v58  ;;  %1365 = vmatpush.bf16.msrb.mxu1 %v4741_v8  ;;  %v7373_v8 = vld [vmem:[#allocation70_spill] sm:$0xff] }
  0xf3   :  { %v5701_v42 = vpop.f32.mrf.mxu1 }
  0xf4   :  { %1250 = vmatmul.bf16.vlgmr.msra.gmra.mxu0 %v5250_v36  ;;  %1276 = vmatmul.bf16.vlgmr.msrb.gmra.mxu2 %v5250_v36  ;;  %v5699_v36 = vpop.f32.mrf.mxu2  ;;  %7348 = vst [vmem:[#allocation138_spill] sm:$0xff] %v5701_v42 }
  0xf5   :  { %1345 = vmatpush.bf16.msrb.mxu0 %v4446_v23  ;;  %1371 = vmatpush.bf16.msra.mxu2 %v4460_v27  ;;  %7347 = vst [vmem:[#allocation137_spill] sm:$0xff] %v5699_v36 }
  0xf6   :  { %1438 = vmatpush.bf16.msrb.mxu3 %v4779_v33  ;;  %1410 = vmatpush.bf16.msra.mxu1 %v4768_v22  ;;  %v7365_v33 = vld [vmem:[#allocation53_spill] sm:$0xff]  ;;  %v7371_v22 = vld [vmem:[#allocation63_spill] sm:$0xff] }
  0xf8   :  { %v5707_v18 = vpop.f32.mrf.mxu3 }
  0xf9   :  { %1346 = vmatpush.bf16.msrb.mxu0 %v4482_v34  ;;  %1372 = vmatpush.bf16.msra.mxu2 %v4496_v39  ;;  %7349 = vst [vmem:[#allocation139_spill] sm:$0xff] %v5707_v18  ;;  %v5720_v36 = vpop.f32.mrf.mxu0 }
  0xfa   :  { %1439 = vmatpush.bf16.msrb.mxu3 %v4814_v60  ;;  %1411 = vmatpush.bf16.msra.mxu1 %v4804_v50  ;;  %7352 = vst [vmem:[#allocation142_spill] sm:$0xff] %v5720_v36  ;;  %v7361_v36 = vld [vmem:[#allocation76_spill] sm:$0xff]  ;;  %v7363_v60 = vld [vmem:[#allocation49_spill] sm:$0xff] }
  0xfb   :  { %v5715_v11 = vpop.f32.mrf.mxu1 }
  0xfc   :  { %v5713_v42 = vpop.f32.mrf.mxu2  ;;  %7351 = vst [vmem:[#allocation141_spill] sm:$0xff] %v5715_v11  ;;  %v7358_v11 = vld [vmem:[#allocation45_spill] sm:$0xff] }
  0xfd   :  { %1347 = vmatpush.bf16.msrb.mxu0 %v4514_v45  ;;  %1373 = vmatpush.bf16.msra.mxu2 %v4538_v53  ;;  %7350 = vst [vmem:[#allocation140_spill] sm:$0xff] %v5713_v42  ;;  %v7357_v42 = vld [vmem:[#allocation71_spill] sm:$0xff] }
  0xfe   :  { %1440 = vmatpush.bf16.msrb.mxu3 %v4854_v28  ;;  %1412 = vmatpush.bf16.msra.mxu1 %v4842_v16  ;;  %v7366_v16 = vld [vmem:[#allocation55_spill] sm:$0xff] }
 0x100   :  { %v5722_v18 = vpop.f32.mrf.mxu3 }
 0x101   :  { %1348 = vmatpush.bf16.msrb.mxu0 %v4547_v56  ;;  %1374 = vmatpush.bf16.msra.mxu2 %v4580_v3  ;;  %7353 = vst [vmem:[#allocation143_spill] sm:$0xff] %v5722_v18 }
 0x102   :  { %1441 = vmatpush.bf16.msrb.mxu3 %v4895_v1  ;;  %1413 = vmatpush.bf16.msra.mxu1 %v4880_v48  ;;  %v7359_v1 = vld [vmem:[#allocation47_spill] sm:$0xff] }
 0x103   :  { %v7364_v48 = vld [vmem:[#allocation51_spill] sm:$0xff] }
 0x104   :  { %v5731_v28 = vpop.f32.mrf.mxu2 }
 0x105   :  { %1349 = vmatpush.bf16.msrb.mxu0 %v4586_v7  ;;  %1375 = vmatpush.bf16.msra.mxu2 %v4612_v14  ;;  %7360 = vst [vmem:[#allocation144_spill] sm:$0xff] %v5731_v28  ;;  %v7369_v28 = vld [vmem:[#allocation59_spill] sm:$0xff] }
 0x106   :  { %1442 = vmatpush.bf16.msrb.mxu3 %v4931_v57  ;;  %1414 = vmatpush.bf16.msra.mxu1 %v4921_v37  ;;  %v7355_v57 = vld [vmem:[#allocation41_spill] sm:$0xff]  ;;  %v5734_v37 = vpop.f32.mrf.mxu0 }
 0x107   :  { %7362 = vst [vmem:[#allocation145_spill] sm:$0xff] %v5734_v37  ;;  %v7372_v37 = vld [vmem:[#allocation67_spill] sm:$0xff] }
 0x108   :  { %v1134_v18 = vpop.f32.mrf.mxu3 }
 0x109   :  { %1350 = vmatpush.bf16.msrb.mxu0 %v4647_v25  ;;  %1376 = vmatpush.bf16.msra.mxu2 %v4660_v31 }
 0x10a   :  { %1443 = vmatpush.bf16.msrb.mxu3 %v4978_v4  ;;  %1415 = vmatpush.bf16.msra.mxu1 %v4963_v12  ;;  %v7356_v4 = vld [vmem:[#allocation43_spill] sm:$0xff]  ;;  %v1108_v12 = vpop.f32.mrf.mxu1 }
 0x10c   :  { %v5740_v50 = vpop.f32.mrf.mxu2 }
 0x10d   :  { %1351 = vmatpush.bf16.msrb.mxu0 %v4693_v46  ;;  %1377 = vmatpush.bf16.msra.mxu2 %v4707_v54  ;;  %7367 = vst [vmem:[#allocation146_spill] sm:$0xff] %v5740_v50  ;;  %v7377_v50 = vld [vmem:[#allocation74_spill] sm:$0xff] }
 0x10e   :  { %1416 = vmatpush.bf16.msra.mxu1 %v7357_v42 }
 0x110   :  { %v1136_v58 = vpop.f32.mrf.mxu3 }
 0x111   :  { %1352 = vmatpush.bf16.msrb.mxu0 %v4729_v0  ;;  %1378 = vmatpush.bf16.msra.mxu2 %v7354_v35 }
 0x112   :  { %1417 = vmatpush.bf16.msra.mxu1 %v7361_v36  ;;  %v1110_v42 = vpop.f32.mrf.mxu1  ;;  %v5744_v36 = vpop.f32.mrf.mxu0 }
 0x113   :  { %7370 = vst [vmem:[#allocation147_spill] sm:$0xff] %v5744_v36 }
 0x114   :  { %v5750_v30 = vpop.f32.mrf.mxu2 }
 0x115   :  { %1397 = vmatpush.bf16.msra.mxu0 %v7355_v57  ;;  %1423 = vmatpush.bf16.msrb.mxu2 %v7356_v4  ;;  %7375 = vst [vmem:[#allocation148_spill] sm:$0xff] %v5750_v30  ;;  %v7382_v57 = vld [vmem:[#allocation80_spill] sm:$0xff] }
 0x118   :  { %v1186_v42 = vpop.f32.mrf.mxu3 }
 0x119   :  { %1398 = vmatpush.bf16.msra.mxu0 %v7358_v11  ;;  %1424 = vmatpush.bf16.msrb.mxu2 %v7359_v1 }
 0x11a   :  { %v1160_v38 = vpop.f32.mrf.mxu1  ;;  %v5752_v58 = vpop.f32.mrf.mxu0 }
 0x11b   :  { %7376 = vst [vmem:[#allocation149_spill] sm:$0xff] %v5752_v58 }
 0x11c   :  { %v5756_v36 = vpop.f32.mrf.mxu2 }
 0x11d   :  { %1399 = vmatpush.bf16.msra.mxu0 %v7363_v60  ;;  %1425 = vmatpush.bf16.msrb.mxu2 %v7364_v48  ;;  %7379 = vst [vmem:[#allocation150_spill] sm:$0xff] %v5756_v36  ;;  %v137_v48 = vadd.f32 %v136_v49, %v7381_v9 }
 0x121   :  { %1400 = vmatpush.bf16.msra.mxu0 %v7365_v33  ;;  %1426 = vmatpush.bf16.msrb.mxu2 %v7366_v16 }
 0x125   :  { %1401 = vmatpush.bf16.msra.mxu0 %v7368_v41  ;;  %1427 = vmatpush.bf16.msrb.mxu2 %v7369_v28  ;;  %v7378_v41 = vld [vmem:[#allocation78_spill] sm:$0xff]  ;;  %v1162_v28 = vpop.f32.mrf.mxu1 }
 0x129   :  { %1402 = vmatpush.bf16.msra.mxu0 %v7371_v22  ;;  %1428 = vmatpush.bf16.msrb.mxu2 %v7372_v37  ;;  %v1188_v22 = vpop.f32.mrf.mxu3 }
 0x12d   :  { %1403 = vmatpush.bf16.msra.mxu0 %v7373_v8  ;;  %1429 = vmatpush.bf16.msrb.mxu2 %v7374_v52  ;;  %v7380_v8 = vld [vmem:[#allocation62_spill] sm:$0xff] }
 0x12e   :  { %v166_v52 = vadd.f32 %v5615_v59, %v7380_v8  ;;  %v195_v59 = vadd.f32 %v5687_v17, %v7382_v57 }
 0x131   :  { %1404 = vmatpush.bf16.msra.mxu0 %v7377_v50  ;;  %1430 = vmatpush.bf16.msrb.mxu2 %v7378_v41  ;;  %v1095_v24 = vpop.f32.mrf.mxu0  ;;  %v1238_v33 = vpop.f32.mrf.mxu3 }
 0x132   :  { %v1109_v16 = vadd.f32 %v1108_v12, %v1095_v24 }
 0x134   :  { %v5758_v37 = vpop.f32.mrf.mxu1  ;;  %v1321_v60 = vadd.f32 %v1109_v16, %v137_v48 }
 0x136   :  { %v1325_v36 = vmul.f32 0.5, %v1321_v60 }
 0x137   :  { %v1121_v6 = vpop.f32.mrf.mxu2 }
 0x138   :  { %v1135_v30 = vadd.f32 %v1134_v18, %v1121_v6  ;;  %v7383_v18 = vld [vmem:[#allocation82_spill] sm:$0xff] }
 0x139   :  { %v1097_v58 = vpop.f32.mrf.mxu0  ;;  %v1240_v22 = vpop.f32.mrf.mxu3  ;;  %v224_v49 = vadd.f32 %v5537_v40, %v7383_v18 }
 0x13a   :  { %v1322_v50 = vadd.f32 %v1135_v30, %v166_v52  ;;  %v7384_v58 = vld [vmem:[#allocation91_spill] sm:$0xff] }
 0x13c   :  { %v1214_v41 = vpop.f32.mrf.mxu1  ;;  %v1326_v28 = vmul.f32 0.5, %v1322_v50 }
 0x13e   :  { %4163 = vtanh.f32 %v1326_v28 }
 0x13f   :  { %v1123_v1 = vpop.f32.mrf.mxu2  ;;  %4165 = vtanh.f32 %v1325_v36 }
 0x141   :  { %v1147_v11 = vpop.f32.mrf.mxu0 }
 0x142   :  { %v1161_v4 = vadd.f32 %v1160_v38, %v1147_v11 }
 0x144   :  { %v1323_v24 = vadd.f32 %v1161_v4, %v195_v59  ;;  %v4164_v6 = vpop.eup %4163 }
 0x145   :  { %v4166_v41 = vpop.eup %4165  ;;  %v1332_v16 = vmul.f32 0.5, %v4164_v6 }
 0x146   :  { %v1327_v60 = vmul.f32 0.5, %v1323_v24  ;;  %v1331_v48 = vmul.f32 0.5, %v4166_v41 }
 0x147   :  { %v1173_v12 = vpop.f32.mrf.mxu2  ;;  %v1335_v1 = vadd.f32 0.5, %v1332_v16 }
 0x148   :  { %v1187_v30 = vadd.f32 %v1186_v42, %v1173_v12  ;;  %v1334_v11 = vadd.f32 0.5, %v1331_v48  ;;  %v401_v48 = vld [vmem:[%s6959_s4] sm:$0xf] }
 0x149   :  { %v1149_v52 = vpop.f32.mrf.mxu0  ;;  %v1338_v28 = vmul.f32 %v1335_v1, %v7384_v58  ;;  %v5778_v1 = vperm.slane %v401_v48, 1  ;;  %v5782_v58 = vperm.slane %v401_v48, 0 }
 0x14a   :  { %v1324_v50 = vadd.f32 %v1187_v30, %v224_v49 }
 0x14b   :  { %7387 = vst [vmem:[#allocation62_spill] sm:$0xff] %v5782_v58 }
 0x14c   :  { %4167 = vtanh.f32 %v1324_v50 }
 0x14d   :  { %4169 = vtanh.f32 %v1327_v60 }
 0x14f   :  { %v1175_v38 = vpop.f32.mrf.mxu2 }
 0x151   :  { %v1199_v36 = vpop.f32.mrf.mxu0 }
 0x152   :  { %v1290_v17 = vpop.f32.mrf.mxu3  ;;  %v4168_v4 = vpop.eup %4167 }
 0x153   :  { %v1339_v22 = vmul.f32 %v4168_v4, %v1334_v11  ;;  %v4170_v40 = vpop.eup %4169  ;;  %v7385_v11 = vld [vmem:[#allocation98_spill] sm:$0xff]  ;;  %v7386_v4 = vld [vmem:[#allocation99_spill] sm:$0xff] }
 0x154   :  { %v1264_v59 = vpop.f32.mrf.mxu1  ;;  %v1333_v24 = vmul.f32 0.5, %v4170_v40  ;;  %v7388_v40 = vld [vmem:[#allocation102_spill] sm:$0xff] }
 0x155   :  { %v5768_v42 = vadd.f32 %v1339_v22, %v1338_v28  ;;  %v1213_v28 = vadd.f32 %v5758_v37, %v1199_v36  ;;  %v5793_v37 = vperm.slane %v401_v48, 2 }
 0x156   :  { %v1336_v30 = vadd.f32 0.5, %v1333_v24  ;;  %v7389_v24 = vld [vmem:[#allocation103_spill] sm:$0xff] }
 0x157   :  { %4171 = vtanh.f32 %v5768_v42  ;;  %v1225_v12 = vpop.f32.mrf.mxu2  ;;  %7394 = vst [vmem:[#allocation61_spill] sm:$0xff] %v5793_v37 }
 0x158   :  { %v1239_v38 = vadd.f32 %v1238_v33, %v1225_v12  ;;  %v7391_v33 = vld [vmem:[#allocation107_spill] sm:$0xff] }
 0x159   :  { %v1201_v6 = vpop.f32.mrf.mxu0 }
 0x15a   :  { %v1292_v49 = vpop.f32.mrf.mxu3  ;;  %v1295_v22 = vadd.f32 %v1239_v38, %v5778_v1  ;;  %v1294_v6 = vadd.f32 %v1213_v28, %v5782_v58  ;;  %v7396_v38 = vld [vmem:[#allocation115_spill] sm:$0xff]  ;;  %v5799_v28 = vperm.slane %v401_v48, 3  ;;  %v7399_v48 = vld [vmem:[#allocation122_spill] sm:$0xff] }
 0x15c   :  { %v1266_v52 = vpop.f32.mrf.mxu1  ;;  %v1299_v49 = vmul.f32 0.5, %v1295_v22  ;;  %v1298_v12 = vmul.f32 0.5, %v1294_v6 }
 0x15d   :  { %v4172_v41 = vpop.eup %4171 }
 0x15e   :  { %v1342_v50 = vmul.f32 %v4172_v41, %v1336_v30  ;;  %v7390_v30 = vld [vmem:[#allocation106_spill] sm:$0xff]  ;;  %4173 = vtanh.f32 %v1299_v49 }
 0x15f   :  { %v1227_v16 = vpop.f32.mrf.mxu2  ;;  %v7392_v41 = vld [vmem:[#allocation110_spill] sm:$0xff]  ;;  %4175 = vtanh.f32 %v1298_v12 }
 0x160   :  { %v5771_v60 = vpack.c.bf16 %v1342_v50, %v1342_v50  ;;  %v7393_v50 = vld [vmem:[#allocation111_spill] sm:$0xff]  ;;  %v7395_v16 = vld [vmem:[#allocation114_spill] sm:$0xff] }
 0x161   :  { %v7397_v12 = vld [vmem:[#allocation118_spill] sm:$0xff] }
 0x162   :  { %1353 = vmatmul.bf16.vlgmr.msrb.gmra.mxu0 %v5771_v60  ;;  %1379 = vmatmul.bf16.vlgmr.msra.gmra.mxu2 %v5771_v60 }
 0x163   :  { %1449 = vmatpush.bf16.msrb.mxu0 %v7385_v11  ;;  %1475 = vmatpush.bf16.msra.mxu2 %v7386_v4 }
 0x164   :  { %v4174_v49 = vpop.eup %4173 }
 0x167   :  { %1450 = vmatpush.bf16.msrb.mxu0 %v7388_v40  ;;  %1476 = vmatpush.bf16.msra.mxu2 %v7389_v24 }
 0x16b   :  { %1451 = vmatpush.bf16.msrb.mxu0 %v7390_v30  ;;  %1477 = vmatpush.bf16.msra.mxu2 %v7391_v33  ;;  %v4176_v33 = vpop.eup %4175  ;;  %v1305_v30 = vmul.f32 0.5, %v4174_v49 }
 0x16f   :  { %1452 = vmatpush.bf16.msrb.mxu0 %v7392_v41  ;;  %1478 = vmatpush.bf16.msra.mxu2 %v7393_v50 }
 0x171   :  { %v1251_v52 = vpop.f32.mrf.mxu0 }
 0x172   :  { %v1265_v36 = vadd.f32 %v1264_v59, %v1251_v52  ;;  %1405 = vmatmul.bf16.vlgmr.msra.gmra.mxu0 %v5771_v60  ;;  %1431 = vmatmul.bf16.vlgmr.msrb.gmra.mxu2 %v5771_v60  ;;  %v7398_v52 = vld [vmem:[#allocation119_spill] sm:$0xff] }
 0x173   :  { %1453 = vmatpush.bf16.msrb.mxu0 %v7395_v16  ;;  %1479 = vmatpush.bf16.msra.mxu2 %v7396_v38  ;;  %v1304_v16 = vmul.f32 0.5, %v4176_v33 }
 0x174   :  { %v1296_v22 = vadd.f32 %v1265_v36, %v5793_v37  ;;  %v1308_v36 = vadd.f32 0.5, %v1305_v30 }
 0x176   :  { %v1300_v58 = vmul.f32 0.5, %v1296_v22 }
 0x177   :  { %v1277_v6 = vpop.f32.mrf.mxu2  ;;  %1454 = vmatpush.bf16.msrb.mxu0 %v7397_v12  ;;  %1480 = vmatpush.bf16.msra.mxu2 %v7398_v52 }
 0x178   :  { %v1291_v41 = vadd.f32 %v1290_v17, %v1277_v6  ;;  %v1307_v17 = vadd.f32 0.5, %v1304_v16 }
 0x179   :  { %v1253_v50 = vpop.f32.mrf.mxu0 }
 0x17a   :  { %v1297_v59 = vadd.f32 %v1291_v41, %v5799_v28  ;;  %v1311_v41 = vmul.f32 0.0, %v1308_v36  ;;  %v7401_v36 = vld [vmem:[#allocation69_spill] sm:$0xff] }
 0x17b   :  { %1455 = vmatpush.bf16.msrb.mxu0 %v5460_v2  ;;  %1481 = vmatpush.bf16.msra.mxu2 %v7399_v48 }
 0x17c   :  { %4177 = vtanh.f32 %v1297_v59  ;;  %v7400_v59 = vld [vmem:[#allocation79_spill] sm:$0xff] }
 0x17d   :  { %4179 = vtanh.f32 %v1300_v58 }
 0x17f   :  { %v1279_v37 = vpop.f32.mrf.mxu2  ;;  %1456 = vmatpush.bf16.msrb.mxu0 %v5501_v21  ;;  %1482 = vmatpush.bf16.msra.mxu2 %v5503_v20 }
 0x182   :  { %v4178_v50 = vpop.eup %4177  ;;  %1457 = vmatmul.bf16.vlgmr.msrb.gmra.mxu0 %v5771_v60  ;;  %1483 = vmatmul.bf16.vlgmr.msra.gmra.mxu2 %v5771_v60 }
 0x183   :  { %v1312_v6 = vmul.f32 %v4178_v50, %v1307_v17  ;;  %1501 = vmatpush.bf16.msra.mxu0 %v5505_v5  ;;  %1527 = vmatpush.bf16.msrb.mxu2 %v5507_v26  ;;  %v4180_v33 = vpop.eup %4179  ;;  %v7402_v17 = vld [vmem:[#allocation83_spill] sm:$0xff]  ;;  %v7403_v50 = vld [vmem:[#allocation73_spill] sm:$0xff] }
 0x184   :  { %v1306_v58 = vmul.f32 0.5, %v4180_v33  ;;  %v7406_v33 = vld [vmem:[#allocation87_spill] sm:$0xff] }
 0x185   :  { %v5811_v22 = vadd.f32 %v1312_v6, %v1311_v41  ;;  %v7404_v41 = vld [vmem:[#allocation85_spill] sm:$0xff] }
 0x186   :  { %v1309_v30 = vadd.f32 0.5, %v1306_v58  ;;  %v7405_v6 = vld [vmem:[#allocation81_spill] sm:$0xff]  ;;  %v7407_v58 = vld [vmem:[#allocation84_spill] sm:$0xff] }
 0x187   :  { %4181 = vtanh.f32 %v5811_v22  ;;  %1502 = vmatpush.bf16.msra.mxu0 %v5530_v19  ;;  %1528 = vmatpush.bf16.msrb.mxu2 %v5532_v63 }
 0x18b   :  { %1503 = vmatpush.bf16.msra.mxu0 %v5555_v51  ;;  %1529 = vmatpush.bf16.msrb.mxu2 %v5557_v13 }
 0x18d   :  { %v4182_v37 = vpop.eup %4181 }
 0x18e   :  { %v1315_v16 = vmul.f32 %v4182_v37, %v1309_v30  ;;  %v7408_v30 = vld [vmem:[#allocation89_spill] sm:$0xff]  ;;  %v7409_v37 = vld [vmem:[#allocation86_spill] sm:$0xff] }
 0x18f   :  { %1504 = vmatpush.bf16.msra.mxu0 %v5576_v55  ;;  %1530 = vmatpush.bf16.msrb.mxu2 %v5578_v44 }
 0x190   :  { %v5822_v49 = vpack.c.bf16 %v1315_v16, %v1315_v16  ;;  %v7410_v16 = vld [vmem:[#allocation92_spill] sm:$0xff] }
 0x192   :  { %1366 = vmatmul.bf16.vlgmr.msrb.gmra.mxu1 %v5822_v49  ;;  %1392 = vmatmul.bf16.vlgmr.msra.gmra.mxu3 %v5822_v49 }
 0x193   :  { %1462 = vmatpush.bf16.msrb.mxu1 %v7400_v59  ;;  %1488 = vmatpush.bf16.msra.mxu3 %v7401_v36 }
 0x194   :  { %1505 = vmatpush.bf16.msra.mxu0 %v5598_v32  ;;  %1531 = vmatpush.bf16.msrb.mxu2 %v5600_v47 }
 0x197   :  { %1463 = vmatpush.bf16.msrb.mxu1 %v7402_v17  ;;  %1489 = vmatpush.bf16.msra.mxu3 %v7403_v50 }
 0x198   :  { %1506 = vmatpush.bf16.msra.mxu0 %v5620_v62  ;;  %1532 = vmatpush.bf16.msrb.mxu2 %v5622_v29 }
 0x19b   :  { %1464 = vmatpush.bf16.msrb.mxu1 %v7404_v41  ;;  %1490 = vmatpush.bf16.msra.mxu3 %v7405_v6 }
 0x19c   :  { %1507 = vmatpush.bf16.msra.mxu0 %v5642_v10  ;;  %1533 = vmatpush.bf16.msrb.mxu2 %v5644_v43 }
 0x19f   :  { %1465 = vmatpush.bf16.msrb.mxu1 %v7406_v33  ;;  %1491 = vmatpush.bf16.msra.mxu3 %v7407_v58 }
 0x1a0   :  { %1508 = vmatpush.bf16.msra.mxu0 %v5665_v61  ;;  %1534 = vmatpush.bf16.msrb.mxu2 %v5667_v15 }
 0x1a2   :  { %1418 = vmatmul.bf16.vlgmr.msra.gmra.mxu1 %v5822_v49  ;;  %1444 = vmatmul.bf16.vlgmr.msrb.gmra.mxu3 %v5822_v49 }
 0x1a3   :  { %1466 = vmatpush.bf16.msrb.mxu1 %v7408_v30  ;;  %1492 = vmatpush.bf16.msra.mxu3 %v7409_v37  ;;  %v7413_v30 = vld [vmem:[#allocation90_spill] sm:$0xff] }
 0x1a4   :  { %1604 = vmatpush.bf16.msrb.mxu0 %v4446_v23  ;;  %1630 = vmatpush.bf16.msra.mxu2 %v4460_v27  ;;  %v7411_v23 = vld [vmem:[#allocation88_spill] sm:$0xff]  ;;  %v7412_v27 = vld [vmem:[#allocation95_spill] sm:$0xff] }
 0x1a5   :  { %1509 = vmatmul.bf16.vlgmr.msra.gmra.mxu0 %v5771_v60  ;;  %1535 = vmatmul.bf16.vlgmr.msrb.gmra.mxu2 %v5771_v60  ;;  %v7414_v60 = vld [vmem:[#allocation97_spill] sm:$0xff] }
 0x1a7   :  { %1467 = vmatpush.bf16.msrb.mxu1 %v7410_v16  ;;  %1493 = vmatpush.bf16.msra.mxu3 %v7411_v23  ;;  %v7417_v16 = vld [vmem:[#allocation94_spill] sm:$0xff] }
 0x1a8   :  { %1605 = vmatpush.bf16.msrb.mxu0 %v4482_v34  ;;  %1631 = vmatpush.bf16.msra.mxu2 %v4496_v39  ;;  %v7415_v34 = vld [vmem:[#allocation93_spill] sm:$0xff]  ;;  %v7416_v39 = vld [vmem:[#allocation100_spill] sm:$0xff]  ;;  %v7481_v23 = vld [vmem:[#allocation142_spill] sm:$0xff] }
 0x1ab   :  { %1468 = vmatpush.bf16.msrb.mxu1 %v7412_v27  ;;  %1494 = vmatpush.bf16.msra.mxu3 %v7413_v30  ;;  %v7418_v30 = vld [vmem:[#allocation104_spill] sm:$0xff] }
 0x1ac   :  { %1606 = vmatpush.bf16.msrb.mxu0 %v4514_v45  ;;  %1632 = vmatpush.bf16.msra.mxu2 %v4538_v53 }
 0x1af   :  { %1469 = vmatpush.bf16.msrb.mxu1 %v7414_v60  ;;  %1495 = vmatpush.bf16.msra.mxu3 %v7415_v34  ;;  %v7420_v34 = vld [vmem:[#allocation108_spill] sm:$0xff]  ;;  %v7472_v60 = vld [vmem:[#allocation58_spill] sm:$0xff] }
 0x1b0   :  { %1607 = vmatpush.bf16.msrb.mxu0 %v4547_v56  ;;  %1633 = vmatpush.bf16.msra.mxu2 %v4580_v3  ;;  %v7419_v56 = vld [vmem:[#allocation96_spill] sm:$0xff] }
 0x1b2   :  { %1470 = vmatmul.bf16.vlgmr.msrb.gmra.mxu1 %v5822_v49  ;;  %1496 = vmatmul.bf16.vlgmr.msra.gmra.mxu3 %v5822_v49 }
 0x1b3   :  { %1514 = vmatpush.bf16.msra.mxu1 %v7416_v39  ;;  %1540 = vmatpush.bf16.msrb.mxu3 %v7417_v16  ;;  %v7421_v39 = vld [vmem:[#allocation101_spill] sm:$0xff]  ;;  %v7468_v16 = vld [vmem:[#allocation50_spill] sm:$0xff] }
 0x1b4   :  { %1608 = vmatpush.bf16.msrb.mxu0 %v4586_v7  ;;  %1634 = vmatpush.bf16.msra.mxu2 %v4612_v14  ;;  %v7422_v14 = vld [vmem:[#allocation112_spill] sm:$0xff]  ;;  %v7423_v7 = vld [vmem:[#allocation105_spill] sm:$0xff] }
 0x1b7   :  { %1515 = vmatpush.bf16.msra.mxu1 %v7418_v30  ;;  %1541 = vmatpush.bf16.msrb.mxu3 %v7419_v56  ;;  %v7424_v56 = vld [vmem:[#allocation41_spill] sm:$0xff] }
 0x1b8   :  { %1609 = vmatpush.bf16.msrb.mxu0 %v4647_v25  ;;  %1635 = vmatpush.bf16.msra.mxu2 %v4660_v31  ;;  %v7425_v25 = vld [vmem:[#allocation43_spill] sm:$0xff]  ;;  %v7426_v31 = vld [vmem:[#allocation116_spill] sm:$0xff] }
 0x1bb   :  { %1516 = vmatpush.bf16.msra.mxu1 %v7420_v34  ;;  %1542 = vmatpush.bf16.msrb.mxu3 %v7421_v39  ;;  %v7427_v34 = vld [vmem:[#allocation109_spill] sm:$0xff] }
 0x1bc   :  { %1610 = vmatpush.bf16.msrb.mxu0 %v4693_v46  ;;  %1636 = vmatpush.bf16.msra.mxu2 %v4707_v54  ;;  %v7428_v39 = vld [vmem:[#allocation45_spill] sm:$0xff]  ;;  %v7429_v46 = vld [vmem:[#allocation47_spill] sm:$0xff]  ;;  %v7430_v54 = vld [vmem:[#allocation120_spill] sm:$0xff] }
 0x1bf   :  { %1517 = vmatpush.bf16.msra.mxu1 %v7422_v14  ;;  %1543 = vmatpush.bf16.msrb.mxu3 %v7423_v7  ;;  %v7431_v14 = vld [vmem:[#allocation113_spill] sm:$0xff] }
 0x1c0   :  { %1611 = vmatpush.bf16.msrb.mxu0 %v4729_v0  ;;  %1637 = vmatpush.bf16.msra.mxu2 %v7354_v35  ;;  %v7432_v7 = vld [vmem:[#allocation49_spill] sm:$0xff]  ;;  %v7433_v0 = vld [vmem:[#allocation51_spill] sm:$0xff] }
 0x1c1   :  { %v7434_v35 = vld [vmem:[#allocation123_spill] sm:$0xff] }
 0x1c3   :  { %1518 = vmatpush.bf16.msra.mxu1 %v7426_v31  ;;  %1544 = vmatpush.bf16.msrb.mxu3 %v7427_v34  ;;  %v7437_v31 = vld [vmem:[#allocation55_spill] sm:$0xff]  ;;  %v7438_v34 = vld [vmem:[#allocation124_spill] sm:$0xff] }
 0x1c4   :  { %1656 = vmatpush.bf16.msra.mxu0 %v7424_v56  ;;  %1682 = vmatpush.bf16.msrb.mxu2 %v7425_v25  ;;  %v7435_v56 = vld [vmem:[#allocation117_spill] sm:$0xff] }
 0x1c5   :  { %v7436_v25 = vld [vmem:[#allocation53_spill] sm:$0xff] }
 0x1c7   :  { %1519 = vmatpush.bf16.msra.mxu1 %v7430_v54  ;;  %1545 = vmatpush.bf16.msrb.mxu3 %v7431_v14  ;;  %v7441_v54 = vld [vmem:[#allocation7_spill] sm:$0xff]  ;;  %v7442_v14 = vld [vmem:[#allocation57_spill] sm:$0xff] }
 0x1c8   :  { %1657 = vmatpush.bf16.msra.mxu0 %v7428_v39  ;;  %1683 = vmatpush.bf16.msrb.mxu2 %v7429_v46  ;;  %v7439_v39 = vld [vmem:[#allocation121_spill] sm:$0xff] }
 0x1c9   :  { %v7440_v46 = vld [vmem:[#allocation9_spill] sm:$0xff] }
 0x1cb   :  { %1520 = vmatpush.bf16.msra.mxu1 %v7434_v35  ;;  %1546 = vmatpush.bf16.msrb.mxu3 %v7435_v56  ;;  %v7444_v56 = vld [vmem:[#allocation13_spill] sm:$0xff]  ;;  %v7453_v35 = vld [vmem:[#allocation20_spill] sm:$0xff] }
 0x1cc   :  { %1658 = vmatpush.bf16.msra.mxu0 %v7432_v7  ;;  %1684 = vmatpush.bf16.msrb.mxu2 %v7433_v0  ;;  %v7443_v7 = vld [vmem:[#allocation59_spill] sm:$0xff] }
 0x1cd   :  { %v7462_v0 = vld [vmem:[#allocation39_spill] sm:$0xff] }
 0x1cf   :  { %1521 = vmatpush.bf16.msra.mxu1 %v7438_v34  ;;  %1547 = vmatpush.bf16.msrb.mxu3 %v7439_v39  ;;  %v7447_v34 = vld [vmem:[#allocation67_spill] sm:$0xff]  ;;  %v7448_v39 = vld [vmem:[#allocation17_spill] sm:$0xff] }
 0x1d0   :  { %1659 = vmatpush.bf16.msra.mxu0 %v7436_v25  ;;  %1685 = vmatpush.bf16.msrb.mxu2 %v7437_v31  ;;  %v7445_v25 = vld [vmem:[#allocation11_spill] sm:$0xff] }
 0x1d1   :  { %v7446_v31 = vld [vmem:[#allocation63_spill] sm:$0xff] }
 0x1d2   :  { %1522 = vmatmul.bf16.vlgmr.msra.gmra.mxu1 %v5822_v49  ;;  %1548 = vmatmul.bf16.vlgmr.msrb.gmra.mxu3 %v5822_v49  ;;  %v7454_v49 = vld [vmem:[#allocation74_spill] sm:$0xff] }
 0x1d3   :  { %1617 = vmatpush.bf16.msrb.mxu1 %v7440_v46  ;;  %1643 = vmatpush.bf16.msra.mxu3 %v7441_v54  ;;  %v7449_v46 = vld [vmem:[#allocation16_spill] sm:$0xff]  ;;  %v7450_v54 = vld [vmem:[#allocation70_spill] sm:$0xff] }
 0x1d4   :  { %1660 = vmatpush.bf16.msra.mxu0 %v7442_v14  ;;  %1686 = vmatpush.bf16.msrb.mxu2 %v7443_v7  ;;  %v7451_v14 = vld [vmem:[#allocation72_spill] sm:$0xff]  ;;  %v7452_v7 = vld [vmem:[#allocation21_spill] sm:$0xff] }
 0x1d7   :  { %1618 = vmatpush.bf16.msrb.mxu1 %v7444_v56  ;;  %1644 = vmatpush.bf16.msra.mxu3 %v7445_v25  ;;  %v7455_v56 = vld [vmem:[#allocation78_spill] sm:$0xff]  ;;  %v7456_v25 = vld [vmem:[#allocation25_spill] sm:$0xff] }
 0x1d8   :  { %1661 = vmatpush.bf16.msra.mxu0 %v7446_v31  ;;  %1687 = vmatpush.bf16.msrb.mxu2 %v7447_v34  ;;  %v7457_v31 = vld [vmem:[#allocation24_spill] sm:$0xff]  ;;  %v7458_v34 = vld [vmem:[#allocation30_spill] sm:$0xff] }
 0x1db   :  { %1619 = vmatpush.bf16.msrb.mxu1 %v7448_v39  ;;  %1645 = vmatpush.bf16.msra.mxu3 %v7449_v46  ;;  %v7459_v39 = vld [vmem:[#allocation27_spill] sm:$0xff] }
 0x1dc   :  { %1662 = vmatpush.bf16.msra.mxu0 %v7450_v54  ;;  %1688 = vmatpush.bf16.msrb.mxu2 %v7451_v14  ;;  %v7460_v54 = vld [vmem:[#allocation35_spill] sm:$0xff]  ;;  %v7461_v14 = vld [vmem:[#allocation28_spill] sm:$0xff] }
 0x1df   :  { %1620 = vmatpush.bf16.msrb.mxu1 %v7452_v7  ;;  %1646 = vmatpush.bf16.msra.mxu3 %v7453_v35  ;;  %v1354_v46 = vpop.f32.mrf.mxu0  ;;  %v7463_v35 = vld [vmem:[#allocation32_spill] sm:$0xff] }
 0x1e0   :  { %1663 = vmatpush.bf16.msra.mxu0 %v7454_v49  ;;  %1689 = vmatpush.bf16.msrb.mxu2 %v7455_v56  ;;  %v7464_v56 = vld [vmem:[#allocation42_spill] sm:$0xff] }
 0x1e3   :  { %1621 = vmatpush.bf16.msrb.mxu1 %v7456_v25  ;;  %1647 = vmatpush.bf16.msra.mxu3 %v7457_v31  ;;  %v7465_v25 = vld [vmem:[#allocation33_spill] sm:$0xff]  ;;  %v7466_v31 = vld [vmem:[#allocation46_spill] sm:$0xff] }
 0x1e5   :  { %v1380_v7 = vpop.f32.mrf.mxu2 }
 0x1e7   :  { %1622 = vmatpush.bf16.msrb.mxu1 %v7458_v34  ;;  %1648 = vmatpush.bf16.msra.mxu3 %v7459_v39  ;;  %v1356_v49 = vpop.f32.mrf.mxu0  ;;  %v7467_v34 = vld [vmem:[#allocation37_spill] sm:$0xff] }
 0x1eb   :  { %1623 = vmatpush.bf16.msrb.mxu1 %v7460_v54  ;;  %1649 = vmatpush.bf16.msra.mxu3 %v7461_v14  ;;  %v7469_v54 = vld [vmem:[#allocation44_spill] sm:$0xff]  ;;  %v7470_v14 = vld [vmem:[#allocation54_spill] sm:$0xff] }
 0x1ed   :  { %v1382_v39 = vpop.f32.mrf.mxu2 }
 0x1ef   :  { %1624 = vmatpush.bf16.msrb.mxu1 %v7462_v0  ;;  %1650 = vmatpush.bf16.msra.mxu3 %v7463_v35  ;;  %v1406_v30 = vpop.f32.mrf.mxu0  ;;  %v7471_v0 = vld [vmem:[#allocation48_spill] sm:$0xff] }
 0x1f3   :  { %1669 = vmatpush.bf16.msra.mxu1 %v7464_v56  ;;  %1695 = vmatpush.bf16.msrb.mxu3 %v7465_v25  ;;  %v7473_v56 = vld [vmem:[#allocation52_spill] sm:$0xff]  ;;  %v7474_v25 = vld [vmem:[#allocation65_spill] sm:$0xff] }
 0x1f5   :  { %v1432_v35 = vpop.f32.mrf.mxu2 }
 0x1f7   :  { %1670 = vmatpush.bf16.msra.mxu1 %v7466_v31  ;;  %1696 = vmatpush.bf16.msrb.mxu3 %v7467_v34  ;;  %v1408_v49 = vpop.f32.mrf.mxu0  ;;  %v7475_v31 = vld [vmem:[#allocation56_spill] sm:$0xff] }
 0x1fb   :  { %1671 = vmatpush.bf16.msra.mxu1 %v7468_v16  ;;  %1697 = vmatpush.bf16.msrb.mxu3 %v7469_v54  ;;  %v7476_v16 = vld [vmem:[#allocation71_spill] sm:$0xff]  ;;  %v7477_v54 = vld [vmem:[#allocation60_spill] sm:$0xff] }
 0x1fd   :  { %v1434_v39 = vpop.f32.mrf.mxu2 }
 0x1ff   :  { %1672 = vmatpush.bf16.msra.mxu1 %v7470_v14  ;;  %1698 = vmatpush.bf16.msrb.mxu3 %v7471_v0  ;;  %v5934_v34 = vpop.f32.mrf.mxu0  ;;  %v7478_v14 = vld [vmem:[#allocation76_spill] sm:$0xff] }
 0x200   :  { %v7479_v0 = vld [vmem:[#allocation68_spill] sm:$0xff] }
 0x203   :  { %1673 = vmatpush.bf16.msra.mxu1 %v7472_v60  ;;  %1699 = vmatpush.bf16.msrb.mxu3 %v7473_v56 }
 0x205   :  { %v1484_v49 = vpop.f32.mrf.mxu2 }
 0x207   :  { %1674 = vmatpush.bf16.msra.mxu1 %v7474_v25  ;;  %1700 = vmatpush.bf16.msrb.mxu3 %v7475_v31  ;;  %v1460_v3 = vpop.f32.mrf.mxu0  ;;  %v7480_v25 = vld [vmem:[#allocation131_spill] sm:$0xff] }
 0x208   :  { %v169_v53 = vadd.f32 %v7480_v25, %v7380_v8 }
 0x20b   :  { %1675 = vmatpush.bf16.msra.mxu1 %v7476_v16  ;;  %1701 = vmatpush.bf16.msrb.mxu3 %v7477_v54  ;;  %v140_v16 = vadd.f32 %v7481_v23, %v7381_v9 }
 0x20d   :  { %v1486_v27 = vpop.f32.mrf.mxu2 }
 0x20e   :  { %v7482_v27 = vld [vmem:[#allocation137_spill] sm:$0xff] }
 0x20f   :  { %1676 = vmatpush.bf16.msra.mxu1 %v7478_v14  ;;  %1702 = vmatpush.bf16.msrb.mxu3 %v7479_v0  ;;  %v1367_v60 = vpop.f32.mrf.mxu1  ;;  %v198_v33 = vadd.f32 %v7482_v27, %v7382_v57 }
 0x210   :  { %v1368_v31 = vadd.f32 %v1367_v60, %v1354_v46 }
 0x212   :  { %v1580_v54 = vadd.f32 %v1368_v31, %v140_v16 }
 0x214   :  { %v1584_v61 = vmul.f32 0.5, %v1580_v54 }
 0x215   :  { %v1393_v56 = vpop.f32.mrf.mxu3 }
 0x216   :  { %v1394_v39 = vadd.f32 %v1393_v56, %v1380_v7 }
 0x217   :  { %v1369_v45 = vpop.f32.mrf.mxu1 }
 0x218   :  { %v1581_v37 = vadd.f32 %v1394_v39, %v169_v53  ;;  %v7483_v45 = vld [vmem:[#allocation125_spill] sm:$0xff] }
 0x219   :  { %v227_v7 = vadd.f32 %v7483_v45, %v7383_v18 }
 0x21a   :  { %v1585_v15 = vmul.f32 0.5, %v1581_v37 }
 0x21c   :  { %4183 = vtanh.f32 %v1585_v15 }
 0x21d   :  { %v1395_v14 = vpop.f32.mrf.mxu3  ;;  %4185 = vtanh.f32 %v1584_v61 }
 0x21f   :  { %v1419_v0 = vpop.f32.mrf.mxu1 }
 0x220   :  { %v1420_v3 = vadd.f32 %v1419_v0, %v1406_v30 }
 0x222   :  { %v1510_v58 = vpop.f32.mrf.mxu0  ;;  %v1582_v25 = vadd.f32 %v1420_v3, %v198_v33  ;;  %v4184_v56 = vpop.eup %4183 }
 0x223   :  { %v4186_v37 = vpop.eup %4185  ;;  %v1591_v54 = vmul.f32 0.5, %v4184_v56 }
 0x224   :  { %v1586_v16 = vmul.f32 0.5, %v1582_v25  ;;  %v1590_v0 = vmul.f32 0.5, %v4186_v37 }
 0x225   :  { %v1445_v46 = vpop.f32.mrf.mxu3  ;;  %v1594_v61 = vadd.f32 0.5, %v1591_v54 }
 0x226   :  { %v1446_v23 = vadd.f32 %v1445_v46, %v1432_v35  ;;  %v1593_v60 = vadd.f32 0.5, %v1590_v0  ;;  %v7484_v0 = vld [vmem:[#allocation62_spill] sm:$0xff] }
 0x227   :  { %v1421_v31 = vpop.f32.mrf.mxu1  ;;  %v1597_v27 = vmul.f32 %v1594_v61, %v5768_v42 }
 0x228   :  { %v1536_v53 = vpop.f32.mrf.mxu2  ;;  %v1583_v14 = vadd.f32 %v1446_v23, %v227_v7 }
 0x22a   :  { %v1512_v15 = vpop.f32.mrf.mxu0  ;;  %4187 = vtanh.f32 %v1583_v14 }
 0x22b   :  { %4189 = vtanh.f32 %v1586_v16 }
 0x22d   :  { %v1447_v30 = vpop.f32.mrf.mxu3 }
 0x22f   :  { %v1471_v39 = vpop.f32.mrf.mxu1 }
 0x230   :  { %v1538_v33 = vpop.f32.mrf.mxu2  ;;  %v4188_v3 = vpop.eup %4187  ;;  %v1472_v16 = vadd.f32 %v1471_v39, %v5934_v34  ;;  %v7489_v39 = vld [vmem:[#allocation114_spill] sm:$0xff] }
 0x231   :  { %v1598_v45 = vmul.f32 %v4188_v3, %v1593_v60  ;;  %v4190_v35 = vpop.eup %4189  ;;  %v7485_v60 = vld [vmem:[#allocation106_spill] sm:$0xff]  ;;  %v7486_v33 = vld [vmem:[#allocation107_spill] sm:$0xff] }
 0x232   :  { %v1592_v25 = vmul.f32 0.5, %v4190_v35  ;;  %v1553_v61 = vadd.f32 %v1472_v16, %v7484_v0  ;;  %v7490_v35 = vld [vmem:[#allocation61_spill] sm:$0xff] }
 0x233   :  { %v5949_v46 = vadd.f32 %v1598_v45, %v1597_v27  ;;  %v7487_v27 = vld [vmem:[#allocation110_spill] sm:$0xff]  ;;  %v7488_v45 = vld [vmem:[#allocation111_spill] sm:$0xff] }
 0x234   :  { %v1595_v23 = vadd.f32 0.5, %v1592_v25 }
 0x235   :  { %4191 = vtanh.f32 %v5949_v46  ;;  %v1497_v56 = vpop.f32.mrf.mxu3 }
 0x236   :  { %v1498_v42 = vadd.f32 %v1497_v56, %v1484_v49  ;;  %v1557_v49 = vmul.f32 0.5, %v1553_v61 }
 0x237   :  { %v1473_v7 = vpop.f32.mrf.mxu1 }
 0x238   :  { %v1554_v15 = vadd.f32 %v1498_v42, %v5778_v1 }
 0x23a   :  { %v1558_v30 = vmul.f32 0.5, %v1554_v15 }
 0x23b   :  { %v4192_v31 = vpop.eup %4191 }
 0x23c   :  { %v1601_v37 = vmul.f32 %v4192_v31, %v1595_v23  ;;  %4193 = vtanh.f32 %v1558_v30 }
 0x23d   :  { %v1499_v14 = vpop.f32.mrf.mxu3  ;;  %4195 = vtanh.f32 %v1557_v49 }
 0x23e   :  { %v5952_v54 = vpack.c.bf16 %v1601_v37, %v1601_v37 }
 0x240   :  { %1612 = vmatmul.bf16.vlgmr.msrb.gmra.mxu0 %v5952_v54  ;;  %1638 = vmatmul.bf16.vlgmr.msra.gmra.mxu2 %v5952_v54 }
 0x241   :  { %1708 = vmatpush.bf16.msrb.mxu0 %v7385_v11  ;;  %1734 = vmatpush.bf16.msra.mxu2 %v7386_v4 }
 0x242   :  { %v4194_v7 = vpop.eup %4193 }
 0x243   :  { %v4196_v37 = vpop.eup %4195 }
 0x244   :  { %v1563_v16 = vmul.f32 0.5, %v4196_v37  ;;  %v7491_v37 = vld [vmem:[#allocation87_spill] sm:$0xff] }
 0x245   :  { %1709 = vmatpush.bf16.msrb.mxu0 %v7388_v40  ;;  %1735 = vmatpush.bf16.msra.mxu2 %v7389_v24 }
 0x249   :  { %1710 = vmatpush.bf16.msrb.mxu0 %v7485_v60  ;;  %1736 = vmatpush.bf16.msra.mxu2 %v7486_v33 }
 0x24d   :  { %1711 = vmatpush.bf16.msrb.mxu0 %v7487_v27  ;;  %1737 = vmatpush.bf16.msra.mxu2 %v7488_v45 }
 0x24f   :  { %v1523_v3 = vpop.f32.mrf.mxu1 }
 0x250   :  { %v1524_v34 = vadd.f32 %v1523_v3, %v1510_v58  ;;  %1664 = vmatmul.bf16.vlgmr.msra.gmra.mxu0 %v5952_v54  ;;  %1690 = vmatmul.bf16.vlgmr.msrb.gmra.mxu2 %v5952_v54  ;;  %v1564_v58 = vmul.f32 0.5, %v4194_v7 }
 0x251   :  { %1712 = vmatpush.bf16.msrb.mxu0 %v7489_v39  ;;  %1738 = vmatpush.bf16.msra.mxu2 %v7396_v38 }
 0x252   :  { %v1555_v56 = vadd.f32 %v1524_v34, %v7490_v35  ;;  %v1567_v15 = vadd.f32 0.5, %v1564_v58  ;;  %v7493_v58 = vld [vmem:[#allocation132_spill] sm:$0xff] }
 0x254   :  { %v1559_v42 = vmul.f32 0.5, %v1555_v56  ;;  %v1570_v49 = vmul.f32 %v1567_v15, %v5811_v22  ;;  %v7496_v15 = vld [vmem:[#allocation10_spill] sm:$0xff] }
 0x255   :  { %v1549_v25 = vpop.f32.mrf.mxu3  ;;  %1713 = vmatpush.bf16.msrb.mxu0 %v7397_v12  ;;  %1739 = vmatpush.bf16.msra.mxu2 %v7398_v52 }
 0x256   :  { %v1550_v23 = vadd.f32 %v1549_v25, %v1536_v53  ;;  %v1566_v53 = vadd.f32 0.5, %v1563_v16  ;;  %v7495_v16 = vld [vmem:[#allocation8_spill] sm:$0xff] }
 0x257   :  { %v1525_v31 = vpop.f32.mrf.mxu1 }
 0x258   :  { %v1556_v14 = vadd.f32 %v1550_v23, %v5799_v28 }
 0x259   :  { %1714 = vmatpush.bf16.msrb.mxu0 %v5460_v2  ;;  %1740 = vmatpush.bf16.msra.mxu2 %v7399_v48 }
 0x25a   :  { %4197 = vtanh.f32 %v1556_v14  ;;  %v7492_v14 = vld [vmem:[#allocation84_spill] sm:$0xff] }
 0x25b   :  { %4199 = vtanh.f32 %v1559_v42  ;;  %v7494_v42 = vld [vmem:[#allocation133_spill] sm:$0xff] }
 0x25d   :  { %v1551_v61 = vpop.f32.mrf.mxu3  ;;  %1715 = vmatpush.bf16.msrb.mxu0 %v5501_v21  ;;  %1741 = vmatpush.bf16.msra.mxu2 %v5503_v20 }
 0x25e   :  { %v7497_v61 = vld [vmem:[#allocation89_spill] sm:$0xff] }
 0x260   :  { %v4198_v30 = vpop.eup %4197  ;;  %1716 = vmatmul.bf16.vlgmr.msrb.gmra.mxu0 %v5952_v54  ;;  %1742 = vmatmul.bf16.vlgmr.msra.gmra.mxu2 %v5952_v54 }
 0x261   :  { %v1571_v3 = vmul.f32 %v4198_v30, %v1566_v53  ;;  %1760 = vmatpush.bf16.msra.mxu0 %v5505_v5  ;;  %1786 = vmatpush.bf16.msrb.mxu2 %v5507_v26  ;;  %v4200_v34 = vpop.eup %4199  ;;  %v7498_v53 = vld [vmem:[#allocation86_spill] sm:$0xff]  ;;  %v7499_v30 = vld [vmem:[#allocation12_spill] sm:$0xff] }
 0x262   :  { %v1565_v25 = vmul.f32 0.5, %v4200_v34  ;;  %v7502_v34 = vld [vmem:[#allocation88_spill] sm:$0xff] }
 0x263   :  { %v5982_v56 = vadd.f32 %v1571_v3, %v1570_v49  ;;  %v7500_v49 = vld [vmem:[#allocation14_spill] sm:$0xff]  ;;  %v7501_v3 = vld [vmem:[#allocation92_spill] sm:$0xff] }
 0x264   :  { %v1568_v22 = vadd.f32 0.5, %v1565_v25  ;;  %v7503_v25 = vld [vmem:[#allocation15_spill] sm:$0xff] }
 0x265   :  { %4201 = vtanh.f32 %v5982_v56  ;;  %1761 = vmatpush.bf16.msra.mxu0 %v5530_v19  ;;  %1787 = vmatpush.bf16.msrb.mxu2 %v5532_v63 }
 0x269   :  { %1762 = vmatpush.bf16.msra.mxu0 %v5555_v51  ;;  %1788 = vmatpush.bf16.msrb.mxu2 %v5557_v13 }
 0x26b   :  { %v4202_v7 = vpop.eup %4201 }
 0x26c   :  { %v1574_v23 = vmul.f32 %v4202_v7, %v1568_v22  ;;  %v7504_v22 = vld [vmem:[#allocation18_spill] sm:$0xff]  ;;  %v7505_v7 = vld [vmem:[#allocation95_spill] sm:$0xff] }
 0x26d   :  { %1763 = vmatpush.bf16.msra.mxu0 %v5576_v55  ;;  %1789 = vmatpush.bf16.msrb.mxu2 %v5578_v44 }
 0x26e   :  { %v5993_v31 = vpack.c.bf16 %v1574_v23, %v1574_v23  ;;  %v7506_v23 = vld [vmem:[#allocation90_spill] sm:$0xff] }
 0x270   :  { %1625 = vmatmul.bf16.vlgmr.msrb.gmra.mxu1 %v5993_v31  ;;  %1651 = vmatmul.bf16.vlgmr.msra.gmra.mxu3 %v5993_v31 }
 0x271   :  { %1721 = vmatpush.bf16.msrb.mxu1 %v7400_v59  ;;  %1747 = vmatpush.bf16.msra.mxu3 %v7401_v36 }
 0x272   :  { %1764 = vmatpush.bf16.msra.mxu0 %v5598_v32  ;;  %1790 = vmatpush.bf16.msrb.mxu2 %v5600_v47 }
 0x275   :  { %1722 = vmatpush.bf16.msrb.mxu1 %v7402_v17  ;;  %1748 = vmatpush.bf16.msra.mxu3 %v7403_v50 }
 0x276   :  { %1765 = vmatpush.bf16.msra.mxu0 %v5620_v62  ;;  %1791 = vmatpush.bf16.msrb.mxu2 %v5622_v29 }
 0x279   :  { %1723 = vmatpush.bf16.msrb.mxu1 %v7404_v41  ;;  %1749 = vmatpush.bf16.msra.mxu3 %v7405_v6 }
 0x27a   :  { %1766 = vmatpush.bf16.msra.mxu0 %v5642_v10  ;;  %1792 = vmatpush.bf16.msrb.mxu2 %v5644_v43  ;;  %v7584_v10 = vld [vmem:[#allocation145_spill] sm:$0xff] }
 0x27d   :  { %1724 = vmatpush.bf16.msrb.mxu1 %v7491_v37  ;;  %1750 = vmatpush.bf16.msra.mxu3 %v7492_v14 }
 0x27e   :  { %1767 = vmatpush.bf16.msra.mxu0 %v7493_v58  ;;  %1793 = vmatpush.bf16.msrb.mxu2 %v7494_v42  ;;  %v7575_v42 = vld [vmem:[#allocation58_spill] sm:$0xff] }
 0x280   :  { %1677 = vmatmul.bf16.vlgmr.msra.gmra.mxu1 %v5993_v31  ;;  %1703 = vmatmul.bf16.vlgmr.msrb.gmra.mxu3 %v5993_v31 }
 0x281   :  { %1725 = vmatpush.bf16.msrb.mxu1 %v7497_v61  ;;  %1751 = vmatpush.bf16.msra.mxu3 %v7498_v53  ;;  %v7507_v53 = vld [vmem:[#allocation19_spill] sm:$0xff]  ;;  %v7508_v61 = vld [vmem:[#allocation22_spill] sm:$0xff] }
 0x282   :  { %1863 = vmatpush.bf16.msrb.mxu0 %v7495_v16  ;;  %1889 = vmatpush.bf16.msra.mxu2 %v7496_v15  ;;  %v7571_v16 = vld [vmem:[#allocation50_spill] sm:$0xff] }
 0x283   :  { %1768 = vmatmul.bf16.vlgmr.msra.gmra.mxu0 %v5952_v54  ;;  %1794 = vmatmul.bf16.vlgmr.msrb.gmra.mxu2 %v5952_v54  ;;  %v7509_v54 = vld [vmem:[#allocation97_spill] sm:$0xff] }
 0x285   :  { %1726 = vmatpush.bf16.msrb.mxu1 %v7501_v3  ;;  %1752 = vmatpush.bf16.msra.mxu3 %v7502_v34  ;;  %v7512_v3 = vld [vmem:[#allocation94_spill] sm:$0xff]  ;;  %v7513_v34 = vld [vmem:[#allocation23_spill] sm:$0xff] }
 0x286   :  { %1864 = vmatpush.bf16.msrb.mxu0 %v7499_v30  ;;  %1890 = vmatpush.bf16.msra.mxu2 %v7500_v49  ;;  %v7510_v30 = vld [vmem:[#allocation93_spill] sm:$0xff]  ;;  %v7511_v49 = vld [vmem:[#allocation100_spill] sm:$0xff] }
 0x289   :  { %1727 = vmatpush.bf16.msrb.mxu1 %v7505_v7  ;;  %1753 = vmatpush.bf16.msra.mxu3 %v7506_v23  ;;  %v7515_v23 = vld [vmem:[#allocation104_spill] sm:$0xff]  ;;  %v7524_v7 = vld [vmem:[#allocation105_spill] sm:$0xff] }
 0x28a   :  { %1865 = vmatpush.bf16.msrb.mxu0 %v7503_v25  ;;  %1891 = vmatpush.bf16.msra.mxu2 %v7504_v22  ;;  %v7514_v25 = vld [vmem:[#allocation26_spill] sm:$0xff] }
 0x28b   :  { %v7525_v22 = vld [vmem:[#allocation38_spill] sm:$0xff] }
 0x28d   :  { %1728 = vmatpush.bf16.msrb.mxu1 %v7509_v54  ;;  %1754 = vmatpush.bf16.msra.mxu3 %v7510_v30  ;;  %v7518_v54 = vld [vmem:[#allocation31_spill] sm:$0xff]  ;;  %v7519_v30 = vld [vmem:[#allocation108_spill] sm:$0xff] }
 0x28e   :  { %1866 = vmatpush.bf16.msrb.mxu0 %v7507_v53  ;;  %1892 = vmatpush.bf16.msra.mxu2 %v7508_v61  ;;  %v7516_v53 = vld [vmem:[#allocation96_spill] sm:$0xff]  ;;  %v7517_v61 = vld [vmem:[#allocation29_spill] sm:$0xff] }
 0x290   :  { %1729 = vmatmul.bf16.vlgmr.msrb.gmra.mxu1 %v5993_v31  ;;  %1755 = vmatmul.bf16.vlgmr.msra.gmra.mxu3 %v5993_v31 }
 0x291   :  { %1773 = vmatpush.bf16.msra.mxu1 %v7511_v49  ;;  %1799 = vmatpush.bf16.msrb.mxu3 %v7512_v3  ;;  %v7520_v49 = vld [vmem:[#allocation101_spill] sm:$0xff]  ;;  %v7521_v3 = vld [vmem:[#allocation34_spill] sm:$0xff] }
 0x292   :  { %1867 = vmatpush.bf16.msrb.mxu0 %v7513_v34  ;;  %1893 = vmatpush.bf16.msra.mxu2 %v7514_v25  ;;  %v7522_v34 = vld [vmem:[#allocation36_spill] sm:$0xff] }
 0x293   :  { %v7523_v25 = vld [vmem:[#allocation112_spill] sm:$0xff] }
 0x295   :  { %1774 = vmatpush.bf16.msra.mxu1 %v7515_v23  ;;  %1800 = vmatpush.bf16.msrb.mxu3 %v7516_v53  ;;  %v7526_v23 = vld [vmem:[#allocation40_spill] sm:$0xff]  ;;  %v7527_v53 = vld [vmem:[#allocation41_spill] sm:$0xff] }
 0x296   :  { %1868 = vmatpush.bf16.msrb.mxu0 %v7517_v61  ;;  %1894 = vmatpush.bf16.msra.mxu2 %v7518_v54  ;;  %v7528_v61 = vld [vmem:[#allocation43_spill] sm:$0xff]  ;;  %v7529_v54 = vld [vmem:[#allocation116_spill] sm:$0xff] }
 0x299   :  { %1775 = vmatpush.bf16.msra.mxu1 %v7519_v30  ;;  %1801 = vmatpush.bf16.msrb.mxu3 %v7520_v49  ;;  %v7530_v30 = vld [vmem:[#allocation109_spill] sm:$0xff] }
 0x29a   :  { %1869 = vmatpush.bf16.msrb.mxu0 %v7521_v3  ;;  %1895 = vmatpush.bf16.msra.mxu2 %v7522_v34  ;;  %v7531_v49 = vld [vmem:[#allocation45_spill] sm:$0xff]  ;;  %v7532_v3 = vld [vmem:[#allocation47_spill] sm:$0xff]  ;;  %v7533_v34 = vld [vmem:[#allocation120_spill] sm:$0xff] }
 0x29d   :  { %1776 = vmatpush.bf16.msra.mxu1 %v7523_v25  ;;  %1802 = vmatpush.bf16.msrb.mxu3 %v7524_v7  ;;  %v7534_v25 = vld [vmem:[#allocation113_spill] sm:$0xff] }
 0x29e   :  { %1870 = vmatpush.bf16.msrb.mxu0 %v7525_v22  ;;  %1896 = vmatpush.bf16.msra.mxu2 %v7526_v23  ;;  %v7535_v7 = vld [vmem:[#allocation49_spill] sm:$0xff]  ;;  %v7536_v22 = vld [vmem:[#allocation51_spill] sm:$0xff] }
 0x29f   :  { %v7537_v23 = vld [vmem:[#allocation123_spill] sm:$0xff] }
 0x2a1   :  { %1777 = vmatpush.bf16.msra.mxu1 %v7529_v54  ;;  %1803 = vmatpush.bf16.msrb.mxu3 %v7530_v30  ;;  %v7540_v54 = vld [vmem:[#allocation55_spill] sm:$0xff]  ;;  %v7541_v30 = vld [vmem:[#allocation124_spill] sm:$0xff] }
 0x2a2   :  { %1915 = vmatpush.bf16.msra.mxu0 %v7527_v53  ;;  %1941 = vmatpush.bf16.msrb.mxu2 %v7528_v61  ;;  %v7538_v53 = vld [vmem:[#allocation117_spill] sm:$0xff] }
 0x2a3   :  { %v7539_v61 = vld [vmem:[#allocation53_spill] sm:$0xff] }
 0x2a5   :  { %1778 = vmatpush.bf16.msra.mxu1 %v7533_v34  ;;  %1804 = vmatpush.bf16.msrb.mxu3 %v7534_v25  ;;  %v7544_v34 = vld [vmem:[#allocation7_spill] sm:$0xff]  ;;  %v7545_v25 = vld [vmem:[#allocation57_spill] sm:$0xff] }
 0x2a6   :  { %1916 = vmatpush.bf16.msra.mxu0 %v7531_v49  ;;  %1942 = vmatpush.bf16.msrb.mxu2 %v7532_v3  ;;  %v7542_v49 = vld [vmem:[#allocation121_spill] sm:$0xff] }
 0x2a7   :  { %v7543_v3 = vld [vmem:[#allocation9_spill] sm:$0xff] }
 0x2a9   :  { %1779 = vmatpush.bf16.msra.mxu1 %v7537_v23  ;;  %1805 = vmatpush.bf16.msrb.mxu3 %v7538_v53  ;;  %v7547_v53 = vld [vmem:[#allocation13_spill] sm:$0xff]  ;;  %v7556_v23 = vld [vmem:[#allocation20_spill] sm:$0xff] }
 0x2aa   :  { %1917 = vmatpush.bf16.msra.mxu0 %v7535_v7  ;;  %1943 = vmatpush.bf16.msrb.mxu2 %v7536_v22  ;;  %v7546_v7 = vld [vmem:[#allocation59_spill] sm:$0xff] }
 0x2ab   :  { %v7565_v22 = vld [vmem:[#allocation39_spill] sm:$0xff] }
 0x2ad   :  { %1780 = vmatpush.bf16.msra.mxu1 %v7541_v30  ;;  %1806 = vmatpush.bf16.msrb.mxu3 %v7542_v49  ;;  %v7550_v30 = vld [vmem:[#allocation67_spill] sm:$0xff]  ;;  %v7551_v49 = vld [vmem:[#allocation17_spill] sm:$0xff] }
 0x2ae   :  { %1918 = vmatpush.bf16.msra.mxu0 %v7539_v61  ;;  %1944 = vmatpush.bf16.msrb.mxu2 %v7540_v54  ;;  %v7548_v61 = vld [vmem:[#allocation11_spill] sm:$0xff] }
 0x2af   :  { %v7549_v54 = vld [vmem:[#allocation63_spill] sm:$0xff] }
 0x2b0   :  { %1781 = vmatmul.bf16.vlgmr.msra.gmra.mxu1 %v5993_v31  ;;  %1807 = vmatmul.bf16.vlgmr.msrb.gmra.mxu3 %v5993_v31  ;;  %v7557_v31 = vld [vmem:[#allocation74_spill] sm:$0xff] }
 0x2b1   :  { %1876 = vmatpush.bf16.msrb.mxu1 %v7543_v3  ;;  %1902 = vmatpush.bf16.msra.mxu3 %v7544_v34  ;;  %v7552_v3 = vld [vmem:[#allocation16_spill] sm:$0xff]  ;;  %v7553_v34 = vld [vmem:[#allocation70_spill] sm:$0xff] }
 0x2b2   :  { %1919 = vmatpush.bf16.msra.mxu0 %v7545_v25  ;;  %1945 = vmatpush.bf16.msrb.mxu2 %v7546_v7  ;;  %v7554_v25 = vld [vmem:[#allocation72_spill] sm:$0xff]  ;;  %v7555_v7 = vld [vmem:[#allocation21_spill] sm:$0xff] }
 0x2b5   :  { %1877 = vmatpush.bf16.msrb.mxu1 %v7547_v53  ;;  %1903 = vmatpush.bf16.msra.mxu3 %v7548_v61  ;;  %v7558_v53 = vld [vmem:[#allocation78_spill] sm:$0xff]  ;;  %v7559_v61 = vld [vmem:[#allocation25_spill] sm:$0xff] }
 0x2b6   :  { %1920 = vmatpush.bf16.msra.mxu0 %v7549_v54  ;;  %1946 = vmatpush.bf16.msrb.mxu2 %v7550_v30  ;;  %v7560_v54 = vld [vmem:[#allocation24_spill] sm:$0xff]  ;;  %v7561_v30 = vld [vmem:[#allocation30_spill] sm:$0xff] }
 0x2b9   :  { %1878 = vmatpush.bf16.msrb.mxu1 %v7551_v49  ;;  %1904 = vmatpush.bf16.msra.mxu3 %v7552_v3  ;;  %v7562_v49 = vld [vmem:[#allocation27_spill] sm:$0xff] }
 0x2ba   :  { %1921 = vmatpush.bf16.msra.mxu0 %v7553_v34  ;;  %1947 = vmatpush.bf16.msrb.mxu2 %v7554_v25  ;;  %v7563_v34 = vld [vmem:[#allocation35_spill] sm:$0xff]  ;;  %v7564_v25 = vld [vmem:[#allocation28_spill] sm:$0xff] }
 0x2bd   :  { %1879 = vmatpush.bf16.msrb.mxu1 %v7555_v7  ;;  %1905 = vmatpush.bf16.msra.mxu3 %v7556_v23  ;;  %v1613_v3 = vpop.f32.mrf.mxu0  ;;  %v7566_v23 = vld [vmem:[#allocation32_spill] sm:$0xff] }
 0x2be   :  { %1922 = vmatpush.bf16.msra.mxu0 %v7557_v31  ;;  %1948 = vmatpush.bf16.msrb.mxu2 %v7558_v53  ;;  %v7567_v53 = vld [vmem:[#allocation42_spill] sm:$0xff] }
 0x2c1   :  { %1880 = vmatpush.bf16.msrb.mxu1 %v7559_v61  ;;  %1906 = vmatpush.bf16.msra.mxu3 %v7560_v54  ;;  %v7568_v61 = vld [vmem:[#allocation33_spill] sm:$0xff]  ;;  %v7569_v54 = vld [vmem:[#allocation46_spill] sm:$0xff] }
 0x2c3   :  { %v1639_v7 = vpop.f32.mrf.mxu2 }
 0x2c5   :  { %1881 = vmatpush.bf16.msrb.mxu1 %v7561_v30  ;;  %1907 = vmatpush.bf16.msra.mxu3 %v7562_v49  ;;  %v1615_v31 = vpop.f32.mrf.mxu0  ;;  %v7570_v30 = vld [vmem:[#allocation37_spill] sm:$0xff] }
 0x2c9   :  { %1882 = vmatpush.bf16.msrb.mxu1 %v7563_v34  ;;  %1908 = vmatpush.bf16.msra.mxu3 %v7564_v25  ;;  %v7572_v34 = vld [vmem:[#allocation44_spill] sm:$0xff]  ;;  %v7573_v25 = vld [vmem:[#allocation54_spill] sm:$0xff] }
 0x2cb   :  { %v1641_v49 = vpop.f32.mrf.mxu2 }
 0x2cd   :  { %1883 = vmatpush.bf16.msrb.mxu1 %v7565_v22  ;;  %1909 = vmatpush.bf16.msra.mxu3 %v7566_v23  ;;  %v1665_v15 = vpop.f32.mrf.mxu0  ;;  %v7574_v22 = vld [vmem:[#allocation48_spill] sm:$0xff] }
 0x2d1   :  { %1928 = vmatpush.bf16.msra.mxu1 %v7567_v53  ;;  %1954 = vmatpush.bf16.msrb.mxu3 %v7568_v61  ;;  %v7576_v53 = vld [vmem:[#allocation52_spill] sm:$0xff]  ;;  %v7577_v61 = vld [vmem:[#allocation65_spill] sm:$0xff] }
 0x2d3   :  { %v1691_v23 = vpop.f32.mrf.mxu2 }
 0x2d5   :  { %1929 = vmatpush.bf16.msra.mxu1 %v7569_v54  ;;  %1955 = vmatpush.bf16.msrb.mxu3 %v7570_v30  ;;  %v1667_v31 = vpop.f32.mrf.mxu0  ;;  %v7578_v54 = vld [vmem:[#allocation56_spill] sm:$0xff] }
 0x2d9   :  { %1930 = vmatpush.bf16.msra.mxu1 %v7571_v16  ;;  %1956 = vmatpush.bf16.msrb.mxu3 %v7572_v34  ;;  %v7579_v16 = vld [vmem:[#allocation71_spill] sm:$0xff]  ;;  %v7580_v34 = vld [vmem:[#allocation60_spill] sm:$0xff] }
 0x2db   :  { %v1693_v49 = vpop.f32.mrf.mxu2 }
 0x2dd   :  { %1931 = vmatpush.bf16.msra.mxu1 %v7573_v25  ;;  %1957 = vmatpush.bf16.msrb.mxu3 %v7574_v22  ;;  %v6105_v30 = vpop.f32.mrf.mxu0  ;;  %v7581_v25 = vld [vmem:[#allocation76_spill] sm:$0xff] }
 0x2de   :  { %v7582_v22 = vld [vmem:[#allocation68_spill] sm:$0xff] }
 0x2e1   :  { %1932 = vmatpush.bf16.msra.mxu1 %v7575_v42  ;;  %1958 = vmatpush.bf16.msrb.mxu3 %v7576_v53 }
 0x2e3   :  { %v1743_v31 = vpop.f32.mrf.mxu2 }
 0x2e5   :  { %1933 = vmatpush.bf16.msra.mxu1 %v7577_v61  ;;  %1959 = vmatpush.bf16.msrb.mxu3 %v7578_v54  ;;  %v1719_v58 = vpop.f32.mrf.mxu0  ;;  %v7583_v61 = vld [vmem:[#allocation135_spill] sm:$0xff] }
 0x2e6   :  { %v171_v37 = vadd.f32 %v7583_v61, %v7380_v8 }
 0x2e9   :  { %1934 = vmatpush.bf16.msra.mxu1 %v7579_v16  ;;  %1960 = vmatpush.bf16.msrb.mxu3 %v7580_v34  ;;  %v142_v16 = vadd.f32 %v7584_v10, %v7381_v9 }
 0x2eb   :  { %v1745_v14 = vpop.f32.mrf.mxu2 }
 0x2ec   :  { %v7585_v14 = vld [vmem:[#allocation140_spill] sm:$0xff] }
 0x2ed   :  { %1935 = vmatpush.bf16.msra.mxu1 %v7581_v25  ;;  %1961 = vmatpush.bf16.msrb.mxu3 %v7582_v22  ;;  %v1626_v42 = vpop.f32.mrf.mxu1  ;;  %v200_v50 = vadd.f32 %v7585_v14, %v7382_v57 }
 0x2ee   :  { %v1627_v54 = vadd.f32 %v1626_v42, %v1613_v3 }
 0x2f0   :  { %v1839_v34 = vadd.f32 %v1627_v54, %v142_v16 }
 0x2f2   :  { %v1843_v29 = vmul.f32 0.5, %v1839_v34 }
 0x2f3   :  { %v1652_v53 = vpop.f32.mrf.mxu3 }
 0x2f4   :  { %v1653_v49 = vadd.f32 %v1652_v53, %v1639_v7 }
 0x2f5   :  { %v1628_v43 = vpop.f32.mrf.mxu1 }
 0x2f6   :  { %v1840_v6 = vadd.f32 %v1653_v49, %v171_v37  ;;  %v7586_v43 = vld [vmem:[#allocation128_spill] sm:$0xff] }
 0x2f7   :  { %v229_v3 = vadd.f32 %v7586_v43, %v7383_v18 }
 0x2f8   :  { %v1844_v41 = vmul.f32 0.5, %v1840_v6 }
 0x2fa   :  { %4203 = vtanh.f32 %v1844_v41 }
 0x2fb   :  { %v1654_v25 = vpop.f32.mrf.mxu3  ;;  %4205 = vtanh.f32 %v1843_v29 }
 0x2fd   :  { %v1678_v22 = vpop.f32.mrf.mxu1 }
 0x2fe   :  { %v1679_v58 = vadd.f32 %v1678_v22, %v1665_v15 }
 0x300   :  { %v1769_v62 = vpop.f32.mrf.mxu0  ;;  %v1841_v61 = vadd.f32 %v1679_v58, %v200_v50  ;;  %v4204_v53 = vpop.eup %4203 }
 0x301   :  { %v4206_v6 = vpop.eup %4205  ;;  %v1850_v34 = vmul.f32 0.5, %v4204_v53 }
 0x302   :  { %v1845_v7 = vmul.f32 0.5, %v1841_v61  ;;  %v1849_v15 = vmul.f32 0.5, %v4206_v6 }
 0x303   :  { %v1704_v42 = vpop.f32.mrf.mxu3  ;;  %v1853_v29 = vadd.f32 0.5, %v1850_v34 }
 0x304   :  { %v1705_v10 = vadd.f32 %v1704_v42, %v1691_v23  ;;  %v1852_v54 = vadd.f32 0.5, %v1849_v15 }
 0x305   :  { %v1680_v16 = vpop.f32.mrf.mxu1  ;;  %v1856_v14 = vmul.f32 %v1853_v29, %v5949_v46 }
 0x306   :  { %v1795_v37 = vpop.f32.mrf.mxu2  ;;  %v1842_v25 = vadd.f32 %v1705_v10, %v229_v3 }
 0x308   :  { %v1771_v41 = vpop.f32.mrf.mxu0  ;;  %4207 = vtanh.f32 %v1842_v25 }
 0x309   :  { %4209 = vtanh.f32 %v1845_v7 }
 0x30b   :  { %v1706_v22 = vpop.f32.mrf.mxu3 }
 0x30d   :  { %v1730_v49 = vpop.f32.mrf.mxu1 }
 0x30e   :  { %v1797_v50 = vpop.f32.mrf.mxu2  ;;  %v4208_v58 = vpop.eup %4207  ;;  %v1731_v7 = vadd.f32 %v1730_v49, %v6105_v30 }
 0x30f   :  { %v1857_v43 = vmul.f32 %v4208_v58, %v1852_v54  ;;  %v4210_v23 = vpop.eup %4209 }
 0x310   :  { %v1851_v61 = vmul.f32 0.5, %v4210_v23  ;;  %v1812_v15 = vadd.f32 %v1731_v7, %v7484_v0 }
 0x311   :  { %v6120_v42 = vadd.f32 %v1857_v43, %v1856_v14 }
 0x312   :  { %v1854_v10 = vadd.f32 0.5, %v1851_v61 }
 0x313   :  { %4211 = vtanh.f32 %v6120_v42  ;;  %v1756_v53 = vpop.f32.mrf.mxu3 }
 0x314   :  { %v1757_v46 = vadd.f32 %v1756_v53, %v1743_v31  ;;  %v1816_v31 = vmul.f32 0.5, %v1812_v15 }
 0x315   :  { %v1732_v3 = vpop.f32.mrf.mxu1 }
 0x316   :  { %v1813_v41 = vadd.f32 %v1757_v46, %v5778_v1 }
 0x318   :  { %v1817_v29 = vmul.f32 0.5, %v1813_v41 }
 0x319   :  { %v4212_v16 = vpop.eup %4211 }
 0x31a   :  { %v1860_v6 = vmul.f32 %v4212_v16, %v1854_v10  ;;  %4213 = vtanh.f32 %v1817_v29 }
 0x31b   :  { %v1758_v25 = vpop.f32.mrf.mxu3  ;;  %4215 = vtanh.f32 %v1816_v31 }
 0x31c   :  { %v6123_v34 = vpack.c.bf16 %v1860_v6, %v1860_v6 }
 0x31e   :  { %1871 = vmatmul.bf16.vlgmr.msrb.gmra.mxu0 %v6123_v34  ;;  %1897 = vmatmul.bf16.vlgmr.msra.gmra.mxu2 %v6123_v34 }
 0x31f   :  { %1967 = vmatpush.bf16.msrb.mxu0 %v7385_v11  ;;  %1993 = vmatpush.bf16.msra.mxu2 %v7386_v4 }
 0x320   :  { %v4214_v49 = vpop.eup %4213 }
 0x321   :  { %v4216_v43 = vpop.eup %4215 }
 0x322   :  { %v1822_v61 = vmul.f32 0.5, %v4216_v43  ;;  %v7594_v43 = vld [vmem:[#allocation87_spill] sm:$0xff] }
 0x323   :  { %1968 = vmatpush.bf16.msrb.mxu0 %v7388_v40  ;;  %1994 = vmatpush.bf16.msra.mxu2 %v7389_v24 }
 0x327   :  { %1969 = vmatpush.bf16.msrb.mxu0 %v7485_v60  ;;  %1995 = vmatpush.bf16.msra.mxu2 %v7486_v33 }
 0x32b   :  { %1970 = vmatpush.bf16.msrb.mxu0 %v7487_v27  ;;  %1996 = vmatpush.bf16.msra.mxu2 %v7488_v45 }
 0x32d   :  { %v1782_v22 = vpop.f32.mrf.mxu1 }
 0x32e   :  { %v1783_v30 = vadd.f32 %v1782_v22, %v1769_v62  ;;  %1923 = vmatmul.bf16.vlgmr.msra.gmra.mxu0 %v6123_v34  ;;  %1949 = vmatmul.bf16.vlgmr.msrb.gmra.mxu2 %v6123_v34  ;;  %v1823_v62 = vmul.f32 0.5, %v4214_v49  ;;  %v7587_v22 = vld [vmem:[#allocation73_spill] sm:$0xff] }
 0x32f   :  { %1971 = vmatpush.bf16.msrb.mxu0 %v7489_v39  ;;  %1997 = vmatpush.bf16.msra.mxu2 %v7396_v38  ;;  %v7591_v49 = vld [vmem:[#allocation81_spill] sm:$0xff] }
 0x330   :  { %v1814_v54 = vadd.f32 %v1783_v30, %v7490_v35  ;;  %v1826_v3 = vadd.f32 0.5, %v1823_v62  ;;  %v7588_v30 = vld [vmem:[#allocation126_spill] sm:$0xff]  ;;  %v7596_v62 = vld [vmem:[#allocation132_spill] sm:$0xff] }
 0x332   :  { %v1818_v53 = vmul.f32 0.5, %v1814_v54  ;;  %v1829_v6 = vmul.f32 %v1826_v3, %v5982_v56  ;;  %v7589_v54 = vld [vmem:[#allocation127_spill] sm:$0xff]  ;;  %v7599_v3 = vld [vmem:[#allocation10_spill] sm:$0xff] }
 0x333   :  { %v1808_v50 = vpop.f32.mrf.mxu3  ;;  %1972 = vmatpush.bf16.msrb.mxu0 %v7397_v12  ;;  %1998 = vmatpush.bf16.msra.mxu2 %v7398_v52 }
 0x334   :  { %v1809_v58 = vadd.f32 %v1808_v50, %v1795_v37  ;;  %v1825_v37 = vadd.f32 0.5, %v1822_v61  ;;  %v7590_v50 = vld [vmem:[#allocation85_spill] sm:$0xff]  ;;  %v7598_v61 = vld [vmem:[#allocation8_spill] sm:$0xff] }
 0x335   :  { %v1784_v14 = vpop.f32.mrf.mxu1 }
 0x336   :  { %v1815_v23 = vadd.f32 %v1809_v58, %v5799_v28  ;;  %v7592_v58 = vld [vmem:[#allocation129_spill] sm:$0xff]  ;;  %v7593_v14 = vld [vmem:[#allocation130_spill] sm:$0xff] }
 0x337   :  { %1973 = vmatpush.bf16.msrb.mxu0 %v5460_v2  ;;  %1999 = vmatpush.bf16.msra.mxu2 %v7399_v48 }
 0x338   :  { %4217 = vtanh.f32 %v1815_v23  ;;  %v7595_v23 = vld [vmem:[#allocation84_spill] sm:$0xff] }
 0x339   :  { %4219 = vtanh.f32 %v1818_v53  ;;  %v7597_v53 = vld [vmem:[#allocation133_spill] sm:$0xff] }
 0x33b   :  { %v1810_v10 = vpop.f32.mrf.mxu3  ;;  %1974 = vmatpush.bf16.msrb.mxu0 %v5501_v21  ;;  %2000 = vmatpush.bf16.msra.mxu2 %v5503_v20 }
 0x33c   :  { %v7600_v10 = vld [vmem:[#allocation89_spill] sm:$0xff] }
 0x33e   :  { %v4218_v16 = vpop.eup %4217  ;;  %1975 = vmatmul.bf16.vlgmr.msrb.gmra.mxu0 %v6123_v34  ;;  %2001 = vmatmul.bf16.vlgmr.msra.gmra.mxu2 %v6123_v34 }
 0x33f   :  { %v1830_v25 = vmul.f32 %v4218_v16, %v1825_v37  ;;  %2019 = vmatpush.bf16.msra.mxu0 %v5505_v5  ;;  %2045 = vmatpush.bf16.msrb.mxu2 %v5507_v26  ;;  %v4220_v46 = vpop.eup %4219  ;;  %v7601_v37 = vld [vmem:[#allocation86_spill] sm:$0xff]  ;;  %v7602_v16 = vld [vmem:[#allocation12_spill] sm:$0xff] }
 0x340   :  { %v1824_v41 = vmul.f32 0.5, %v4220_v46  ;;  %v7605_v46 = vld [vmem:[#allocation88_spill] sm:$0xff] }
 0x341   :  { %v6153_v7 = vadd.f32 %v1830_v25, %v1829_v6  ;;  %v7603_v6 = vld [vmem:[#allocation14_spill] sm:$0xff]  ;;  %v7604_v25 = vld [vmem:[#allocation92_spill] sm:$0xff] }
 0x342   :  { %v1827_v56 = vadd.f32 0.5, %v1824_v41  ;;  %v7606_v41 = vld [vmem:[#allocation15_spill] sm:$0xff] }
 0x343   :  { %4221 = vtanh.f32 %v6153_v7  ;;  %2020 = vmatpush.bf16.msra.mxu0 %v5530_v19  ;;  %2046 = vmatpush.bf16.msrb.mxu2 %v5532_v63 }
 0x347   :  { %2021 = vmatpush.bf16.msra.mxu0 %v5555_v51  ;;  %2047 = vmatpush.bf16.msrb.mxu2 %v5557_v13 }
 0x349   :  { %v4222_v15 = vpop.eup %4221 }
 0x34a   :  { %v1833_v29 = vmul.f32 %v4222_v15, %v1827_v56  ;;  %v7607_v56 = vld [vmem:[#allocation18_spill] sm:$0xff]  ;;  %v7608_v15 = vld [vmem:[#allocation95_spill] sm:$0xff] }
 0x34b   :  { %2022 = vmatpush.bf16.msra.mxu0 %v5576_v55  ;;  %2048 = vmatpush.bf16.msrb.mxu2 %v5578_v44 }
 0x34c   :  { %v6164_v31 = vpack.c.bf16 %v1833_v29, %v1833_v29  ;;  %v7609_v29 = vld [vmem:[#allocation90_spill] sm:$0xff] }
 0x34e   :  { %1884 = vmatmul.bf16.vlgmr.msrb.gmra.mxu1 %v6164_v31  ;;  %1910 = vmatmul.bf16.vlgmr.msra.gmra.mxu3 %v6164_v31 }
 0x34f   :  { %1980 = vmatpush.bf16.msrb.mxu1 %v7400_v59  ;;  %2006 = vmatpush.bf16.msra.mxu3 %v7401_v36 }
 0x350   :  { %2023 = vmatpush.bf16.msra.mxu0 %v5598_v32  ;;  %2049 = vmatpush.bf16.msrb.mxu2 %v5600_v47 }
 0x353   :  { %1981 = vmatpush.bf16.msrb.mxu1 %v7402_v17  ;;  %2007 = vmatpush.bf16.msra.mxu3 %v7587_v22 }
 0x354   :  { %2024 = vmatpush.bf16.msra.mxu0 %v7588_v30  ;;  %2050 = vmatpush.bf16.msrb.mxu2 %v7589_v54 }
 0x357   :  { %1982 = vmatpush.bf16.msrb.mxu1 %v7590_v50  ;;  %2008 = vmatpush.bf16.msra.mxu3 %v7591_v49 }
 0x358   :  { %2025 = vmatpush.bf16.msra.mxu0 %v7592_v58  ;;  %2051 = vmatpush.bf16.msrb.mxu2 %v7593_v14  ;;  %v7687_v58 = vld [vmem:[#allocation147_spill] sm:$0xff] }
 0x35b   :  { %1983 = vmatpush.bf16.msrb.mxu1 %v7594_v43  ;;  %2009 = vmatpush.bf16.msra.mxu3 %v7595_v23 }
 0x35c   :  { %2026 = vmatpush.bf16.msra.mxu0 %v7596_v62  ;;  %2052 = vmatpush.bf16.msrb.mxu2 %v7597_v53  ;;  %v7678_v53 = vld [vmem:[#allocation58_spill] sm:$0xff] }
 0x35e   :  { %1936 = vmatmul.bf16.vlgmr.msra.gmra.mxu1 %v6164_v31  ;;  %1962 = vmatmul.bf16.vlgmr.msrb.gmra.mxu3 %v6164_v31 }
 0x35f   :  { %1984 = vmatpush.bf16.msrb.mxu1 %v7600_v10  ;;  %2010 = vmatpush.bf16.msra.mxu3 %v7601_v37  ;;  %v7610_v37 = vld [vmem:[#allocation19_spill] sm:$0xff]  ;;  %v7611_v10 = vld [vmem:[#allocation22_spill] sm:$0xff] }
 0x360   :  { %2122 = vmatpush.bf16.msrb.mxu0 %v7598_v61  ;;  %2148 = vmatpush.bf16.msra.mxu2 %v7599_v3  ;;  %v7674_v61 = vld [vmem:[#allocation50_spill] sm:$0xff] }
 0x361   :  { %2027 = vmatmul.bf16.vlgmr.msra.gmra.mxu0 %v6123_v34  ;;  %2053 = vmatmul.bf16.vlgmr.msrb.gmra.mxu2 %v6123_v34  ;;  %v7612_v34 = vld [vmem:[#allocation97_spill] sm:$0xff] }
 0x363   :  { %1985 = vmatpush.bf16.msrb.mxu1 %v7604_v25  ;;  %2011 = vmatpush.bf16.msra.mxu3 %v7605_v46  ;;  %v7615_v25 = vld [vmem:[#allocation94_spill] sm:$0xff]  ;;  %v7616_v46 = vld [vmem:[#allocation23_spill] sm:$0xff] }
 0x364   :  { %2123 = vmatpush.bf16.msrb.mxu0 %v7602_v16  ;;  %2149 = vmatpush.bf16.msra.mxu2 %v7603_v6  ;;  %v7613_v16 = vld [vmem:[#allocation93_spill] sm:$0xff]  ;;  %v7614_v6 = vld [vmem:[#allocation100_spill] sm:$0xff] }
 0x367   :  { %1986 = vmatpush.bf16.msrb.mxu1 %v7608_v15  ;;  %2012 = vmatpush.bf16.msra.mxu3 %v7609_v29  ;;  %v7618_v29 = vld [vmem:[#allocation104_spill] sm:$0xff]  ;;  %v7627_v15 = vld [vmem:[#allocation105_spill] sm:$0xff] }
 0x368   :  { %2124 = vmatpush.bf16.msrb.mxu0 %v7606_v41  ;;  %2150 = vmatpush.bf16.msra.mxu2 %v7607_v56  ;;  %v7617_v41 = vld [vmem:[#allocation26_spill] sm:$0xff] }
 0x369   :  { %v7628_v56 = vld [vmem:[#allocation38_spill] sm:$0xff] }
 0x36b   :  { %1987 = vmatpush.bf16.msrb.mxu1 %v7612_v34  ;;  %2013 = vmatpush.bf16.msra.mxu3 %v7613_v16  ;;  %v7621_v34 = vld [vmem:[#allocation31_spill] sm:$0xff]  ;;  %v7622_v16 = vld [vmem:[#allocation108_spill] sm:$0xff] }
 0x36c   :  { %2125 = vmatpush.bf16.msrb.mxu0 %v7610_v37  ;;  %2151 = vmatpush.bf16.msra.mxu2 %v7611_v10  ;;  %v7619_v37 = vld [vmem:[#allocation96_spill] sm:$0xff]  ;;  %v7620_v10 = vld [vmem:[#allocation29_spill] sm:$0xff] }
 0x36e   :  { %1988 = vmatmul.bf16.vlgmr.msrb.gmra.mxu1 %v6164_v31  ;;  %2014 = vmatmul.bf16.vlgmr.msra.gmra.mxu3 %v6164_v31 }
 0x36f   :  { %2032 = vmatpush.bf16.msra.mxu1 %v7614_v6  ;;  %2058 = vmatpush.bf16.msrb.mxu3 %v7615_v25  ;;  %v7623_v6 = vld [vmem:[#allocation101_spill] sm:$0xff]  ;;  %v7624_v25 = vld [vmem:[#allocation34_spill] sm:$0xff] }
 0x370   :  { %2126 = vmatpush.bf16.msrb.mxu0 %v7616_v46  ;;  %2152 = vmatpush.bf16.msra.mxu2 %v7617_v41  ;;  %v7625_v46 = vld [vmem:[#allocation36_spill] sm:$0xff] }
 0x371   :  { %v7626_v41 = vld [vmem:[#allocation112_spill] sm:$0xff] }
 0x373   :  { %2033 = vmatpush.bf16.msra.mxu1 %v7618_v29  ;;  %2059 = vmatpush.bf16.msrb.mxu3 %v7619_v37  ;;  %v7629_v29 = vld [vmem:[#allocation40_spill] sm:$0xff]  ;;  %v7630_v37 = vld [vmem:[#allocation41_spill] sm:$0xff] }
 0x374   :  { %2127 = vmatpush.bf16.msrb.mxu0 %v7620_v10  ;;  %2153 = vmatpush.bf16.msra.mxu2 %v7621_v34  ;;  %v7631_v10 = vld [vmem:[#allocation43_spill] sm:$0xff]  ;;  %v7632_v34 = vld [vmem:[#allocation116_spill] sm:$0xff] }
 0x377   :  { %2034 = vmatpush.bf16.msra.mxu1 %v7622_v16  ;;  %2060 = vmatpush.bf16.msrb.mxu3 %v7623_v6  ;;  %v7633_v16 = vld [vmem:[#allocation109_spill] sm:$0xff] }
 0x378   :  { %2128 = vmatpush.bf16.msrb.mxu0 %v7624_v25  ;;  %2154 = vmatpush.bf16.msra.mxu2 %v7625_v46  ;;  %v7634_v6 = vld [vmem:[#allocation45_spill] sm:$0xff]  ;;  %v7635_v25 = vld [vmem:[#allocation47_spill] sm:$0xff]  ;;  %v7636_v46 = vld [vmem:[#allocation120_spill] sm:$0xff] }
 0x37b   :  { %2035 = vmatpush.bf16.msra.mxu1 %v7626_v41  ;;  %2061 = vmatpush.bf16.msrb.mxu3 %v7627_v15  ;;  %v7637_v41 = vld [vmem:[#allocation113_spill] sm:$0xff] }
 0x37c   :  { %2129 = vmatpush.bf16.msrb.mxu0 %v7628_v56  ;;  %2155 = vmatpush.bf16.msra.mxu2 %v7629_v29  ;;  %v7638_v15 = vld [vmem:[#allocation49_spill] sm:$0xff]  ;;  %v7639_v56 = vld [vmem:[#allocation51_spill] sm:$0xff] }
 0x37d   :  { %v7640_v29 = vld [vmem:[#allocation123_spill] sm:$0xff] }
 0x37f   :  { %2036 = vmatpush.bf16.msra.mxu1 %v7632_v34  ;;  %2062 = vmatpush.bf16.msrb.mxu3 %v7633_v16  ;;  %v7643_v34 = vld [vmem:[#allocation55_spill] sm:$0xff]  ;;  %v7644_v16 = vld [vmem:[#allocation124_spill] sm:$0xff] }
 0x380   :  { %2174 = vmatpush.bf16.msra.mxu0 %v7630_v37  ;;  %2200 = vmatpush.bf16.msrb.mxu2 %v7631_v10  ;;  %v7641_v37 = vld [vmem:[#allocation117_spill] sm:$0xff] }
 0x381   :  { %v7642_v10 = vld [vmem:[#allocation53_spill] sm:$0xff] }
 0x383   :  { %2037 = vmatpush.bf16.msra.mxu1 %v7636_v46  ;;  %2063 = vmatpush.bf16.msrb.mxu3 %v7637_v41  ;;  %v7647_v46 = vld [vmem:[#allocation7_spill] sm:$0xff]  ;;  %v7648_v41 = vld [vmem:[#allocation57_spill] sm:$0xff] }
 0x384   :  { %2175 = vmatpush.bf16.msra.mxu0 %v7634_v6  ;;  %2201 = vmatpush.bf16.msrb.mxu2 %v7635_v25  ;;  %v7645_v6 = vld [vmem:[#allocation121_spill] sm:$0xff] }
 0x385   :  { %v7646_v25 = vld [vmem:[#allocation9_spill] sm:$0xff] }
 0x387   :  { %2038 = vmatpush.bf16.msra.mxu1 %v7640_v29  ;;  %2064 = vmatpush.bf16.msrb.mxu3 %v7641_v37  ;;  %v7650_v37 = vld [vmem:[#allocation13_spill] sm:$0xff]  ;;  %v7659_v29 = vld [vmem:[#allocation20_spill] sm:$0xff] }
 0x388   :  { %2176 = vmatpush.bf16.msra.mxu0 %v7638_v15  ;;  %2202 = vmatpush.bf16.msrb.mxu2 %v7639_v56  ;;  %v7649_v15 = vld [vmem:[#allocation59_spill] sm:$0xff] }
 0x389   :  { %v7668_v56 = vld [vmem:[#allocation39_spill] sm:$0xff] }
 0x38b   :  { %2039 = vmatpush.bf16.msra.mxu1 %v7644_v16  ;;  %2065 = vmatpush.bf16.msrb.mxu3 %v7645_v6  ;;  %v7653_v16 = vld [vmem:[#allocation67_spill] sm:$0xff]  ;;  %v7654_v6 = vld [vmem:[#allocation17_spill] sm:$0xff] }
 0x38c   :  { %2177 = vmatpush.bf16.msra.mxu0 %v7642_v10  ;;  %2203 = vmatpush.bf16.msrb.mxu2 %v7643_v34  ;;  %v7651_v10 = vld [vmem:[#allocation11_spill] sm:$0xff] }
 0x38d   :  { %v7652_v34 = vld [vmem:[#allocation63_spill] sm:$0xff] }
 0x38e   :  { %2040 = vmatmul.bf16.vlgmr.msra.gmra.mxu1 %v6164_v31  ;;  %2066 = vmatmul.bf16.vlgmr.msrb.gmra.mxu3 %v6164_v31  ;;  %v7660_v31 = vld [vmem:[#allocation74_spill] sm:$0xff] }
 0x38f   :  { %2135 = vmatpush.bf16.msrb.mxu1 %v7646_v25  ;;  %2161 = vmatpush.bf16.msra.mxu3 %v7647_v46  ;;  %v7655_v25 = vld [vmem:[#allocation16_spill] sm:$0xff]  ;;  %v7656_v46 = vld [vmem:[#allocation70_spill] sm:$0xff] }
 0x390   :  { %2178 = vmatpush.bf16.msra.mxu0 %v7648_v41  ;;  %2204 = vmatpush.bf16.msrb.mxu2 %v7649_v15  ;;  %v7657_v41 = vld [vmem:[#allocation72_spill] sm:$0xff]  ;;  %v7658_v15 = vld [vmem:[#allocation21_spill] sm:$0xff] }
 0x393   :  { %2136 = vmatpush.bf16.msrb.mxu1 %v7650_v37  ;;  %2162 = vmatpush.bf16.msra.mxu3 %v7651_v10  ;;  %v7661_v37 = vld [vmem:[#allocation78_spill] sm:$0xff]  ;;  %v7662_v10 = vld [vmem:[#allocation25_spill] sm:$0xff] }
 0x394   :  { %2179 = vmatpush.bf16.msra.mxu0 %v7652_v34  ;;  %2205 = vmatpush.bf16.msrb.mxu2 %v7653_v16  ;;  %v7663_v34 = vld [vmem:[#allocation24_spill] sm:$0xff]  ;;  %v7664_v16 = vld [vmem:[#allocation30_spill] sm:$0xff] }
 0x397   :  { %2137 = vmatpush.bf16.msrb.mxu1 %v7654_v6  ;;  %2163 = vmatpush.bf16.msra.mxu3 %v7655_v25  ;;  %v7665_v6 = vld [vmem:[#allocation27_spill] sm:$0xff] }
 0x398   :  { %2180 = vmatpush.bf16.msra.mxu0 %v7656_v46  ;;  %2206 = vmatpush.bf16.msrb.mxu2 %v7657_v41  ;;  %v7666_v46 = vld [vmem:[#allocation35_spill] sm:$0xff]  ;;  %v7667_v41 = vld [vmem:[#allocation28_spill] sm:$0xff] }
 0x39b   :  { %2138 = vmatpush.bf16.msrb.mxu1 %v7658_v15  ;;  %2164 = vmatpush.bf16.msra.mxu3 %v7659_v29  ;;  %v1872_v25 = vpop.f32.mrf.mxu0  ;;  %v7669_v29 = vld [vmem:[#allocation32_spill] sm:$0xff] }
 0x39c   :  { %2181 = vmatpush.bf16.msra.mxu0 %v7660_v31  ;;  %2207 = vmatpush.bf16.msrb.mxu2 %v7661_v37  ;;  %v7670_v37 = vld [vmem:[#allocation42_spill] sm:$0xff] }
 0x39f   :  { %2139 = vmatpush.bf16.msrb.mxu1 %v7662_v10  ;;  %2165 = vmatpush.bf16.msra.mxu3 %v7663_v34  ;;  %v7671_v10 = vld [vmem:[#allocation33_spill] sm:$0xff]  ;;  %v7672_v34 = vld [vmem:[#allocation46_spill] sm:$0xff] }
 0x3a1   :  { %v1898_v15 = vpop.f32.mrf.mxu2 }
 0x3a3   :  { %2140 = vmatpush.bf16.msrb.mxu1 %v7664_v16  ;;  %2166 = vmatpush.bf16.msra.mxu3 %v7665_v6  ;;  %v1874_v31 = vpop.f32.mrf.mxu0  ;;  %v7673_v16 = vld [vmem:[#allocation37_spill] sm:$0xff] }
 0x3a7   :  { %2141 = vmatpush.bf16.msrb.mxu1 %v7666_v46  ;;  %2167 = vmatpush.bf16.msra.mxu3 %v7667_v41  ;;  %v7675_v46 = vld [vmem:[#allocation44_spill] sm:$0xff]  ;;  %v7676_v41 = vld [vmem:[#allocation54_spill] sm:$0xff] }
 0x3a9   :  { %v1900_v6 = vpop.f32.mrf.mxu2 }
 0x3ab   :  { %2142 = vmatpush.bf16.msrb.mxu1 %v7668_v56  ;;  %2168 = vmatpush.bf16.msra.mxu3 %v7669_v29  ;;  %v1924_v3 = vpop.f32.mrf.mxu0  ;;  %v7677_v56 = vld [vmem:[#allocation48_spill] sm:$0xff] }
 0x3af   :  { %2187 = vmatpush.bf16.msra.mxu1 %v7670_v37  ;;  %2213 = vmatpush.bf16.msrb.mxu3 %v7671_v10  ;;  %v7679_v37 = vld [vmem:[#allocation52_spill] sm:$0xff]  ;;  %v7680_v10 = vld [vmem:[#allocation65_spill] sm:$0xff] }
 0x3b1   :  { %v1950_v29 = vpop.f32.mrf.mxu2 }
 0x3b3   :  { %2188 = vmatpush.bf16.msra.mxu1 %v7672_v34  ;;  %2214 = vmatpush.bf16.msrb.mxu3 %v7673_v16  ;;  %v1926_v31 = vpop.f32.mrf.mxu0  ;;  %v7681_v34 = vld [vmem:[#allocation56_spill] sm:$0xff] }
 0x3b7   :  { %2189 = vmatpush.bf16.msra.mxu1 %v7674_v61  ;;  %2215 = vmatpush.bf16.msrb.mxu3 %v7675_v46  ;;  %v7682_v61 = vld [vmem:[#allocation71_spill] sm:$0xff]  ;;  %v7683_v46 = vld [vmem:[#allocation60_spill] sm:$0xff] }
 0x3b9   :  { %v1952_v6 = vpop.f32.mrf.mxu2 }
 0x3bb   :  { %2190 = vmatpush.bf16.msra.mxu1 %v7676_v41  ;;  %2216 = vmatpush.bf16.msrb.mxu3 %v7677_v56  ;;  %v6276_v16 = vpop.f32.mrf.mxu0  ;;  %v7684_v41 = vld [vmem:[#allocation76_spill] sm:$0xff] }
 0x3bc   :  { %v7685_v56 = vld [vmem:[#allocation68_spill] sm:$0xff] }
 0x3bf   :  { %2191 = vmatpush.bf16.msra.mxu1 %v7678_v53  ;;  %2217 = vmatpush.bf16.msrb.mxu3 %v7679_v37 }
 0x3c1   :  { %v2002_v31 = vpop.f32.mrf.mxu2 }
 0x3c3   :  { %2192 = vmatpush.bf16.msra.mxu1 %v7680_v10  ;;  %2218 = vmatpush.bf16.msrb.mxu3 %v7681_v34  ;;  %v1978_v62 = vpop.f32.mrf.mxu0  ;;  %v7686_v10 = vld [vmem:[#allocation138_spill] sm:$0xff] }
 0x3c4   :  { %v174_v43 = vadd.f32 %v7686_v10, %v7380_v8 }
 0x3c7   :  { %2193 = vmatpush.bf16.msra.mxu1 %v7682_v61  ;;  %2219 = vmatpush.bf16.msrb.mxu3 %v7683_v46  ;;  %v145_v61 = vadd.f32 %v7687_v58, %v7381_v9 }
 0x3c9   :  { %v2004_v23 = vpop.f32.mrf.mxu2 }
 0x3ca   :  { %v7688_v23 = vld [vmem:[#allocation144_spill] sm:$0xff] }
 0x3cb   :  { %2194 = vmatpush.bf16.msra.mxu1 %v7684_v41  ;;  %2220 = vmatpush.bf16.msrb.mxu3 %v7685_v56  ;;  %v1885_v53 = vpop.f32.mrf.mxu1  ;;  %v203_v22 = vadd.f32 %v7688_v23, %v7382_v57 }
 0x3cc   :  { %v1886_v34 = vadd.f32 %v1885_v53, %v1872_v25 }
 0x3ce   :  { %v2098_v46 = vadd.f32 %v1886_v34, %v145_v61 }
 0x3d0   :  { %v2102_v54 = vmul.f32 0.5, %v2098_v46 }
 0x3d1   :  { %v1911_v37 = vpop.f32.mrf.mxu3 }
 0x3d2   :  { %v1912_v6 = vadd.f32 %v1911_v37, %v1898_v15 }
 0x3d3   :  { %v1887_v14 = vpop.f32.mrf.mxu1 }
 0x3d4   :  { %v2099_v49 = vadd.f32 %v1912_v6, %v174_v43  ;;  %v7689_v14 = vld [vmem:[#allocation134_spill] sm:$0xff] }
 0x3d5   :  { %v232_v25 = vadd.f32 %v7689_v14, %v7383_v18 }
 0x3d6   :  { %v2103_v50 = vmul.f32 0.5, %v2099_v49 }
 0x3d8   :  { %4223 = vtanh.f32 %v2103_v50 }
 0x3d9   :  { %v1913_v41 = vpop.f32.mrf.mxu3  ;;  %4225 = vtanh.f32 %v2102_v54 }
 0x3db   :  { %v1937_v56 = vpop.f32.mrf.mxu1 }
 0x3dc   :  { %v1938_v62 = vadd.f32 %v1937_v56, %v1924_v3 }
 0x3de   :  { %v2028_v30 = vpop.f32.mrf.mxu0  ;;  %v2100_v10 = vadd.f32 %v1938_v62, %v203_v22  ;;  %v4224_v37 = vpop.eup %4223 }
 0x3df   :  { %v4226_v49 = vpop.eup %4225  ;;  %v2109_v46 = vmul.f32 0.5, %v4224_v37 }
 0x3e0   :  { %v2104_v15 = vmul.f32 0.5, %v2100_v10  ;;  %v2108_v3 = vmul.f32 0.5, %v4226_v49 }
 0x3e1   :  { %v1963_v53 = vpop.f32.mrf.mxu3  ;;  %v2112_v54 = vadd.f32 0.5, %v2109_v46 }
 0x3e2   :  { %v1964_v58 = vadd.f32 %v1963_v53, %v1950_v29  ;;  %v2111_v34 = vadd.f32 0.5, %v2108_v3 }
 0x3e3   :  { %v1939_v61 = vpop.f32.mrf.mxu1  ;;  %v2115_v23 = vmul.f32 %v2112_v54, %v6120_v42 }
 0x3e4   :  { %v2054_v43 = vpop.f32.mrf.mxu2  ;;  %v2101_v41 = vadd.f32 %v1964_v58, %v232_v25 }
 0x3e6   :  { %v2030_v50 = vpop.f32.mrf.mxu0  ;;  %4227 = vtanh.f32 %v2101_v41 }
 0x3e7   :  { %4229 = vtanh.f32 %v2104_v15 }
 0x3e9   :  { %v1965_v56 = vpop.f32.mrf.mxu3 }
 0x3eb   :  { %v1989_v6 = vpop.f32.mrf.mxu1 }
 0x3ec   :  { %v2056_v22 = vpop.f32.mrf.mxu2  ;;  %v4228_v62 = vpop.eup %4227  ;;  %v1990_v15 = vadd.f32 %v1989_v6, %v6276_v16 }
 0x3ed   :  { %v2116_v14 = vmul.f32 %v4228_v62, %v2111_v34  ;;  %v4230_v29 = vpop.eup %4229 }
 0x3ee   :  { %v2110_v10 = vmul.f32 0.5, %v4230_v29  ;;  %v2071_v3 = vadd.f32 %v1990_v15, %v7484_v0 }
 0x3ef   :  { %v6291_v53 = vadd.f32 %v2116_v14, %v2115_v23 }
 0x3f0   :  { %v2113_v58 = vadd.f32 0.5, %v2110_v10 }
 0x3f1   :  { %4231 = vtanh.f32 %v6291_v53  ;;  %v2015_v37 = vpop.f32.mrf.mxu3 }
 0x3f2   :  { %v2016_v42 = vadd.f32 %v2015_v37, %v2002_v31  ;;  %v2075_v31 = vmul.f32 0.5, %v2071_v3 }
 0x3f3   :  { %v1991_v25 = vpop.f32.mrf.mxu1 }
 0x3f4   :  { %v2072_v50 = vadd.f32 %v2016_v42, %v5778_v1 }
 0x3f6   :  { %v2076_v54 = vmul.f32 0.5, %v2072_v50 }
 0x3f7   :  { %v4232_v61 = vpop.eup %4231 }
 0x3f8   :  { %v2119_v49 = vmul.f32 %v4232_v61, %v2113_v58  ;;  %4233 = vtanh.f32 %v2076_v54 }
 0x3f9   :  { %v2017_v41 = vpop.f32.mrf.mxu3  ;;  %4235 = vtanh.f32 %v2075_v31 }
 0x3fa   :  { %v6294_v46 = vpack.c.bf16 %v2119_v49, %v2119_v49 }
 0x3fc   :  { %2130 = vmatmul.bf16.vlgmr.msrb.gmra.mxu0 %v6294_v46  ;;  %2156 = vmatmul.bf16.vlgmr.msra.gmra.mxu2 %v6294_v46 }
 0x3fd   :  { %2226 = vmatpush.bf16.msrb.mxu0 %v7385_v11  ;;  %2252 = vmatpush.bf16.msra.mxu2 %v7386_v4 }
 0x3fe   :  { %v4234_v6 = vpop.eup %4233 }
 0x3ff   :  { %v4236_v14 = vpop.eup %4235 }
 0x400   :  { %v2081_v10 = vmul.f32 0.5, %v4236_v14  ;;  %v7697_v14 = vld [vmem:[#allocation87_spill] sm:$0xff] }
 0x401   :  { %2227 = vmatpush.bf16.msrb.mxu0 %v7388_v40  ;;  %2253 = vmatpush.bf16.msra.mxu2 %v7389_v24 }
 0x405   :  { %2228 = vmatpush.bf16.msrb.mxu0 %v7485_v60  ;;  %2254 = vmatpush.bf16.msra.mxu2 %v7486_v33 }
 0x409   :  { %2229 = vmatpush.bf16.msrb.mxu0 %v7487_v27  ;;  %2255 = vmatpush.bf16.msra.mxu2 %v7488_v45 }
 0x40b   :  { %v2041_v56 = vpop.f32.mrf.mxu1 }
 0x40c   :  { %v2042_v16 = vadd.f32 %v2041_v56, %v2028_v30  ;;  %2182 = vmatmul.bf16.vlgmr.msra.gmra.mxu0 %v6294_v46  ;;  %2208 = vmatmul.bf16.vlgmr.msrb.gmra.mxu2 %v6294_v46  ;;  %v2082_v30 = vmul.f32 0.5, %v4234_v6  ;;  %v7690_v56 = vld [vmem:[#allocation73_spill] sm:$0xff] }
 0x40d   :  { %2230 = vmatpush.bf16.msrb.mxu0 %v7489_v39  ;;  %2256 = vmatpush.bf16.msra.mxu2 %v7396_v38  ;;  %v7694_v6 = vld [vmem:[#allocation81_spill] sm:$0xff] }
 0x40e   :  { %v2073_v34 = vadd.f32 %v2042_v16, %v7490_v35  ;;  %v2085_v25 = vadd.f32 0.5, %v2082_v30  ;;  %v7691_v16 = vld [vmem:[#allocation126_spill] sm:$0xff]  ;;  %v7699_v30 = vld [vmem:[#allocation132_spill] sm:$0xff] }
 0x410   :  { %v2077_v37 = vmul.f32 0.5, %v2073_v34  ;;  %v2088_v49 = vmul.f32 %v2085_v25, %v6153_v7  ;;  %v7692_v34 = vld [vmem:[#allocation127_spill] sm:$0xff]  ;;  %v7702_v25 = vld [vmem:[#allocation10_spill] sm:$0xff] }
 0x411   :  { %v2067_v22 = vpop.f32.mrf.mxu3  ;;  %2231 = vmatpush.bf16.msrb.mxu0 %v7397_v12  ;;  %2257 = vmatpush.bf16.msra.mxu2 %v7398_v52 }
 0x412   :  { %v2068_v62 = vadd.f32 %v2067_v22, %v2054_v43  ;;  %v2084_v43 = vadd.f32 0.5, %v2081_v10  ;;  %v7693_v22 = vld [vmem:[#allocation85_spill] sm:$0xff]  ;;  %v7701_v10 = vld [vmem:[#allocation8_spill] sm:$0xff] }
 0x413   :  { %v2043_v23 = vpop.f32.mrf.mxu1 }
 0x414   :  { %v2074_v29 = vadd.f32 %v2068_v62, %v5799_v28  ;;  %v7695_v62 = vld [vmem:[#allocation129_spill] sm:$0xff]  ;;  %v7696_v23 = vld [vmem:[#allocation130_spill] sm:$0xff] }
 0x415   :  { %2232 = vmatpush.bf16.msrb.mxu0 %v5460_v2  ;;  %2258 = vmatpush.bf16.msra.mxu2 %v7399_v48 }
 0x416   :  { %4237 = vtanh.f32 %v2074_v29  ;;  %v7698_v29 = vld [vmem:[#allocation84_spill] sm:$0xff] }
 0x417   :  { %4239 = vtanh.f32 %v2077_v37  ;;  %v7700_v37 = vld [vmem:[#allocation133_spill] sm:$0xff] }
 0x419   :  { %v2069_v58 = vpop.f32.mrf.mxu3  ;;  %2233 = vmatpush.bf16.msrb.mxu0 %v5501_v21  ;;  %2259 = vmatpush.bf16.msra.mxu2 %v5503_v20 }
 0x41a   :  { %v7703_v58 = vld [vmem:[#allocation89_spill] sm:$0xff] }
 0x41c   :  { %v4238_v61 = vpop.eup %4237  ;;  %2234 = vmatmul.bf16.vlgmr.msrb.gmra.mxu0 %v6294_v46  ;;  %2260 = vmatmul.bf16.vlgmr.msra.gmra.mxu2 %v6294_v46 }
 0x41d   :  { %v2089_v41 = vmul.f32 %v4238_v61, %v2084_v43  ;;  %2278 = vmatpush.bf16.msra.mxu0 %v5505_v5  ;;  %2304 = vmatpush.bf16.msrb.mxu2 %v5507_v26  ;;  %v4240_v42 = vpop.eup %4239  ;;  %v7704_v43 = vld [vmem:[#allocation86_spill] sm:$0xff]  ;;  %v7705_v61 = vld [vmem:[#allocation12_spill] sm:$0xff] }
 0x41e   :  { %v2083_v50 = vmul.f32 0.5, %v4240_v42  ;;  %v7708_v42 = vld [vmem:[#allocation88_spill] sm:$0xff] }
 0x41f   :  { %v6324_v15 = vadd.f32 %v2089_v41, %v2088_v49  ;;  %v7706_v49 = vld [vmem:[#allocation14_spill] sm:$0xff]  ;;  %v7707_v41 = vld [vmem:[#allocation92_spill] sm:$0xff] }
 0x420   :  { %v2086_v7 = vadd.f32 0.5, %v2083_v50  ;;  %v7709_v50 = vld [vmem:[#allocation15_spill] sm:$0xff] }
 0x421   :  { %4241 = vtanh.f32 %v6324_v15  ;;  %2279 = vmatpush.bf16.msra.mxu0 %v5530_v19  ;;  %2305 = vmatpush.bf16.msrb.mxu2 %v5532_v63 }
 0x425   :  { %2280 = vmatpush.bf16.msra.mxu0 %v5555_v51  ;;  %2306 = vmatpush.bf16.msrb.mxu2 %v5557_v13 }
 0x427   :  { %v4242_v3 = vpop.eup %4241 }
 0x428   :  { %v2092_v54 = vmul.f32 %v4242_v3, %v2086_v7  ;;  %v7710_v7 = vld [vmem:[#allocation18_spill] sm:$0xff]  ;;  %v7711_v3 = vld [vmem:[#allocation95_spill] sm:$0xff] }
 0x429   :  { %2281 = vmatpush.bf16.msra.mxu0 %v5576_v55  ;;  %2307 = vmatpush.bf16.msrb.mxu2 %v5578_v44 }
 0x42a   :  { %v6335_v31 = vpack.c.bf16 %v2092_v54, %v2092_v54  ;;  %v7712_v54 = vld [vmem:[#allocation90_spill] sm:$0xff] }
 0x42c   :  { %2143 = vmatmul.bf16.vlgmr.msrb.gmra.mxu1 %v6335_v31  ;;  %2169 = vmatmul.bf16.vlgmr.msra.gmra.mxu3 %v6335_v31 }
 0x42d   :  { %2239 = vmatpush.bf16.msrb.mxu1 %v7400_v59  ;;  %2265 = vmatpush.bf16.msra.mxu3 %v7401_v36 }
 0x42e   :  { %2282 = vmatpush.bf16.msra.mxu0 %v5598_v32  ;;  %2308 = vmatpush.bf16.msrb.mxu2 %v5600_v47 }
 0x431   :  { %2240 = vmatpush.bf16.msrb.mxu1 %v7402_v17  ;;  %2266 = vmatpush.bf16.msra.mxu3 %v7690_v56 }
 0x432   :  { %2283 = vmatpush.bf16.msra.mxu0 %v7691_v16  ;;  %2309 = vmatpush.bf16.msrb.mxu2 %v7692_v34 }
 0x435   :  { %2241 = vmatpush.bf16.msrb.mxu1 %v7693_v22  ;;  %2267 = vmatpush.bf16.msra.mxu3 %v7694_v6 }
 0x436   :  { %2284 = vmatpush.bf16.msra.mxu0 %v7695_v62  ;;  %2310 = vmatpush.bf16.msrb.mxu2 %v7696_v23  ;;  %v7790_v62 = vld [vmem:[#allocation149_spill] sm:$0xff] }
 0x439   :  { %2242 = vmatpush.bf16.msrb.mxu1 %v7697_v14  ;;  %2268 = vmatpush.bf16.msra.mxu3 %v7698_v29 }
 0x43a   :  { %2285 = vmatpush.bf16.msra.mxu0 %v7699_v30  ;;  %2311 = vmatpush.bf16.msrb.mxu2 %v7700_v37  ;;  %v7781_v37 = vld [vmem:[#allocation58_spill] sm:$0xff] }
 0x43c   :  { %2195 = vmatmul.bf16.vlgmr.msra.gmra.mxu1 %v6335_v31  ;;  %2221 = vmatmul.bf16.vlgmr.msrb.gmra.mxu3 %v6335_v31 }
 0x43d   :  { %2243 = vmatpush.bf16.msrb.mxu1 %v7703_v58  ;;  %2269 = vmatpush.bf16.msra.mxu3 %v7704_v43  ;;  %v7713_v43 = vld [vmem:[#allocation19_spill] sm:$0xff]  ;;  %v7714_v58 = vld [vmem:[#allocation22_spill] sm:$0xff] }
 0x43e   :  { %2381 = vmatpush.bf16.msrb.mxu0 %v7701_v10  ;;  %2407 = vmatpush.bf16.msra.mxu2 %v7702_v25  ;;  %v7777_v10 = vld [vmem:[#allocation50_spill] sm:$0xff] }
 0x43f   :  { %2286 = vmatmul.bf16.vlgmr.msra.gmra.mxu0 %v6294_v46  ;;  %2312 = vmatmul.bf16.vlgmr.msrb.gmra.mxu2 %v6294_v46  ;;  %v7715_v46 = vld [vmem:[#allocation97_spill] sm:$0xff] }
 0x441   :  { %2244 = vmatpush.bf16.msrb.mxu1 %v7707_v41  ;;  %2270 = vmatpush.bf16.msra.mxu3 %v7708_v42  ;;  %v7718_v41 = vld [vmem:[#allocation94_spill] sm:$0xff]  ;;  %v7719_v42 = vld [vmem:[#allocation23_spill] sm:$0xff] }
 0x442   :  { %2382 = vmatpush.bf16.msrb.mxu0 %v7705_v61  ;;  %2408 = vmatpush.bf16.msra.mxu2 %v7706_v49  ;;  %v7716_v61 = vld [vmem:[#allocation93_spill] sm:$0xff]  ;;  %v7717_v49 = vld [vmem:[#allocation100_spill] sm:$0xff] }
 0x445   :  { %2245 = vmatpush.bf16.msrb.mxu1 %v7711_v3  ;;  %2271 = vmatpush.bf16.msra.mxu3 %v7712_v54  ;;  %v7721_v54 = vld [vmem:[#allocation104_spill] sm:$0xff]  ;;  %v7730_v3 = vld [vmem:[#allocation105_spill] sm:$0xff] }
 0x446   :  { %2383 = vmatpush.bf16.msrb.mxu0 %v7709_v50  ;;  %2409 = vmatpush.bf16.msra.mxu2 %v7710_v7  ;;  %v7720_v50 = vld [vmem:[#allocation26_spill] sm:$0xff] }
 0x447   :  { %v7731_v7 = vld [vmem:[#allocation38_spill] sm:$0xff] }
 0x449   :  { %2246 = vmatpush.bf16.msrb.mxu1 %v7715_v46  ;;  %2272 = vmatpush.bf16.msra.mxu3 %v7716_v61  ;;  %v7724_v46 = vld [vmem:[#allocation31_spill] sm:$0xff]  ;;  %v7725_v61 = vld [vmem:[#allocation108_spill] sm:$0xff] }
 0x44a   :  { %2384 = vmatpush.bf16.msrb.mxu0 %v7713_v43  ;;  %2410 = vmatpush.bf16.msra.mxu2 %v7714_v58  ;;  %v7722_v43 = vld [vmem:[#allocation96_spill] sm:$0xff]  ;;  %v7723_v58 = vld [vmem:[#allocation29_spill] sm:$0xff] }
 0x44c   :  { %2247 = vmatmul.bf16.vlgmr.msrb.gmra.mxu1 %v6335_v31  ;;  %2273 = vmatmul.bf16.vlgmr.msra.gmra.mxu3 %v6335_v31 }
 0x44d   :  { %2291 = vmatpush.bf16.msra.mxu1 %v7717_v49  ;;  %2317 = vmatpush.bf16.msrb.mxu3 %v7718_v41  ;;  %v7726_v49 = vld [vmem:[#allocation101_spill] sm:$0xff]  ;;  %v7727_v41 = vld [vmem:[#allocation34_spill] sm:$0xff] }
 0x44e   :  { %2385 = vmatpush.bf16.msrb.mxu0 %v7719_v42  ;;  %2411 = vmatpush.bf16.msra.mxu2 %v7720_v50  ;;  %v7728_v42 = vld [vmem:[#allocation36_spill] sm:$0xff] }
 0x44f   :  { %v7729_v50 = vld [vmem:[#allocation112_spill] sm:$0xff] }
 0x451   :  { %2292 = vmatpush.bf16.msra.mxu1 %v7721_v54  ;;  %2318 = vmatpush.bf16.msrb.mxu3 %v7722_v43  ;;  %v7732_v54 = vld [vmem:[#allocation40_spill] sm:$0xff]  ;;  %v7733_v43 = vld [vmem:[#allocation41_spill] sm:$0xff] }
 0x452   :  { %2386 = vmatpush.bf16.msrb.mxu0 %v7723_v58  ;;  %2412 = vmatpush.bf16.msra.mxu2 %v7724_v46  ;;  %v7734_v58 = vld [vmem:[#allocation43_spill] sm:$0xff]  ;;  %v7735_v46 = vld [vmem:[#allocation116_spill] sm:$0xff] }
 0x455   :  { %2293 = vmatpush.bf16.msra.mxu1 %v7725_v61  ;;  %2319 = vmatpush.bf16.msrb.mxu3 %v7726_v49  ;;  %v7736_v61 = vld [vmem:[#allocation109_spill] sm:$0xff] }
 0x456   :  { %2387 = vmatpush.bf16.msrb.mxu0 %v7727_v41  ;;  %2413 = vmatpush.bf16.msra.mxu2 %v7728_v42  ;;  %v7737_v49 = vld [vmem:[#allocation45_spill] sm:$0xff]  ;;  %v7738_v41 = vld [vmem:[#allocation47_spill] sm:$0xff]  ;;  %v7739_v42 = vld [vmem:[#allocation120_spill] sm:$0xff] }
 0x459   :  { %2294 = vmatpush.bf16.msra.mxu1 %v7729_v50  ;;  %2320 = vmatpush.bf16.msrb.mxu3 %v7730_v3  ;;  %v7740_v50 = vld [vmem:[#allocation113_spill] sm:$0xff] }
 0x45a   :  { %2388 = vmatpush.bf16.msrb.mxu0 %v7731_v7  ;;  %2414 = vmatpush.bf16.msra.mxu2 %v7732_v54  ;;  %v7741_v3 = vld [vmem:[#allocation49_spill] sm:$0xff]  ;;  %v7742_v7 = vld [vmem:[#allocation51_spill] sm:$0xff] }
 0x45b   :  { %v7743_v54 = vld [vmem:[#allocation123_spill] sm:$0xff] }
 0x45d   :  { %2295 = vmatpush.bf16.msra.mxu1 %v7735_v46  ;;  %2321 = vmatpush.bf16.msrb.mxu3 %v7736_v61  ;;  %v7746_v46 = vld [vmem:[#allocation55_spill] sm:$0xff]  ;;  %v7747_v61 = vld [vmem:[#allocation124_spill] sm:$0xff] }
 0x45e   :  { %2433 = vmatpush.bf16.msra.mxu0 %v7733_v43  ;;  %2459 = vmatpush.bf16.msrb.mxu2 %v7734_v58  ;;  %v7744_v43 = vld [vmem:[#allocation117_spill] sm:$0xff] }
 0x45f   :  { %v7745_v58 = vld [vmem:[#allocation53_spill] sm:$0xff] }
 0x461   :  { %2296 = vmatpush.bf16.msra.mxu1 %v7739_v42  ;;  %2322 = vmatpush.bf16.msrb.mxu3 %v7740_v50  ;;  %v7750_v42 = vld [vmem:[#allocation7_spill] sm:$0xff]  ;;  %v7751_v50 = vld [vmem:[#allocation57_spill] sm:$0xff] }
 0x462   :  { %2434 = vmatpush.bf16.msra.mxu0 %v7737_v49  ;;  %2460 = vmatpush.bf16.msrb.mxu2 %v7738_v41  ;;  %v7748_v49 = vld [vmem:[#allocation121_spill] sm:$0xff] }
 0x463   :  { %v7749_v41 = vld [vmem:[#allocation9_spill] sm:$0xff] }
 0x465   :  { %2297 = vmatpush.bf16.msra.mxu1 %v7743_v54  ;;  %2323 = vmatpush.bf16.msrb.mxu3 %v7744_v43  ;;  %v7753_v43 = vld [vmem:[#allocation13_spill] sm:$0xff]  ;;  %v7762_v54 = vld [vmem:[#allocation20_spill] sm:$0xff] }
 0x466   :  { %2435 = vmatpush.bf16.msra.mxu0 %v7741_v3  ;;  %2461 = vmatpush.bf16.msrb.mxu2 %v7742_v7  ;;  %v7752_v3 = vld [vmem:[#allocation59_spill] sm:$0xff] }
 0x467   :  { %v7771_v7 = vld [vmem:[#allocation39_spill] sm:$0xff] }
 0x469   :  { %2298 = vmatpush.bf16.msra.mxu1 %v7747_v61  ;;  %2324 = vmatpush.bf16.msrb.mxu3 %v7748_v49  ;;  %v7756_v61 = vld [vmem:[#allocation67_spill] sm:$0xff]  ;;  %v7757_v49 = vld [vmem:[#allocation17_spill] sm:$0xff] }
 0x46a   :  { %2436 = vmatpush.bf16.msra.mxu0 %v7745_v58  ;;  %2462 = vmatpush.bf16.msrb.mxu2 %v7746_v46  ;;  %v7754_v58 = vld [vmem:[#allocation11_spill] sm:$0xff] }
 0x46b   :  { %v7755_v46 = vld [vmem:[#allocation63_spill] sm:$0xff] }
 0x46c   :  { %2299 = vmatmul.bf16.vlgmr.msra.gmra.mxu1 %v6335_v31  ;;  %2325 = vmatmul.bf16.vlgmr.msrb.gmra.mxu3 %v6335_v31  ;;  %v7763_v31 = vld [vmem:[#allocation74_spill] sm:$0xff] }
 0x46d   :  { %2394 = vmatpush.bf16.msrb.mxu1 %v7749_v41  ;;  %2420 = vmatpush.bf16.msra.mxu3 %v7750_v42  ;;  %v7758_v41 = vld [vmem:[#allocation16_spill] sm:$0xff]  ;;  %v7759_v42 = vld [vmem:[#allocation70_spill] sm:$0xff] }
 0x46e   :  { %2437 = vmatpush.bf16.msra.mxu0 %v7751_v50  ;;  %2463 = vmatpush.bf16.msrb.mxu2 %v7752_v3  ;;  %v7760_v50 = vld [vmem:[#allocation72_spill] sm:$0xff]  ;;  %v7761_v3 = vld [vmem:[#allocation21_spill] sm:$0xff] }
 0x471   :  { %2395 = vmatpush.bf16.msrb.mxu1 %v7753_v43  ;;  %2421 = vmatpush.bf16.msra.mxu3 %v7754_v58  ;;  %v7764_v43 = vld [vmem:[#allocation78_spill] sm:$0xff]  ;;  %v7765_v58 = vld [vmem:[#allocation25_spill] sm:$0xff] }
 0x472   :  { %2438 = vmatpush.bf16.msra.mxu0 %v7755_v46  ;;  %2464 = vmatpush.bf16.msrb.mxu2 %v7756_v61  ;;  %v7766_v46 = vld [vmem:[#allocation24_spill] sm:$0xff]  ;;  %v7767_v61 = vld [vmem:[#allocation30_spill] sm:$0xff] }
 0x475   :  { %2396 = vmatpush.bf16.msrb.mxu1 %v7757_v49  ;;  %2422 = vmatpush.bf16.msra.mxu3 %v7758_v41  ;;  %v7768_v49 = vld [vmem:[#allocation27_spill] sm:$0xff] }
 0x476   :  { %2439 = vmatpush.bf16.msra.mxu0 %v7759_v42  ;;  %2465 = vmatpush.bf16.msrb.mxu2 %v7760_v50  ;;  %v7769_v42 = vld [vmem:[#allocation35_spill] sm:$0xff]  ;;  %v7770_v50 = vld [vmem:[#allocation28_spill] sm:$0xff] }
 0x479   :  { %2397 = vmatpush.bf16.msrb.mxu1 %v7761_v3  ;;  %2423 = vmatpush.bf16.msra.mxu3 %v7762_v54  ;;  %v2131_v41 = vpop.f32.mrf.mxu0  ;;  %v7772_v54 = vld [vmem:[#allocation32_spill] sm:$0xff] }
 0x47a   :  { %2440 = vmatpush.bf16.msra.mxu0 %v7763_v31  ;;  %2466 = vmatpush.bf16.msrb.mxu2 %v7764_v43  ;;  %v7773_v43 = vld [vmem:[#allocation42_spill] sm:$0xff] }
 0x47d   :  { %2398 = vmatpush.bf16.msrb.mxu1 %v7765_v58  ;;  %2424 = vmatpush.bf16.msra.mxu3 %v7766_v46  ;;  %v7774_v58 = vld [vmem:[#allocation33_spill] sm:$0xff]  ;;  %v7775_v46 = vld [vmem:[#allocation46_spill] sm:$0xff] }
 0x47f   :  { %v2157_v3 = vpop.f32.mrf.mxu2 }
 0x481   :  { %2399 = vmatpush.bf16.msrb.mxu1 %v7767_v61  ;;  %2425 = vmatpush.bf16.msra.mxu3 %v7768_v49  ;;  %v2133_v31 = vpop.f32.mrf.mxu0  ;;  %v7776_v61 = vld [vmem:[#allocation37_spill] sm:$0xff] }
 0x485   :  { %2400 = vmatpush.bf16.msrb.mxu1 %v7769_v42  ;;  %2426 = vmatpush.bf16.msra.mxu3 %v7770_v50  ;;  %v7778_v42 = vld [vmem:[#allocation44_spill] sm:$0xff]  ;;  %v7779_v50 = vld [vmem:[#allocation54_spill] sm:$0xff] }
 0x487   :  { %v2159_v49 = vpop.f32.mrf.mxu2 }
 0x489   :  { %2401 = vmatpush.bf16.msrb.mxu1 %v7771_v7  ;;  %2427 = vmatpush.bf16.msra.mxu3 %v7772_v54  ;;  %v2183_v25 = vpop.f32.mrf.mxu0  ;;  %v7780_v7 = vld [vmem:[#allocation48_spill] sm:$0xff] }
 0x48d   :  { %2446 = vmatpush.bf16.msra.mxu1 %v7773_v43  ;;  %2472 = vmatpush.bf16.msrb.mxu3 %v7774_v58  ;;  %v7782_v43 = vld [vmem:[#allocation52_spill] sm:$0xff]  ;;  %v7783_v58 = vld [vmem:[#allocation65_spill] sm:$0xff] }
 0x48f   :  { %v2209_v54 = vpop.f32.mrf.mxu2 }
 0x491   :  { %2447 = vmatpush.bf16.msra.mxu1 %v7775_v46  ;;  %2473 = vmatpush.bf16.msrb.mxu3 %v7776_v61  ;;  %v2185_v31 = vpop.f32.mrf.mxu0  ;;  %v7784_v46 = vld [vmem:[#allocation56_spill] sm:$0xff] }
 0x495   :  { %2448 = vmatpush.bf16.msra.mxu1 %v7777_v10  ;;  %2474 = vmatpush.bf16.msrb.mxu3 %v7778_v42  ;;  %v7785_v10 = vld [vmem:[#allocation71_spill] sm:$0xff]  ;;  %v7786_v42 = vld [vmem:[#allocation60_spill] sm:$0xff] }
 0x497   :  { %v2211_v49 = vpop.f32.mrf.mxu2 }
 0x499   :  { %2449 = vmatpush.bf16.msra.mxu1 %v7779_v50  ;;  %2475 = vmatpush.bf16.msrb.mxu3 %v7780_v7  ;;  %v6447_v61 = vpop.f32.mrf.mxu0  ;;  %v7787_v50 = vld [vmem:[#allocation76_spill] sm:$0xff] }
 0x49a   :  { %v7788_v7 = vld [vmem:[#allocation68_spill] sm:$0xff] }
 0x49d   :  { %2450 = vmatpush.bf16.msra.mxu1 %v7781_v37  ;;  %2476 = vmatpush.bf16.msrb.mxu3 %v7782_v43 }
 0x49f   :  { %v2261_v31 = vpop.f32.mrf.mxu2 }
 0x4a1   :  { %2451 = vmatpush.bf16.msra.mxu1 %v7783_v58  ;;  %2477 = vmatpush.bf16.msrb.mxu3 %v7784_v46  ;;  %v2237_v30 = vpop.f32.mrf.mxu0  ;;  %v7789_v58 = vld [vmem:[#allocation141_spill] sm:$0xff] }
 0x4a2   :  { %v176_v14 = vadd.f32 %v7789_v58, %v7380_v8 }
 0x4a5   :  { %2452 = vmatpush.bf16.msra.mxu1 %v7785_v10  ;;  %2478 = vmatpush.bf16.msrb.mxu3 %v7786_v42  ;;  %v147_v10 = vadd.f32 %v7790_v62, %v7381_v9 }
 0x4a7   :  { %v2263_v29 = vpop.f32.mrf.mxu2 }
 0x4a8   :  { %v7791_v29 = vld [vmem:[#allocation146_spill] sm:$0xff] }
 0x4a9   :  { %2453 = vmatpush.bf16.msra.mxu1 %v7787_v50  ;;  %2479 = vmatpush.bf16.msrb.mxu3 %v7788_v7  ;;  %v2144_v37 = vpop.f32.mrf.mxu1  ;;  %v205_v56 = vadd.f32 %v7791_v29, %v7382_v57 }
 0x4aa   :  { %v2145_v46 = vadd.f32 %v2144_v37, %v2131_v41 }
 0x4ac   :  { %v2357_v42 = vadd.f32 %v2145_v46, %v147_v10 }
 0x4ae   :  { %v2361_v34 = vmul.f32 0.5, %v2357_v42 }
 0x4af   :  { %v2170_v43 = vpop.f32.mrf.mxu3 }
 0x4b0   :  { %v2171_v49 = vadd.f32 %v2170_v43, %v2157_v3 }
 0x4b1   :  { %v2146_v23 = vpop.f32.mrf.mxu1 }
 0x4b2   :  { %v2358_v6 = vadd.f32 %v2171_v49, %v176_v14  ;;  %v7792_v23 = vld [vmem:[#allocation136_spill] sm:$0xff] }
 0x4b3   :  { %v234_v41 = vadd.f32 %v7792_v23, %v7383_v18 }
 0x4b4   :  { %v2362_v22 = vmul.f32 0.5, %v2358_v6 }
 0x4b6   :  { %4243 = vtanh.f32 %v2362_v22 }
 0x4b7   :  { %v2172_v50 = vpop.f32.mrf.mxu3  ;;  %4245 = vtanh.f32 %v2361_v34 }
 0x4b9   :  { %v2196_v7 = vpop.f32.mrf.mxu1 }
 0x4ba   :  { %v2197_v30 = vadd.f32 %v2196_v7, %v2183_v25 }
 0x4bc   :  { %v2287_v16 = vpop.f32.mrf.mxu0  ;;  %v2359_v58 = vadd.f32 %v2197_v30, %v205_v56  ;;  %v4244_v43 = vpop.eup %4243 }
 0x4bd   :  { %v4246_v6 = vpop.eup %4245  ;;  %v2368_v42 = vmul.f32 0.5, %v4244_v43 }
 0x4be   :  { %v2363_v3 = vmul.f32 0.5, %v2359_v58  ;;  %v2367_v25 = vmul.f32 0.5, %v4246_v6 }
 0x4bf   :  { %v2222_v37 = vpop.f32.mrf.mxu3  ;;  %v2371_v34 = vadd.f32 0.5, %v2368_v42 }
 0x4c0   :  { %v2223_v62 = vadd.f32 %v2222_v37, %v2209_v54  ;;  %v2370_v46 = vadd.f32 0.5, %v2367_v25 }
 0x4c1   :  { %v2198_v10 = vpop.f32.mrf.mxu1  ;;  %v2374_v29 = vmul.f32 %v2371_v34, %v6291_v53 }
 0x4c2   :  { %v2313_v14 = vpop.f32.mrf.mxu2  ;;  %v2360_v50 = vadd.f32 %v2223_v62, %v234_v41 }
 0x4c4   :  { %v2289_v22 = vpop.f32.mrf.mxu0  ;;  %4247 = vtanh.f32 %v2360_v50 }
 0x4c5   :  { %4249 = vtanh.f32 %v2363_v3 }
 0x4c7   :  { %v2224_v7 = vpop.f32.mrf.mxu3 }
 0x4c9   :  { %v2248_v49 = vpop.f32.mrf.mxu1 }
 0x4ca   :  { %v2315_v56 = vpop.f32.mrf.mxu2  ;;  %v4248_v30 = vpop.eup %4247  ;;  %v2249_v3 = vadd.f32 %v2248_v49, %v6447_v61 }
 0x4cb   :  { %v2375_v23 = vmul.f32 %v4248_v30, %v2370_v46  ;;  %v4250_v54 = vpop.eup %4249 }
 0x4cc   :  { %v2369_v58 = vmul.f32 0.5, %v4250_v54  ;;  %v2330_v25 = vadd.f32 %v2249_v3, %v7484_v0 }
 0x4cd   :  { %v6462_v37 = vadd.f32 %v2375_v23, %v2374_v29 }
 0x4ce   :  { %v2372_v62 = vadd.f32 0.5, %v2369_v58 }
 0x4cf   :  { %4251 = vtanh.f32 %v6462_v37  ;;  %v2274_v43 = vpop.f32.mrf.mxu3 }
 0x4d0   :  { %v2275_v53 = vadd.f32 %v2274_v43, %v2261_v31  ;;  %v2334_v31 = vmul.f32 0.5, %v2330_v25 }
 0x4d1   :  { %v2250_v41 = vpop.f32.mrf.mxu1 }
 0x4d2   :  { %v2331_v22 = vadd.f32 %v2275_v53, %v5778_v1 }
 0x4d4   :  { %v2335_v34 = vmul.f32 0.5, %v2331_v22 }
 0x4d5   :  { %v4252_v10 = vpop.eup %4251 }
 0x4d6   :  { %v2378_v6 = vmul.f32 %v4252_v10, %v2372_v62  ;;  %4253 = vtanh.f32 %v2335_v34 }
 0x4d7   :  { %v2276_v50 = vpop.f32.mrf.mxu3  ;;  %4255 = vtanh.f32 %v2334_v31 }
 0x4d8   :  { %v6465_v42 = vpack.c.bf16 %v2378_v6, %v2378_v6 }
 0x4da   :  { %2389 = vmatmul.bf16.vlgmr.msrb.gmra.mxu0 %v6465_v42  ;;  %2415 = vmatmul.bf16.vlgmr.msra.gmra.mxu2 %v6465_v42 }
 0x4db   :  { %2485 = vmatpush.bf16.msrb.mxu0 %v7385_v11  ;;  %2511 = vmatpush.bf16.msra.mxu2 %v7386_v4 }
 0x4dc   :  { %v4254_v49 = vpop.eup %4253 }
 0x4dd   :  { %v4256_v23 = vpop.eup %4255 }
 0x4de   :  { %v2340_v58 = vmul.f32 0.5, %v4256_v23  ;;  %v7800_v23 = vld [vmem:[#allocation87_spill] sm:$0xff] }
 0x4df   :  { %2486 = vmatpush.bf16.msrb.mxu0 %v7388_v40  ;;  %2512 = vmatpush.bf16.msra.mxu2 %v7389_v24 }
 0x4e3   :  { %2487 = vmatpush.bf16.msrb.mxu0 %v7485_v60  ;;  %2513 = vmatpush.bf16.msra.mxu2 %v7486_v33 }
 0x4e7   :  { %2488 = vmatpush.bf16.msrb.mxu0 %v7487_v27  ;;  %2514 = vmatpush.bf16.msra.mxu2 %v7488_v45 }
 0x4e9   :  { %v2300_v7 = vpop.f32.mrf.mxu1 }
 0x4ea   :  { %v2301_v61 = vadd.f32 %v2300_v7, %v2287_v16  ;;  %2441 = vmatmul.bf16.vlgmr.msra.gmra.mxu0 %v6465_v42  ;;  %2467 = vmatmul.bf16.vlgmr.msrb.gmra.mxu2 %v6465_v42  ;;  %v2341_v16 = vmul.f32 0.5, %v4254_v49  ;;  %v7793_v7 = vld [vmem:[#allocation73_spill] sm:$0xff] }
 0x4eb   :  { %2489 = vmatpush.bf16.msrb.mxu0 %v7489_v39  ;;  %2515 = vmatpush.bf16.msra.mxu2 %v7396_v38  ;;  %v7797_v49 = vld [vmem:[#allocation81_spill] sm:$0xff] }
 0x4ec   :  { %v2332_v46 = vadd.f32 %v2301_v61, %v7490_v35  ;;  %v2344_v41 = vadd.f32 0.5, %v2341_v16  ;;  %v7794_v61 = vld [vmem:[#allocation126_spill] sm:$0xff]  ;;  %v7802_v16 = vld [vmem:[#allocation132_spill] sm:$0xff] }
 0x4ee   :  { %v2336_v43 = vmul.f32 0.5, %v2332_v46  ;;  %v2347_v6 = vmul.f32 %v2344_v41, %v6324_v15  ;;  %v7795_v46 = vld [vmem:[#allocation127_spill] sm:$0xff]  ;;  %v7805_v41 = vld [vmem:[#allocation10_spill] sm:$0xff] }
 0x4ef   :  { %v2326_v56 = vpop.f32.mrf.mxu3  ;;  %2490 = vmatpush.bf16.msrb.mxu0 %v7397_v12  ;;  %2516 = vmatpush.bf16.msra.mxu2 %v7398_v52 }
 0x4f0   :  { %v2327_v30 = vadd.f32 %v2326_v56, %v2313_v14  ;;  %v2343_v14 = vadd.f32 0.5, %v2340_v58  ;;  %v7796_v56 = vld [vmem:[#allocation85_spill] sm:$0xff]  ;;  %v7804_v58 = vld [vmem:[#allocation8_spill] sm:$0xff] }
 0x4f1   :  { %v2302_v29 = vpop.f32.mrf.mxu1 }
 0x4f2   :  { %v2333_v54 = vadd.f32 %v2327_v30, %v5799_v28  ;;  %v7798_v30 = vld [vmem:[#allocation129_spill] sm:$0xff]  ;;  %v7799_v29 = vld [vmem:[#allocation130_spill] sm:$0xff] }
 0x4f3   :  { %2491 = vmatpush.bf16.msrb.mxu0 %v5460_v2  ;;  %2517 = vmatpush.bf16.msra.mxu2 %v7399_v48 }
 0x4f4   :  { %4257 = vtanh.f32 %v2333_v54  ;;  %v7801_v54 = vld [vmem:[#allocation84_spill] sm:$0xff] }
 0x4f5   :  { %4259 = vtanh.f32 %v2336_v43  ;;  %v7803_v43 = vld [vmem:[#allocation133_spill] sm:$0xff] }
 0x4f7   :  { %v2328_v62 = vpop.f32.mrf.mxu3  ;;  %2492 = vmatpush.bf16.msrb.mxu0 %v5501_v21  ;;  %2518 = vmatpush.bf16.msra.mxu2 %v5503_v20 }
 0x4f8   :  { %v7806_v62 = vld [vmem:[#allocation89_spill] sm:$0xff] }
 0x4fa   :  { %v4258_v10 = vpop.eup %4257  ;;  %2493 = vmatmul.bf16.vlgmr.msrb.gmra.mxu0 %v6465_v42  ;;  %2519 = vmatmul.bf16.vlgmr.msra.gmra.mxu2 %v6465_v42 }
 0x4fb   :  { %v2348_v50 = vmul.f32 %v4258_v10, %v2343_v14  ;;  %2537 = vmatpush.bf16.msra.mxu0 %v5505_v5  ;;  %2563 = vmatpush.bf16.msrb.mxu2 %v5507_v26  ;;  %v4260_v53 = vpop.eup %4259  ;;  %v7807_v14 = vld [vmem:[#allocation86_spill] sm:$0xff]  ;;  %v7808_v10 = vld [vmem:[#allocation12_spill] sm:$0xff] }
 0x4fc   :  { %v2342_v22 = vmul.f32 0.5, %v4260_v53  ;;  %v7811_v53 = vld [vmem:[#allocation88_spill] sm:$0xff] }
 0x4fd   :  { %v6495_v3 = vadd.f32 %v2348_v50, %v2347_v6  ;;  %v7809_v6 = vld [vmem:[#allocation14_spill] sm:$0xff]  ;;  %v7810_v50 = vld [vmem:[#allocation92_spill] sm:$0xff] }
 0x4fe   :  { %v2345_v15 = vadd.f32 0.5, %v2342_v22  ;;  %v7812_v22 = vld [vmem:[#allocation15_spill] sm:$0xff] }
 0x4ff   :  { %4261 = vtanh.f32 %v6495_v3  ;;  %2538 = vmatpush.bf16.msra.mxu0 %v5530_v19  ;;  %2564 = vmatpush.bf16.msrb.mxu2 %v5532_v63 }
 0x503   :  { %2539 = vmatpush.bf16.msra.mxu0 %v5555_v51  ;;  %2565 = vmatpush.bf16.msrb.mxu2 %v5557_v13 }
 0x505   :  { %v4262_v25 = vpop.eup %4261 }
 0x506   :  { %v2351_v34 = vmul.f32 %v4262_v25, %v2345_v15  ;;  %v7813_v15 = vld [vmem:[#allocation18_spill] sm:$0xff]  ;;  %v7814_v25 = vld [vmem:[#allocation95_spill] sm:$0xff] }
 0x507   :  { %2540 = vmatpush.bf16.msra.mxu0 %v5576_v55  ;;  %2566 = vmatpush.bf16.msrb.mxu2 %v5578_v44 }
 0x508   :  { %v6506_v31 = vpack.c.bf16 %v2351_v34, %v2351_v34  ;;  %v7815_v34 = vld [vmem:[#allocation90_spill] sm:$0xff] }
 0x50a   :  { %2402 = vmatmul.bf16.vlgmr.msrb.gmra.mxu1 %v6506_v31  ;;  %2428 = vmatmul.bf16.vlgmr.msra.gmra.mxu3 %v6506_v31 }
 0x50b   :  { %2498 = vmatpush.bf16.msrb.mxu1 %v7400_v59  ;;  %2524 = vmatpush.bf16.msra.mxu3 %v7401_v36 }
 0x50c   :  { %2541 = vmatpush.bf16.msra.mxu0 %v5598_v32  ;;  %2567 = vmatpush.bf16.msrb.mxu2 %v5600_v47 }
 0x50f   :  { %2499 = vmatpush.bf16.msrb.mxu1 %v7402_v17  ;;  %2525 = vmatpush.bf16.msra.mxu3 %v7793_v7 }
 0x510   :  { %2542 = vmatpush.bf16.msra.mxu0 %v7794_v61  ;;  %2568 = vmatpush.bf16.msrb.mxu2 %v7795_v46 }
 0x513   :  { %2500 = vmatpush.bf16.msrb.mxu1 %v7796_v56  ;;  %2526 = vmatpush.bf16.msra.mxu3 %v7797_v49 }
 0x514   :  { %2543 = vmatpush.bf16.msra.mxu0 %v7798_v30  ;;  %2569 = vmatpush.bf16.msrb.mxu2 %v7799_v29  ;;  %v7893_v30 = vld [vmem:[#allocation64_spill] sm:$0xff] }
 0x517   :  { %2501 = vmatpush.bf16.msrb.mxu1 %v7800_v23  ;;  %2527 = vmatpush.bf16.msra.mxu3 %v7801_v54 }
 0x518   :  { %2544 = vmatpush.bf16.msra.mxu0 %v7802_v16  ;;  %2570 = vmatpush.bf16.msrb.mxu2 %v7803_v43  ;;  %v7884_v43 = vld [vmem:[#allocation58_spill] sm:$0xff] }
 0x51a   :  { %2454 = vmatmul.bf16.vlgmr.msra.gmra.mxu1 %v6506_v31  ;;  %2480 = vmatmul.bf16.vlgmr.msrb.gmra.mxu3 %v6506_v31 }
 0x51b   :  { %2502 = vmatpush.bf16.msrb.mxu1 %v7806_v62  ;;  %2528 = vmatpush.bf16.msra.mxu3 %v7807_v14  ;;  %v7816_v14 = vld [vmem:[#allocation19_spill] sm:$0xff]  ;;  %v7817_v62 = vld [vmem:[#allocation22_spill] sm:$0xff] }
 0x51c   :  { %2640 = vmatpush.bf16.msrb.mxu0 %v7804_v58  ;;  %2666 = vmatpush.bf16.msra.mxu2 %v7805_v41  ;;  %v7880_v58 = vld [vmem:[#allocation50_spill] sm:$0xff] }
 0x51d   :  { %2545 = vmatmul.bf16.vlgmr.msra.gmra.mxu0 %v6465_v42  ;;  %2571 = vmatmul.bf16.vlgmr.msrb.gmra.mxu2 %v6465_v42  ;;  %v7818_v42 = vld [vmem:[#allocation97_spill] sm:$0xff] }
 0x51f   :  { %2503 = vmatpush.bf16.msrb.mxu1 %v7810_v50  ;;  %2529 = vmatpush.bf16.msra.mxu3 %v7811_v53  ;;  %v7821_v50 = vld [vmem:[#allocation94_spill] sm:$0xff]  ;;  %v7822_v53 = vld [vmem:[#allocation23_spill] sm:$0xff] }
 0x520   :  { %2641 = vmatpush.bf16.msrb.mxu0 %v7808_v10  ;;  %2667 = vmatpush.bf16.msra.mxu2 %v7809_v6  ;;  %v7819_v10 = vld [vmem:[#allocation93_spill] sm:$0xff]  ;;  %v7820_v6 = vld [vmem:[#allocation100_spill] sm:$0xff] }
 0x523   :  { %2504 = vmatpush.bf16.msrb.mxu1 %v7814_v25  ;;  %2530 = vmatpush.bf16.msra.mxu3 %v7815_v34  ;;  %v7824_v34 = vld [vmem:[#allocation104_spill] sm:$0xff]  ;;  %v7833_v25 = vld [vmem:[#allocation105_spill] sm:$0xff] }
 0x524   :  { %2642 = vmatpush.bf16.msrb.mxu0 %v7812_v22  ;;  %2668 = vmatpush.bf16.msra.mxu2 %v7813_v15  ;;  %v7823_v22 = vld [vmem:[#allocation26_spill] sm:$0xff] }
 0x525   :  { %v7834_v15 = vld [vmem:[#allocation38_spill] sm:$0xff] }
 0x527   :  { %2505 = vmatpush.bf16.msrb.mxu1 %v7818_v42  ;;  %2531 = vmatpush.bf16.msra.mxu3 %v7819_v10  ;;  %v7827_v42 = vld [vmem:[#allocation31_spill] sm:$0xff]  ;;  %v7828_v10 = vld [vmem:[#allocation108_spill] sm:$0xff] }
 0x528   :  { %2643 = vmatpush.bf16.msrb.mxu0 %v7816_v14  ;;  %2669 = vmatpush.bf16.msra.mxu2 %v7817_v62  ;;  %v7825_v14 = vld [vmem:[#allocation96_spill] sm:$0xff]  ;;  %v7826_v62 = vld [vmem:[#allocation29_spill] sm:$0xff] }
 0x52a   :  { %2506 = vmatmul.bf16.vlgmr.msrb.gmra.mxu1 %v6506_v31  ;;  %2532 = vmatmul.bf16.vlgmr.msra.gmra.mxu3 %v6506_v31 }
 0x52b   :  { %2550 = vmatpush.bf16.msra.mxu1 %v7820_v6  ;;  %2576 = vmatpush.bf16.msrb.mxu3 %v7821_v50  ;;  %v7829_v6 = vld [vmem:[#allocation101_spill] sm:$0xff]  ;;  %v7830_v50 = vld [vmem:[#allocation34_spill] sm:$0xff] }
 0x52c   :  { %2644 = vmatpush.bf16.msrb.mxu0 %v7822_v53  ;;  %2670 = vmatpush.bf16.msra.mxu2 %v7823_v22  ;;  %v7831_v53 = vld [vmem:[#allocation36_spill] sm:$0xff] }
 0x52d   :  { %v7832_v22 = vld [vmem:[#allocation112_spill] sm:$0xff] }
 0x52f   :  { %2551 = vmatpush.bf16.msra.mxu1 %v7824_v34  ;;  %2577 = vmatpush.bf16.msrb.mxu3 %v7825_v14  ;;  %v7835_v34 = vld [vmem:[#allocation40_spill] sm:$0xff]  ;;  %v7836_v14 = vld [vmem:[#allocation41_spill] sm:$0xff] }
 0x530   :  { %2645 = vmatpush.bf16.msrb.mxu0 %v7826_v62  ;;  %2671 = vmatpush.bf16.msra.mxu2 %v7827_v42  ;;  %v7837_v62 = vld [vmem:[#allocation43_spill] sm:$0xff]  ;;  %v7838_v42 = vld [vmem:[#allocation116_spill] sm:$0xff] }
 0x533   :  { %2552 = vmatpush.bf16.msra.mxu1 %v7828_v10  ;;  %2578 = vmatpush.bf16.msrb.mxu3 %v7829_v6  ;;  %v7839_v10 = vld [vmem:[#allocation109_spill] sm:$0xff] }
 0x534   :  { %2646 = vmatpush.bf16.msrb.mxu0 %v7830_v50  ;;  %2672 = vmatpush.bf16.msra.mxu2 %v7831_v53  ;;  %v7840_v6 = vld [vmem:[#allocation45_spill] sm:$0xff]  ;;  %v7841_v50 = vld [vmem:[#allocation47_spill] sm:$0xff]  ;;  %v7842_v53 = vld [vmem:[#allocation120_spill] sm:$0xff] }
 0x537   :  { %2553 = vmatpush.bf16.msra.mxu1 %v7832_v22  ;;  %2579 = vmatpush.bf16.msrb.mxu3 %v7833_v25  ;;  %v7843_v22 = vld [vmem:[#allocation113_spill] sm:$0xff] }
 0x538   :  { %2647 = vmatpush.bf16.msrb.mxu0 %v7834_v15  ;;  %2673 = vmatpush.bf16.msra.mxu2 %v7835_v34  ;;  %v7844_v25 = vld [vmem:[#allocation49_spill] sm:$0xff]  ;;  %v7845_v15 = vld [vmem:[#allocation51_spill] sm:$0xff] }
 0x539   :  { %v7846_v34 = vld [vmem:[#allocation123_spill] sm:$0xff] }
 0x53b   :  { %2554 = vmatpush.bf16.msra.mxu1 %v7838_v42  ;;  %2580 = vmatpush.bf16.msrb.mxu3 %v7839_v10  ;;  %v7849_v42 = vld [vmem:[#allocation55_spill] sm:$0xff]  ;;  %v7850_v10 = vld [vmem:[#allocation124_spill] sm:$0xff] }
 0x53c   :  { %2692 = vmatpush.bf16.msra.mxu0 %v7836_v14  ;;  %2718 = vmatpush.bf16.msrb.mxu2 %v7837_v62  ;;  %v7847_v14 = vld [vmem:[#allocation117_spill] sm:$0xff] }
 0x53d   :  { %v7848_v62 = vld [vmem:[#allocation53_spill] sm:$0xff] }
 0x53f   :  { %2555 = vmatpush.bf16.msra.mxu1 %v7842_v53  ;;  %2581 = vmatpush.bf16.msrb.mxu3 %v7843_v22  ;;  %v7853_v53 = vld [vmem:[#allocation7_spill] sm:$0xff]  ;;  %v7854_v22 = vld [vmem:[#allocation57_spill] sm:$0xff] }
 0x540   :  { %2693 = vmatpush.bf16.msra.mxu0 %v7840_v6  ;;  %2719 = vmatpush.bf16.msrb.mxu2 %v7841_v50  ;;  %v7851_v6 = vld [vmem:[#allocation121_spill] sm:$0xff] }
 0x541   :  { %v7852_v50 = vld [vmem:[#allocation9_spill] sm:$0xff] }
 0x543   :  { %2556 = vmatpush.bf16.msra.mxu1 %v7846_v34  ;;  %2582 = vmatpush.bf16.msrb.mxu3 %v7847_v14  ;;  %v7856_v14 = vld [vmem:[#allocation13_spill] sm:$0xff]  ;;  %v7865_v34 = vld [vmem:[#allocation20_spill] sm:$0xff] }
 0x544   :  { %2694 = vmatpush.bf16.msra.mxu0 %v7844_v25  ;;  %2720 = vmatpush.bf16.msrb.mxu2 %v7845_v15  ;;  %v7855_v25 = vld [vmem:[#allocation59_spill] sm:$0xff] }
 0x545   :  { %v7874_v15 = vld [vmem:[#allocation39_spill] sm:$0xff] }
 0x547   :  { %2557 = vmatpush.bf16.msra.mxu1 %v7850_v10  ;;  %2583 = vmatpush.bf16.msrb.mxu3 %v7851_v6  ;;  %v7859_v10 = vld [vmem:[#allocation67_spill] sm:$0xff]  ;;  %v7860_v6 = vld [vmem:[#allocation17_spill] sm:$0xff] }
 0x548   :  { %2695 = vmatpush.bf16.msra.mxu0 %v7848_v62  ;;  %2721 = vmatpush.bf16.msrb.mxu2 %v7849_v42  ;;  %v7857_v62 = vld [vmem:[#allocation11_spill] sm:$0xff] }
 0x549   :  { %v7858_v42 = vld [vmem:[#allocation63_spill] sm:$0xff] }
 0x54a   :  { %2558 = vmatmul.bf16.vlgmr.msra.gmra.mxu1 %v6506_v31  ;;  %2584 = vmatmul.bf16.vlgmr.msrb.gmra.mxu3 %v6506_v31  ;;  %v7866_v31 = vld [vmem:[#allocation74_spill] sm:$0xff] }
 0x54b   :  { %2653 = vmatpush.bf16.msrb.mxu1 %v7852_v50  ;;  %2679 = vmatpush.bf16.msra.mxu3 %v7853_v53  ;;  %v7861_v50 = vld [vmem:[#allocation16_spill] sm:$0xff]  ;;  %v7862_v53 = vld [vmem:[#allocation70_spill] sm:$0xff] }
 0x54c   :  { %2696 = vmatpush.bf16.msra.mxu0 %v7854_v22  ;;  %2722 = vmatpush.bf16.msrb.mxu2 %v7855_v25  ;;  %v7863_v22 = vld [vmem:[#allocation72_spill] sm:$0xff]  ;;  %v7864_v25 = vld [vmem:[#allocation21_spill] sm:$0xff] }
 0x54f   :  { %2654 = vmatpush.bf16.msrb.mxu1 %v7856_v14  ;;  %2680 = vmatpush.bf16.msra.mxu3 %v7857_v62  ;;  %v7867_v14 = vld [vmem:[#allocation78_spill] sm:$0xff]  ;;  %v7868_v62 = vld [vmem:[#allocation25_spill] sm:$0xff] }
 0x550   :  { %2697 = vmatpush.bf16.msra.mxu0 %v7858_v42  ;;  %2723 = vmatpush.bf16.msrb.mxu2 %v7859_v10  ;;  %v7869_v42 = vld [vmem:[#allocation24_spill] sm:$0xff]  ;;  %v7870_v10 = vld [vmem:[#allocation30_spill] sm:$0xff] }
 0x553   :  { %2655 = vmatpush.bf16.msrb.mxu1 %v7860_v6  ;;  %2681 = vmatpush.bf16.msra.mxu3 %v7861_v50  ;;  %v7871_v6 = vld [vmem:[#allocation27_spill] sm:$0xff] }
 0x554   :  { %2698 = vmatpush.bf16.msra.mxu0 %v7862_v53  ;;  %2724 = vmatpush.bf16.msrb.mxu2 %v7863_v22  ;;  %v7872_v53 = vld [vmem:[#allocation35_spill] sm:$0xff]  ;;  %v7873_v22 = vld [vmem:[#allocation28_spill] sm:$0xff] }
 0x557   :  { %2656 = vmatpush.bf16.msrb.mxu1 %v7864_v25  ;;  %2682 = vmatpush.bf16.msra.mxu3 %v7865_v34  ;;  %v2390_v50 = vpop.f32.mrf.mxu0  ;;  %v7875_v34 = vld [vmem:[#allocation32_spill] sm:$0xff] }
 0x558   :  { %2699 = vmatpush.bf16.msra.mxu0 %v7866_v31  ;;  %2725 = vmatpush.bf16.msrb.mxu2 %v7867_v14  ;;  %v7876_v14 = vld [vmem:[#allocation42_spill] sm:$0xff] }
 0x55b   :  { %2657 = vmatpush.bf16.msrb.mxu1 %v7868_v62  ;;  %2683 = vmatpush.bf16.msra.mxu3 %v7869_v42  ;;  %v7877_v62 = vld [vmem:[#allocation33_spill] sm:$0xff]  ;;  %v7878_v42 = vld [vmem:[#allocation46_spill] sm:$0xff] }
 0x55d   :  { %v2416_v25 = vpop.f32.mrf.mxu2 }
 0x55f   :  { %2658 = vmatpush.bf16.msrb.mxu1 %v7870_v10  ;;  %2684 = vmatpush.bf16.msra.mxu3 %v7871_v6  ;;  %v2392_v31 = vpop.f32.mrf.mxu0  ;;  %v7879_v10 = vld [vmem:[#allocation37_spill] sm:$0xff] }
 0x563   :  { %2659 = vmatpush.bf16.msrb.mxu1 %v7872_v53  ;;  %2685 = vmatpush.bf16.msra.mxu3 %v7873_v22  ;;  %v7881_v53 = vld [vmem:[#allocation44_spill] sm:$0xff]  ;;  %v7882_v22 = vld [vmem:[#allocation54_spill] sm:$0xff] }
 0x565   :  { %v2418_v6 = vpop.f32.mrf.mxu2 }
 0x567   :  { %2660 = vmatpush.bf16.msrb.mxu1 %v7874_v15  ;;  %2686 = vmatpush.bf16.msra.mxu3 %v7875_v34  ;;  %v2442_v41 = vpop.f32.mrf.mxu0  ;;  %v7883_v15 = vld [vmem:[#allocation48_spill] sm:$0xff] }
 0x56b   :  { %2705 = vmatpush.bf16.msra.mxu1 %v7876_v14  ;;  %2731 = vmatpush.bf16.msrb.mxu3 %v7877_v62  ;;  %v7885_v14 = vld [vmem:[#allocation52_spill] sm:$0xff]  ;;  %v7886_v62 = vld [vmem:[#allocation65_spill] sm:$0xff] }
 0x56d   :  { %v2468_v34 = vpop.f32.mrf.mxu2 }
 0x56f   :  { %2706 = vmatpush.bf16.msra.mxu1 %v7878_v42  ;;  %2732 = vmatpush.bf16.msrb.mxu3 %v7879_v10  ;;  %v2444_v31 = vpop.f32.mrf.mxu0  ;;  %v7887_v42 = vld [vmem:[#allocation56_spill] sm:$0xff] }
 0x573   :  { %2707 = vmatpush.bf16.msra.mxu1 %v7880_v58  ;;  %2733 = vmatpush.bf16.msrb.mxu3 %v7881_v53  ;;  %v7888_v58 = vld [vmem:[#allocation71_spill] sm:$0xff]  ;;  %v7889_v53 = vld [vmem:[#allocation60_spill] sm:$0xff] }
 0x575   :  { %v2470_v6 = vpop.f32.mrf.mxu2 }
 0x577   :  { %2708 = vmatpush.bf16.msra.mxu1 %v7882_v22  ;;  %2734 = vmatpush.bf16.msrb.mxu3 %v7883_v15  ;;  %v6618_v10 = vpop.f32.mrf.mxu0  ;;  %v7890_v22 = vld [vmem:[#allocation76_spill] sm:$0xff] }
 0x578   :  { %v7891_v15 = vld [vmem:[#allocation68_spill] sm:$0xff] }
 0x57b   :  { %2709 = vmatpush.bf16.msra.mxu1 %v7884_v43  ;;  %2735 = vmatpush.bf16.msrb.mxu3 %v7885_v14 }
 0x57d   :  { %v2520_v31 = vpop.f32.mrf.mxu2 }
 0x57f   :  { %2710 = vmatpush.bf16.msra.mxu1 %v7886_v62  ;;  %2736 = vmatpush.bf16.msrb.mxu3 %v7887_v42  ;;  %v2496_v16 = vpop.f32.mrf.mxu0  ;;  %v7892_v62 = vld [vmem:[#allocation66_spill] sm:$0xff] }
 0x580   :  { %v179_v23 = vadd.f32 %v7892_v62, %v7380_v8 }
 0x583   :  { %2711 = vmatpush.bf16.msra.mxu1 %v7888_v58  ;;  %2737 = vmatpush.bf16.msrb.mxu3 %v7889_v53  ;;  %v150_v58 = vadd.f32 %v7893_v30, %v7381_v9 }
 0x585   :  { %v2522_v54 = vpop.f32.mrf.mxu2 }
 0x586   :  { %v7894_v54 = vld [vmem:[#allocation148_spill] sm:$0xff] }
 0x587   :  { %2712 = vmatpush.bf16.msra.mxu1 %v7890_v22  ;;  %2738 = vmatpush.bf16.msrb.mxu3 %v7891_v15  ;;  %v2403_v43 = vpop.f32.mrf.mxu1  ;;  %v208_v7 = vadd.f32 %v7894_v54, %v7382_v57 }
 0x588   :  { %v2404_v42 = vadd.f32 %v2403_v43, %v2390_v50 }
 0x58a   :  { %v2616_v53 = vadd.f32 %v2404_v42, %v150_v58 }
 0x58c   :  { %v2620_v46 = vmul.f32 0.5, %v2616_v53 }
 0x58d   :  { %v2429_v14 = vpop.f32.mrf.mxu3 }
 0x58e   :  { %v2430_v6 = vadd.f32 %v2429_v14, %v2416_v25 }
 0x58f   :  { %v2405_v29 = vpop.f32.mrf.mxu1 }
 0x590   :  { %v2617_v49 = vadd.f32 %v2430_v6, %v179_v23  ;;  %v7895_v29 = vld [vmem:[#allocation139_spill] sm:$0xff] }
 0x591   :  { %v237_v50 = vadd.f32 %v7895_v29, %v7383_v18 }
 0x592   :  { %v2621_v56 = vmul.f32 0.5, %v2617_v49 }
 0x594   :  { %4263 = vtanh.f32 %v2621_v56 }
 0x595   :  { %v2431_v22 = vpop.f32.mrf.mxu3  ;;  %4265 = vtanh.f32 %v2620_v46 }
 0x597   :  { %v2455_v15 = vpop.f32.mrf.mxu1 }
 0x598   :  { %v2456_v16 = vadd.f32 %v2455_v15, %v2442_v41 }
 0x59a   :  { %v2546_v61 = vpop.f32.mrf.mxu0  ;;  %v2618_v62 = vadd.f32 %v2456_v16, %v208_v7  ;;  %v4264_v14 = vpop.eup %4263 }
 0x59b   :  { %v4266_v49 = vpop.eup %4265  ;;  %v2627_v53 = vmul.f32 0.5, %v4264_v14 }
 0x59c   :  { %v2622_v25 = vmul.f32 0.5, %v2618_v62  ;;  %v2626_v41 = vmul.f32 0.5, %v4266_v49 }
 0x59d   :  { %v2481_v43 = vpop.f32.mrf.mxu3  ;;  %v2630_v46 = vadd.f32 0.5, %v2627_v53 }
 0x59e   :  { %v2482_v30 = vadd.f32 %v2481_v43, %v2468_v34  ;;  %v2629_v42 = vadd.f32 0.5, %v2626_v41 }
 0x59f   :  { %v2457_v58 = vpop.f32.mrf.mxu1  ;;  %v2633_v54 = vmul.f32 %v2630_v46, %v6462_v37 }
 0x5a0   :  { %v2572_v23 = vpop.f32.mrf.mxu2  ;;  %v2619_v22 = vadd.f32 %v2482_v30, %v237_v50 }
 0x5a2   :  { %v2548_v56 = vpop.f32.mrf.mxu0  ;;  %4267 = vtanh.f32 %v2619_v22 }
 0x5a3   :  { %4269 = vtanh.f32 %v2622_v25 }
 0x5a5   :  { %v2483_v15 = vpop.f32.mrf.mxu3 }
 0x5a7   :  { %v2507_v6 = vpop.f32.mrf.mxu1 }
 0x5a8   :  { %v2574_v7 = vpop.f32.mrf.mxu2  ;;  %v4268_v16 = vpop.eup %4267  ;;  %v2508_v25 = vadd.f32 %v2507_v6, %v6618_v10 }
 0x5a9   :  { %v2634_v29 = vmul.f32 %v4268_v16, %v2629_v42  ;;  %v4270_v34 = vpop.eup %4269 }
 0x5aa   :  { %v2628_v62 = vmul.f32 0.5, %v4270_v34  ;;  %v2589_v41 = vadd.f32 %v2508_v25, %v7484_v0 }
 0x5ab   :  { %v6633_v43 = vadd.f32 %v2634_v29, %v2633_v54 }
 0x5ac   :  { %v2631_v30 = vadd.f32 0.5, %v2628_v62 }
 0x5ad   :  { %4271 = vtanh.f32 %v6633_v43  ;;  %v2533_v14 = vpop.f32.mrf.mxu3 }
 0x5ae   :  { %v2534_v37 = vadd.f32 %v2533_v14, %v2520_v31  ;;  %v2593_v31 = vmul.f32 0.5, %v2589_v41 }
 0x5af   :  { %v2509_v50 = vpop.f32.mrf.mxu1 }
 0x5b0   :  { %v2590_v56 = vadd.f32 %v2534_v37, %v5778_v1 }
 0x5b2   :  { %v2594_v46 = vmul.f32 0.5, %v2590_v56 }
 0x5b3   :  { %v4272_v58 = vpop.eup %4271 }
 0x5b4   :  { %v2637_v49 = vmul.f32 %v4272_v58, %v2631_v30  ;;  %4273 = vtanh.f32 %v2594_v46 }
 0x5b5   :  { %v2535_v22 = vpop.f32.mrf.mxu3  ;;  %4275 = vtanh.f32 %v2593_v31 }
 0x5b6   :  { %v6636_v53 = vpack.c.bf16 %v2637_v49, %v2637_v49 }
 0x5b8   :  { %2648 = vmatmul.bf16.vlgmr.msrb.gmra.mxu0 %v6636_v53  ;;  %2674 = vmatmul.bf16.vlgmr.msra.gmra.mxu2 %v6636_v53 }
 0x5b9   :  { %2744 = vmatpush.bf16.msrb.mxu0 %v7385_v11  ;;  %2770 = vmatpush.bf16.msra.mxu2 %v7386_v4 }
 0x5ba   :  { %v4274_v6 = vpop.eup %4273 }
 0x5bb   :  { %v4276_v29 = vpop.eup %4275 }
 0x5bc   :  { %v2599_v62 = vmul.f32 0.5, %v4276_v29  ;;  %v7903_v29 = vld [vmem:[#allocation87_spill] sm:$0xff] }
 0x5bd   :  { %2745 = vmatpush.bf16.msrb.mxu0 %v7388_v40  ;;  %2771 = vmatpush.bf16.msra.mxu2 %v7389_v24 }
 0x5c1   :  { %2746 = vmatpush.bf16.msrb.mxu0 %v7485_v60  ;;  %2772 = vmatpush.bf16.msra.mxu2 %v7486_v33 }
 0x5c5   :  { %2747 = vmatpush.bf16.msrb.mxu0 %v7487_v27  ;;  %2773 = vmatpush.bf16.msra.mxu2 %v7488_v45 }
 0x5c7   :  { %v2559_v15 = vpop.f32.mrf.mxu1 }
 0x5c8   :  { %v2560_v10 = vadd.f32 %v2559_v15, %v2546_v61  ;;  %2700 = vmatmul.bf16.vlgmr.msra.gmra.mxu0 %v6636_v53  ;;  %2726 = vmatmul.bf16.vlgmr.msrb.gmra.mxu2 %v6636_v53  ;;  %v2600_v61 = vmul.f32 0.5, %v4274_v6  ;;  %v7896_v15 = vld [vmem:[#allocation73_spill] sm:$0xff] }
 0x5c9   :  { %2748 = vmatpush.bf16.msrb.mxu0 %v7489_v39  ;;  %2774 = vmatpush.bf16.msra.mxu2 %v7396_v38  ;;  %v7900_v6 = vld [vmem:[#allocation81_spill] sm:$0xff] }
 0x5ca   :  { %v2591_v42 = vadd.f32 %v2560_v10, %v7490_v35  ;;  %v2603_v50 = vadd.f32 0.5, %v2600_v61  ;;  %v7897_v10 = vld [vmem:[#allocation126_spill] sm:$0xff]  ;;  %v7905_v61 = vld [vmem:[#allocation132_spill] sm:$0xff] }
 0x5cc   :  { %v2595_v14 = vmul.f32 0.5, %v2591_v42  ;;  %v2606_v49 = vmul.f32 %v2603_v50, %v6495_v3  ;;  %v7898_v42 = vld [vmem:[#allocation127_spill] sm:$0xff]  ;;  %v7908_v50 = vld [vmem:[#allocation10_spill] sm:$0xff] }
 0x5cd   :  { %v2585_v7 = vpop.f32.mrf.mxu3  ;;  %2749 = vmatpush.bf16.msrb.mxu0 %v7397_v12  ;;  %2775 = vmatpush.bf16.msra.mxu2 %v7398_v52 }
 0x5ce   :  { %v2586_v16 = vadd.f32 %v2585_v7, %v2572_v23  ;;  %v2602_v23 = vadd.f32 0.5, %v2599_v62  ;;  %v7899_v7 = vld [vmem:[#allocation85_spill] sm:$0xff]  ;;  %v7907_v62 = vld [vmem:[#allocation8_spill] sm:$0xff] }
 0x5cf   :  { %v2561_v54 = vpop.f32.mrf.mxu1 }
 0x5d0   :  { %v2592_v34 = vadd.f32 %v2586_v16, %v5799_v28  ;;  %v7901_v16 = vld [vmem:[#allocation129_spill] sm:$0xff]  ;;  %v7902_v54 = vld [vmem:[#allocation130_spill] sm:$0xff] }
 0x5d1   :  { %2750 = vmatpush.bf16.msrb.mxu0 %v5460_v2  ;;  %2776 = vmatpush.bf16.msra.mxu2 %v7399_v48 }
 0x5d2   :  { %4277 = vtanh.f32 %v2592_v34  ;;  %v7904_v34 = vld [vmem:[#allocation84_spill] sm:$0xff] }
 0x5d3   :  { %4279 = vtanh.f32 %v2595_v14  ;;  %v7906_v14 = vld [vmem:[#allocation133_spill] sm:$0xff] }
 0x5d5   :  { %v2587_v30 = vpop.f32.mrf.mxu3  ;;  %2751 = vmatpush.bf16.msrb.mxu0 %v5501_v21  ;;  %2777 = vmatpush.bf16.msra.mxu2 %v5503_v20 }
 0x5d6   :  { %v7909_v30 = vld [vmem:[#allocation89_spill] sm:$0xff] }
 0x5d8   :  { %v4278_v58 = vpop.eup %4277  ;;  %2752 = vmatmul.bf16.vlgmr.msrb.gmra.mxu0 %v6636_v53  ;;  %2778 = vmatmul.bf16.vlgmr.msra.gmra.mxu2 %v6636_v53 }
 0x5d9   :  { %v2607_v22 = vmul.f32 %v4278_v58, %v2602_v23  ;;  %2796 = vmatpush.bf16.msra.mxu0 %v5505_v5  ;;  %2822 = vmatpush.bf16.msrb.mxu2 %v5507_v26  ;;  %v4280_v37 = vpop.eup %4279  ;;  %v7910_v23 = vld [vmem:[#allocation86_spill] sm:$0xff]  ;;  %v7911_v58 = vld [vmem:[#allocation12_spill] sm:$0xff] }
 0x5da   :  { %v2601_v56 = vmul.f32 0.5, %v4280_v37  ;;  %v7914_v37 = vld [vmem:[#allocation88_spill] sm:$0xff] }
 0x5db   :  { %v6666_v25 = vadd.f32 %v2607_v22, %v2606_v49  ;;  %v7912_v49 = vld [vmem:[#allocation14_spill] sm:$0xff]  ;;  %v7913_v22 = vld [vmem:[#allocation92_spill] sm:$0xff] }
 0x5dc   :  { %v2604_v3 = vadd.f32 0.5, %v2601_v56  ;;  %v7915_v56 = vld [vmem:[#allocation15_spill] sm:$0xff] }
 0x5dd   :  { %4281 = vtanh.f32 %v6666_v25  ;;  %2797 = vmatpush.bf16.msra.mxu0 %v5530_v19  ;;  %2823 = vmatpush.bf16.msrb.mxu2 %v5532_v63 }
 0x5e1   :  { %2798 = vmatpush.bf16.msra.mxu0 %v5555_v51  ;;  %2824 = vmatpush.bf16.msrb.mxu2 %v5557_v13 }
 0x5e3   :  { %v4282_v41 = vpop.eup %4281 }
 0x5e4   :  { %v2610_v46 = vmul.f32 %v4282_v41, %v2604_v3  ;;  %v7916_v3 = vld [vmem:[#allocation18_spill] sm:$0xff]  ;;  %v7917_v41 = vld [vmem:[#allocation95_spill] sm:$0xff] }
 0x5e5   :  { %2799 = vmatpush.bf16.msra.mxu0 %v5576_v55  ;;  %2825 = vmatpush.bf16.msrb.mxu2 %v5578_v44 }
 0x5e6   :  { %v6677_v31 = vpack.c.bf16 %v2610_v46, %v2610_v46  ;;  %v7918_v46 = vld [vmem:[#allocation90_spill] sm:$0xff] }
 0x5e8   :  { %2661 = vmatmul.bf16.vlgmr.msrb.gmra.mxu1 %v6677_v31  ;;  %2687 = vmatmul.bf16.vlgmr.msra.gmra.mxu3 %v6677_v31 }
 0x5e9   :  { %2757 = vmatpush.bf16.msrb.mxu1 %v7400_v59  ;;  %2783 = vmatpush.bf16.msra.mxu3 %v7401_v36 }
 0x5ea   :  { %2800 = vmatpush.bf16.msra.mxu0 %v5598_v32  ;;  %2826 = vmatpush.bf16.msrb.mxu2 %v5600_v47 }
 0x5ed   :  { %2758 = vmatpush.bf16.msrb.mxu1 %v7402_v17  ;;  %2784 = vmatpush.bf16.msra.mxu3 %v7896_v15 }
 0x5ee   :  { %2801 = vmatpush.bf16.msra.mxu0 %v7897_v10  ;;  %2827 = vmatpush.bf16.msrb.mxu2 %v7898_v42 }
 0x5f1   :  { %2759 = vmatpush.bf16.msrb.mxu1 %v7899_v7  ;;  %2785 = vmatpush.bf16.msra.mxu3 %v7900_v6 }
 0x5f2   :  { %2802 = vmatpush.bf16.msra.mxu0 %v7901_v16  ;;  %2828 = vmatpush.bf16.msrb.mxu2 %v7902_v54  ;;  %v7996_v16 = vld [vmem:[#allocation75_spill] sm:$0xff] }
 0x5f5   :  { %2760 = vmatpush.bf16.msrb.mxu1 %v7903_v29  ;;  %2786 = vmatpush.bf16.msra.mxu3 %v7904_v34 }
 0x5f6   :  { %2803 = vmatpush.bf16.msra.mxu0 %v7905_v61  ;;  %2829 = vmatpush.bf16.msrb.mxu2 %v7906_v14  ;;  %v7987_v14 = vld [vmem:[#allocation58_spill] sm:$0xff] }
 0x5f8   :  { %2713 = vmatmul.bf16.vlgmr.msra.gmra.mxu1 %v6677_v31  ;;  %2739 = vmatmul.bf16.vlgmr.msrb.gmra.mxu3 %v6677_v31 }
 0x5f9   :  { %2761 = vmatpush.bf16.msrb.mxu1 %v7909_v30  ;;  %2787 = vmatpush.bf16.msra.mxu3 %v7910_v23  ;;  %v7983_v30 = vld [vmem:[#allocation50_spill] sm:$0xff] }
 0x5fa   :  { %2899 = vmatpush.bf16.msrb.mxu0 %v7907_v62  ;;  %2925 = vmatpush.bf16.msra.mxu2 %v7908_v50  ;;  %v7919_v62 = vld [vmem:[#allocation19_spill] sm:$0xff]  ;;  %v7920_v50 = vld [vmem:[#allocation22_spill] sm:$0xff] }
 0x5fb   :  { %2804 = vmatmul.bf16.vlgmr.msra.gmra.mxu0 %v6636_v53  ;;  %2830 = vmatmul.bf16.vlgmr.msrb.gmra.mxu2 %v6636_v53  ;;  %v7921_v53 = vld [vmem:[#allocation97_spill] sm:$0xff] }
 0x5fd   :  { %2762 = vmatpush.bf16.msrb.mxu1 %v7913_v22  ;;  %2788 = vmatpush.bf16.msra.mxu3 %v7914_v37  ;;  %v7924_v22 = vld [vmem:[#allocation94_spill] sm:$0xff]  ;;  %v7925_v37 = vld [vmem:[#allocation23_spill] sm:$0xff] }
 0x5fe   :  { %2900 = vmatpush.bf16.msrb.mxu0 %v7911_v58  ;;  %2926 = vmatpush.bf16.msra.mxu2 %v7912_v49  ;;  %v7922_v58 = vld [vmem:[#allocation93_spill] sm:$0xff]  ;;  %v7923_v49 = vld [vmem:[#allocation100_spill] sm:$0xff] }
 0x601   :  { %2763 = vmatpush.bf16.msrb.mxu1 %v7917_v41  ;;  %2789 = vmatpush.bf16.msra.mxu3 %v7918_v46  ;;  %v7936_v46 = vld [vmem:[#allocation105_spill] sm:$0xff]  ;;  %v7937_v41 = vld [vmem:[#allocation38_spill] sm:$0xff] }
 0x602   :  { %2901 = vmatpush.bf16.msrb.mxu0 %v7915_v56  ;;  %2927 = vmatpush.bf16.msra.mxu2 %v7916_v3  ;;  %v7926_v56 = vld [vmem:[#allocation26_spill] sm:$0xff]  ;;  %v7927_v3 = vld [vmem:[#allocation104_spill] sm:$0xff] }
 0x605   :  { %2764 = vmatpush.bf16.msrb.mxu1 %v7921_v53  ;;  %2790 = vmatpush.bf16.msra.mxu3 %v7922_v58  ;;  %v7930_v53 = vld [vmem:[#allocation31_spill] sm:$0xff]  ;;  %v7931_v58 = vld [vmem:[#allocation108_spill] sm:$0xff] }
 0x606   :  { %2902 = vmatpush.bf16.msrb.mxu0 %v7919_v62  ;;  %2928 = vmatpush.bf16.msra.mxu2 %v7920_v50  ;;  %v7928_v62 = vld [vmem:[#allocation96_spill] sm:$0xff]  ;;  %v7929_v50 = vld [vmem:[#allocation29_spill] sm:$0xff] }
 0x608   :  { %2765 = vmatmul.bf16.vlgmr.msrb.gmra.mxu1 %v6677_v31  ;;  %2791 = vmatmul.bf16.vlgmr.msra.gmra.mxu3 %v6677_v31 }
 0x609   :  { %2809 = vmatpush.bf16.msra.mxu1 %v7923_v49  ;;  %2835 = vmatpush.bf16.msrb.mxu3 %v7924_v22  ;;  %v7932_v49 = vld [vmem:[#allocation101_spill] sm:$0xff]  ;;  %v7933_v22 = vld [vmem:[#allocation34_spill] sm:$0xff] }
 0x60a   :  { %2903 = vmatpush.bf16.msrb.mxu0 %v7925_v37  ;;  %2929 = vmatpush.bf16.msra.mxu2 %v7926_v56  ;;  %v7934_v37 = vld [vmem:[#allocation36_spill] sm:$0xff] }
 0x60b   :  { %v7935_v56 = vld [vmem:[#allocation112_spill] sm:$0xff] }
 0x60d   :  { %2810 = vmatpush.bf16.msra.mxu1 %v7927_v3  ;;  %2836 = vmatpush.bf16.msrb.mxu3 %v7928_v62  ;;  %v7938_v3 = vld [vmem:[#allocation40_spill] sm:$0xff]  ;;  %v7939_v62 = vld [vmem:[#allocation41_spill] sm:$0xff] }
 0x60e   :  { %2904 = vmatpush.bf16.msrb.mxu0 %v7929_v50  ;;  %2930 = vmatpush.bf16.msra.mxu2 %v7930_v53  ;;  %v7940_v50 = vld [vmem:[#allocation43_spill] sm:$0xff]  ;;  %v7941_v53 = vld [vmem:[#allocation116_spill] sm:$0xff] }
 0x611   :  { %2811 = vmatpush.bf16.msra.mxu1 %v7931_v58  ;;  %2837 = vmatpush.bf16.msrb.mxu3 %v7932_v49  ;;  %v7942_v58 = vld [vmem:[#allocation109_spill] sm:$0xff] }
 0x612   :  { %2905 = vmatpush.bf16.msrb.mxu0 %v7933_v22  ;;  %2931 = vmatpush.bf16.msra.mxu2 %v7934_v37  ;;  %v7943_v49 = vld [vmem:[#allocation45_spill] sm:$0xff]  ;;  %v7944_v22 = vld [vmem:[#allocation47_spill] sm:$0xff]  ;;  %v7945_v37 = vld [vmem:[#allocation120_spill] sm:$0xff] }
 0x615   :  { %2812 = vmatpush.bf16.msra.mxu1 %v7935_v56  ;;  %2838 = vmatpush.bf16.msrb.mxu3 %v7936_v46  ;;  %v7946_v56 = vld [vmem:[#allocation113_spill] sm:$0xff] }
 0x616   :  { %2906 = vmatpush.bf16.msrb.mxu0 %v7937_v41  ;;  %2932 = vmatpush.bf16.msra.mxu2 %v7938_v3  ;;  %v7947_v46 = vld [vmem:[#allocation49_spill] sm:$0xff]  ;;  %v7948_v41 = vld [vmem:[#allocation51_spill] sm:$0xff] }
 0x617   :  { %v7949_v3 = vld [vmem:[#allocation123_spill] sm:$0xff] }
 0x619   :  { %2813 = vmatpush.bf16.msra.mxu1 %v7941_v53  ;;  %2839 = vmatpush.bf16.msrb.mxu3 %v7942_v58  ;;  %v7952_v53 = vld [vmem:[#allocation55_spill] sm:$0xff]  ;;  %v7953_v58 = vld [vmem:[#allocation124_spill] sm:$0xff] }
 0x61a   :  { %2951 = vmatpush.bf16.msra.mxu0 %v7939_v62  ;;  %2977 = vmatpush.bf16.msrb.mxu2 %v7940_v50  ;;  %v7950_v62 = vld [vmem:[#allocation117_spill] sm:$0xff] }
 0x61b   :  { %v7951_v50 = vld [vmem:[#allocation53_spill] sm:$0xff] }
 0x61d   :  { %2814 = vmatpush.bf16.msra.mxu1 %v7945_v37  ;;  %2840 = vmatpush.bf16.msrb.mxu3 %v7946_v56  ;;  %v7956_v37 = vld [vmem:[#allocation7_spill] sm:$0xff]  ;;  %v7957_v56 = vld [vmem:[#allocation57_spill] sm:$0xff] }
 0x61e   :  { %2952 = vmatpush.bf16.msra.mxu0 %v7943_v49  ;;  %2978 = vmatpush.bf16.msrb.mxu2 %v7944_v22  ;;  %v7954_v49 = vld [vmem:[#allocation121_spill] sm:$0xff] }
 0x61f   :  { %v7955_v22 = vld [vmem:[#allocation9_spill] sm:$0xff] }
 0x621   :  { %2815 = vmatpush.bf16.msra.mxu1 %v7949_v3  ;;  %2841 = vmatpush.bf16.msrb.mxu3 %v7950_v62  ;;  %v7968_v62 = vld [vmem:[#allocation20_spill] sm:$0xff]  ;;  %v7977_v3 = vld [vmem:[#allocation39_spill] sm:$0xff] }
 0x622   :  { %2953 = vmatpush.bf16.msra.mxu0 %v7947_v46  ;;  %2979 = vmatpush.bf16.msrb.mxu2 %v7948_v41  ;;  %v7958_v46 = vld [vmem:[#allocation59_spill] sm:$0xff]  ;;  %v7959_v41 = vld [vmem:[#allocation13_spill] sm:$0xff] }
 0x625   :  { %2816 = vmatpush.bf16.msra.mxu1 %v7953_v58  ;;  %2842 = vmatpush.bf16.msrb.mxu3 %v7954_v49  ;;  %v7962_v58 = vld [vmem:[#allocation67_spill] sm:$0xff]  ;;  %v7963_v49 = vld [vmem:[#allocation17_spill] sm:$0xff] }
 0x626   :  { %2954 = vmatpush.bf16.msra.mxu0 %v7951_v50  ;;  %2980 = vmatpush.bf16.msrb.mxu2 %v7952_v53  ;;  %v7960_v50 = vld [vmem:[#allocation11_spill] sm:$0xff] }
 0x627   :  { %v7961_v53 = vld [vmem:[#allocation63_spill] sm:$0xff] }
 0x628   :  { %2817 = vmatmul.bf16.vlgmr.msra.gmra.mxu1 %v6677_v31  ;;  %2843 = vmatmul.bf16.vlgmr.msrb.gmra.mxu3 %v6677_v31  ;;  %v7969_v31 = vld [vmem:[#allocation74_spill] sm:$0xff] }
 0x629   :  { %2912 = vmatpush.bf16.msrb.mxu1 %v7955_v22  ;;  %2938 = vmatpush.bf16.msra.mxu3 %v7956_v37  ;;  %v7964_v22 = vld [vmem:[#allocation16_spill] sm:$0xff]  ;;  %v7965_v37 = vld [vmem:[#allocation70_spill] sm:$0xff] }
 0x62a   :  { %2955 = vmatpush.bf16.msra.mxu0 %v7957_v56  ;;  %2981 = vmatpush.bf16.msrb.mxu2 %v7958_v46  ;;  %v7966_v56 = vld [vmem:[#allocation72_spill] sm:$0xff]  ;;  %v7967_v46 = vld [vmem:[#allocation21_spill] sm:$0xff] }
 0x62d   :  { %2913 = vmatpush.bf16.msrb.mxu1 %v7959_v41  ;;  %2939 = vmatpush.bf16.msra.mxu3 %v7960_v50  ;;  %v7970_v41 = vld [vmem:[#allocation78_spill] sm:$0xff]  ;;  %v7971_v50 = vld [vmem:[#allocation25_spill] sm:$0xff] }
 0x62e   :  { %2956 = vmatpush.bf16.msra.mxu0 %v7961_v53  ;;  %2982 = vmatpush.bf16.msrb.mxu2 %v7962_v58  ;;  %v7972_v53 = vld [vmem:[#allocation24_spill] sm:$0xff]  ;;  %v7973_v58 = vld [vmem:[#allocation30_spill] sm:$0xff] }
 0x631   :  { %2914 = vmatpush.bf16.msrb.mxu1 %v7963_v49  ;;  %2940 = vmatpush.bf16.msra.mxu3 %v7964_v22  ;;  %v7974_v49 = vld [vmem:[#allocation27_spill] sm:$0xff] }
 0x632   :  { %2957 = vmatpush.bf16.msra.mxu0 %v7965_v37  ;;  %2983 = vmatpush.bf16.msrb.mxu2 %v7966_v56  ;;  %v7975_v37 = vld [vmem:[#allocation35_spill] sm:$0xff]  ;;  %v7976_v56 = vld [vmem:[#allocation28_spill] sm:$0xff] }
 0x635   :  { %2915 = vmatpush.bf16.msrb.mxu1 %v7967_v46  ;;  %2941 = vmatpush.bf16.msra.mxu3 %v7968_v62  ;;  %v2649_v22 = vpop.f32.mrf.mxu0  ;;  %v7978_v62 = vld [vmem:[#allocation32_spill] sm:$0xff] }
 0x636   :  { %2958 = vmatpush.bf16.msra.mxu0 %v7969_v31  ;;  %2984 = vmatpush.bf16.msrb.mxu2 %v7970_v41  ;;  %v7979_v41 = vld [vmem:[#allocation42_spill] sm:$0xff] }
 0x639   :  { %2916 = vmatpush.bf16.msrb.mxu1 %v7971_v50  ;;  %2942 = vmatpush.bf16.msra.mxu3 %v7972_v53  ;;  %v7980_v50 = vld [vmem:[#allocation33_spill] sm:$0xff]  ;;  %v7981_v53 = vld [vmem:[#allocation46_spill] sm:$0xff] }
 0x63b   :  { %v2675_v46 = vpop.f32.mrf.mxu2 }
 0x63d   :  { %2917 = vmatpush.bf16.msrb.mxu1 %v7973_v58  ;;  %2943 = vmatpush.bf16.msra.mxu3 %v7974_v49  ;;  %v2651_v31 = vpop.f32.mrf.mxu0  ;;  %v7982_v58 = vld [vmem:[#allocation37_spill] sm:$0xff] }
 0x641   :  { %2918 = vmatpush.bf16.msrb.mxu1 %v7975_v37  ;;  %2944 = vmatpush.bf16.msra.mxu3 %v7976_v56  ;;  %v7984_v37 = vld [vmem:[#allocation44_spill] sm:$0xff]  ;;  %v7985_v56 = vld [vmem:[#allocation54_spill] sm:$0xff] }
 0x643   :  { %v2677_v49 = vpop.f32.mrf.mxu2 }
 0x645   :  { %2919 = vmatpush.bf16.msrb.mxu1 %v7977_v3  ;;  %2945 = vmatpush.bf16.msra.mxu3 %v7978_v62  ;;  %v2701_v23 = vpop.f32.mrf.mxu0  ;;  %v7986_v3 = vld [vmem:[#allocation48_spill] sm:$0xff] }
 0x649   :  { %2964 = vmatpush.bf16.msra.mxu1 %v7979_v41  ;;  %2990 = vmatpush.bf16.msrb.mxu3 %v7980_v50  ;;  %v7988_v41 = vld [vmem:[#allocation52_spill] sm:$0xff]  ;;  %v7989_v50 = vld [vmem:[#allocation65_spill] sm:$0xff] }
 0x64b   :  { %v2727_v62 = vpop.f32.mrf.mxu2 }
 0x64d   :  { %2965 = vmatpush.bf16.msra.mxu1 %v7981_v53  ;;  %2991 = vmatpush.bf16.msrb.mxu3 %v7982_v58  ;;  %v2703_v31 = vpop.f32.mrf.mxu0  ;;  %v7990_v53 = vld [vmem:[#allocation56_spill] sm:$0xff] }
 0x651   :  { %2966 = vmatpush.bf16.msra.mxu1 %v7983_v30  ;;  %2992 = vmatpush.bf16.msrb.mxu3 %v7984_v37  ;;  %v7991_v30 = vld [vmem:[#allocation71_spill] sm:$0xff]  ;;  %v7992_v37 = vld [vmem:[#allocation60_spill] sm:$0xff] }
 0x653   :  { %v2729_v58 = vpop.f32.mrf.mxu2 }
 0x655   :  { %2967 = vmatpush.bf16.msra.mxu1 %v7985_v56  ;;  %2993 = vmatpush.bf16.msrb.mxu3 %v7986_v3  ;;  %v6789_v49 = vpop.f32.mrf.mxu0  ;;  %v7993_v56 = vld [vmem:[#allocation76_spill] sm:$0xff] }
 0x656   :  { %v7994_v3 = vld [vmem:[#allocation68_spill] sm:$0xff] }
 0x659   :  { %2968 = vmatpush.bf16.msra.mxu1 %v7987_v14  ;;  %2994 = vmatpush.bf16.msrb.mxu3 %v7988_v41 }
 0x65b   :  { %v2779_v31 = vpop.f32.mrf.mxu2 }
 0x65d   :  { %2969 = vmatpush.bf16.msra.mxu1 %v7989_v50  ;;  %2995 = vmatpush.bf16.msrb.mxu3 %v7990_v53  ;;  %v2755_v61 = vpop.f32.mrf.mxu0  ;;  %v7995_v50 = vld [vmem:[#allocation77_spill] sm:$0xff] }
 0x65e   :  { %v181_v29 = vadd.f32 %v7995_v50, %v7380_v8 }
 0x661   :  { %2970 = vmatpush.bf16.msra.mxu1 %v7991_v30  ;;  %2996 = vmatpush.bf16.msrb.mxu3 %v7992_v37  ;;  %v152_v30 = vadd.f32 %v7996_v16, %v7381_v9 }
 0x663   :  { %v2781_v34 = vpop.f32.mrf.mxu2 }
 0x664   :  { %v7997_v34 = vld [vmem:[#allocation150_spill] sm:$0xff] }
 0x665   :  { %2971 = vmatpush.bf16.msra.mxu1 %v7993_v56  ;;  %2997 = vmatpush.bf16.msrb.mxu3 %v7994_v3  ;;  %v2662_v14 = vpop.f32.mrf.mxu1  ;;  %v210_v15 = vadd.f32 %v7997_v34, %v7382_v57 }
 0x666   :  { %v2663_v53 = vadd.f32 %v2662_v14, %v2649_v22 }
 0x668   :  { %v2875_v37 = vadd.f32 %v2663_v53, %v152_v30 }
 0x66a   :  { %v2879_v42 = vmul.f32 0.5, %v2875_v37 }
 0x66b   :  { %v2688_v41 = vpop.f32.mrf.mxu3 }
 0x66c   :  { %v2689_v58 = vadd.f32 %v2688_v41, %v2675_v46 }
 0x66d   :  { %v2664_v54 = vpop.f32.mrf.mxu1 }
 0x66e   :  { %v2876_v6 = vadd.f32 %v2689_v58, %v181_v29  ;;  %v7998_v54 = vld [vmem:[#allocation143_spill] sm:$0xff] }
 0x66f   :  { %v239_v14 = vadd.f32 %v7998_v54, %v7383_v18 }
 0x670   :  { %v2880_v7 = vmul.f32 0.5, %v2876_v6 }
 0x672   :  { %4283 = vtanh.f32 %v2880_v7 }
 0x673   :  { %v2690_v56 = vpop.f32.mrf.mxu3  ;;  %4285 = vtanh.f32 %v2879_v42 }
 0x675   :  { %v2714_v3 = vpop.f32.mrf.mxu1 }
 0x676   :  { %v2715_v61 = vadd.f32 %v2714_v3, %v2701_v23 }
 0x678   :  { %v2805_v10 = vpop.f32.mrf.mxu0  ;;  %v2877_v8 = vadd.f32 %v2715_v61, %v210_v15  ;;  %v4284_v46 = vpop.eup %4283 }
 0x679   :  { %v4286_v6 = vpop.eup %4285  ;;  %v2886_v50 = vmul.f32 0.5, %v4284_v46 }
 0x67a   :  { %v2881_v53 = vmul.f32 0.5, %v2877_v8  ;;  %v2885_v23 = vmul.f32 0.5, %v4286_v6 }
 0x67b   :  { %v2740_v22 = vpop.f32.mrf.mxu3  ;;  %v2889_v42 = vadd.f32 0.5, %v2886_v50 }
 0x67c   :  { %v2741_v9 = vadd.f32 %v2740_v22, %v2727_v62  ;;  %v2888_v57 = vadd.f32 0.5, %v2885_v23 }
 0x67d   :  { %v2716_v29 = vpop.f32.mrf.mxu1  ;;  %v2892_v56 = vmul.f32 %v2889_v42, %v6633_v43 }
 0x67e   :  { %v2831_v16 = vpop.f32.mrf.mxu2  ;;  %v2878_v41 = vadd.f32 %v2741_v9, %v239_v14 }
 0x680   :  { %v2807_v7 = vpop.f32.mrf.mxu0  ;;  %4287 = vtanh.f32 %v2878_v41 }
 0x681   :  { %4289 = vtanh.f32 %v2881_v53 }
 0x683   :  { %v2742_v58 = vpop.f32.mrf.mxu3 }
 0x684   :  { %v8011_v58 = vld [vmem:[#allocation86_spill] sm:$0xff] }
 0x685   :  { %v2766_v30 = vpop.f32.mrf.mxu1 }
 0x686   :  { %v2833_v15 = vpop.f32.mrf.mxu2  ;;  %v4288_v37 = vpop.eup %4287  ;;  %v2767_v43 = vadd.f32 %v2766_v30, %v6789_v49  ;;  %v8014_v30 = vld [vmem:[#allocation95_spill] sm:$0xff] }
 0x687   :  { %v2893_v18 = vmul.f32 %v4288_v37, %v2888_v57  ;;  %v4290_v62 = vpop.eup %4289  ;;  %v8012_v57 = vld [vmem:[#allocation92_spill] sm:$0xff]  ;;  %v8015_v37 = vld [vmem:[#allocation90_spill] sm:$0xff] }
 0x688   :  { %v2887_v34 = vmul.f32 0.5, %v4290_v62  ;;  %v2848_v41 = vadd.f32 %v2767_v43, %v7484_v0  ;;  %v8013_v15 = vld [vmem:[#allocation88_spill] sm:$0xff]  ;;  %v8029_v43 = vld [vmem:[#allocation113_spill] sm:$0xff] }
 0x689   :  { %v2894_v3 = vadd.f32 %v2893_v18, %v2892_v56  ;;  %v8016_v56 = vld [vmem:[#allocation97_spill] sm:$0xff]  ;;  %v8018_v62 = vld [vmem:[#allocation100_spill] sm:$0xff] }
 0x68a   :  { %v2890_v8 = vadd.f32 0.5, %v2887_v34  ;;  %v8017_v18 = vld [vmem:[#allocation93_spill] sm:$0xff]  ;;  %v8021_v34 = vld [vmem:[#allocation96_spill] sm:$0xff] }
 0x68b   :  { %4291 = vtanh.f32 %v2894_v3  ;;  %v2792_v61 = vpop.f32.mrf.mxu3  ;;  %v8019_v3 = vld [vmem:[#allocation94_spill] sm:$0xff] }
 0x68c   :  { %v2793_v29 = vadd.f32 %v2792_v61, %v2779_v31  ;;  %v2852_v31 = vmul.f32 0.5, %v2848_v41  ;;  %v8020_v61 = vld [vmem:[#allocation104_spill] sm:$0xff]  ;;  %v8031_v41 = vld [vmem:[#allocation117_spill] sm:$0xff] }
 0x68d   :  { %v2768_v22 = vpop.f32.mrf.mxu1 }
 0x68e   :  { %v2849_v6 = vadd.f32 %v2793_v29, %v5778_v1  ;;  %v8022_v22 = vld [vmem:[#allocation108_spill] sm:$0xff] }
 0x68f   :  { %v8028_v29 = vld [vmem:[#allocation120_spill] sm:$0xff] }
 0x690   :  { %v2853_v50 = vmul.f32 0.5, %v2849_v6  ;;  %v8030_v6 = vld [vmem:[#allocation123_spill] sm:$0xff] }
 0x691   :  { %v4292_v46 = vpop.eup %4291 }
 0x692   :  { %v2896_v54 = vmul.f32 %v4292_v46, %v2890_v8  ;;  %4293 = vtanh.f32 %v2853_v50  ;;  %v8023_v8 = vld [vmem:[#allocation101_spill] sm:$0xff]  ;;  %v8024_v46 = vld [vmem:[#allocation112_spill] sm:$0xff] }
 0x693   :  { %v2794_v14 = vpop.f32.mrf.mxu3  ;;  %4295 = vtanh.f32 %v2852_v31  ;;  %v8032_v50 = vld [vmem:[#allocation124_spill] sm:$0xff]  ;;  %v8033_v31 = vld [vmem:[#allocation121_spill] sm:$0xff] }
 0x694   :  { %v6804_v9 = vpack.c.bf16 %v2896_v54, %v2896_v54  ;;  %v8025_v54 = vld [vmem:[#allocation105_spill] sm:$0xff]  ;;  %v8026_v14 = vld [vmem:[#allocation116_spill] sm:$0xff] }
 0x696   :  { %2907 = vmatmul.bf16.vlgmr.msrb.gmra.mxu0 %v6804_v9  ;;  %2933 = vmatmul.bf16.vlgmr.msra.gmra.mxu2 %v6804_v9 }
 0x697   :  { %3003 = vmatpush.bf16.msrb.mxu0 %v7385_v11  ;;  %3029 = vmatpush.bf16.msra.mxu2 %v7386_v4 }
 0x69b   :  { %3004 = vmatpush.bf16.msrb.mxu0 %v7388_v40  ;;  %3030 = vmatpush.bf16.msra.mxu2 %v7389_v24  ;;  %v4294_v24 = vpop.eup %4293 }
 0x69c   :  { %v4296_v49 = vpop.eup %4295 }
 0x69d   :  { %v2858_v7 = vmul.f32 0.5, %v4296_v49 }
 0x69f   :  { %3005 = vmatpush.bf16.msrb.mxu0 %v7485_v60  ;;  %3031 = vmatpush.bf16.msra.mxu2 %v7486_v33 }
 0x6a3   :  { %3006 = vmatpush.bf16.msrb.mxu0 %v7487_v27  ;;  %3032 = vmatpush.bf16.msra.mxu2 %v7488_v45  ;;  %v2859_v45 = vmul.f32 0.5, %v4294_v24 }
 0x6a5   :  { %v2818_v53 = vpop.f32.mrf.mxu1 }
 0x6a6   :  { %v2819_v11 = vadd.f32 %v2818_v53, %v2805_v10  ;;  %2959 = vmatmul.bf16.vlgmr.msra.gmra.mxu0 %v6804_v9  ;;  %2985 = vmatmul.bf16.vlgmr.msrb.gmra.mxu2 %v6804_v9 }
 0x6a7   :  { %3007 = vmatpush.bf16.msrb.mxu0 %v7489_v39  ;;  %3033 = vmatpush.bf16.msra.mxu2 %v7396_v38  ;;  %v2862_v38 = vadd.f32 0.5, %v2859_v45 }
 0x6a8   :  { %v2850_v4 = vadd.f32 %v2819_v11, %v7490_v35 }
 0x6aa   :  { %v2854_v10 = vmul.f32 0.5, %v2850_v4 }
 0x6ab   :  { %v2844_v40 = vpop.f32.mrf.mxu3  ;;  %3008 = vmatpush.bf16.msrb.mxu0 %v7397_v12  ;;  %3034 = vmatpush.bf16.msra.mxu2 %v7398_v52  ;;  %v2865_v12 = vmul.f32 %v2862_v38, %v6666_v25  ;;  %v8010_v25 = vld [vmem:[#allocation89_spill] sm:$0xff] }
 0x6ac   :  { %v2845_v60 = vadd.f32 %v2844_v40, %v2831_v16  ;;  %v2861_v16 = vadd.f32 0.5, %v2858_v7 }
 0x6ad   :  { %v2820_v33 = vpop.f32.mrf.mxu1 }
 0x6ae   :  { %v2851_v27 = vadd.f32 %v2845_v60, %v5799_v28 }
 0x6af   :  { %3009 = vmatpush.bf16.msrb.mxu0 %v5460_v2  ;;  %3035 = vmatpush.bf16.msra.mxu2 %v7399_v48 }
 0x6b0   :  { %4297 = vtanh.f32 %v2851_v27 }
 0x6b1   :  { %4299 = vtanh.f32 %v2854_v10 }
 0x6b3   :  { %v2846_v39 = vpop.f32.mrf.mxu3  ;;  %3010 = vmatpush.bf16.msrb.mxu0 %v5501_v21  ;;  %3036 = vmatpush.bf16.msra.mxu2 %v5503_v20 }
 0x6b6   :  { %v4298_v23 = vpop.eup %4297  ;;  %3011 = vmatmul.bf16.vlgmr.msrb.gmra.mxu0 %v6804_v9  ;;  %3037 = vmatmul.bf16.vlgmr.msra.gmra.mxu2 %v6804_v9 }
 0x6b7   :  { %v2866_v52 = vmul.f32 %v4298_v23, %v2861_v16  ;;  %3055 = vmatpush.bf16.msra.mxu0 %v5505_v5  ;;  %3081 = vmatpush.bf16.msrb.mxu2 %v5507_v26  ;;  %v4300_v42 = vpop.eup %4299 }
 0x6b8   :  { %v2860_v20 = vmul.f32 0.5, %v4300_v42 }
 0x6b9   :  { %v6834_v2 = vadd.f32 %v2866_v52, %v2865_v12 }
 0x6ba   :  { %v2863_v5 = vadd.f32 0.5, %v2860_v20 }
 0x6bb   :  { %4301 = vtanh.f32 %v6834_v2  ;;  %3056 = vmatpush.bf16.msra.mxu0 %v5530_v19  ;;  %3082 = vmatpush.bf16.msrb.mxu2 %v5532_v63  ;;  %v7999_v19 = vld [vmem:[#allocation73_spill] sm:$0xff]  ;;  %v8000_v63 = vld [vmem:[#allocation126_spill] sm:$0xff] }
 0x6bf   :  { %3057 = vmatpush.bf16.msra.mxu0 %v5555_v51  ;;  %3083 = vmatpush.bf16.msrb.mxu2 %v5557_v13  ;;  %v8001_v51 = vld [vmem:[#allocation127_spill] sm:$0xff]  ;;  %v8002_v13 = vld [vmem:[#allocation85_spill] sm:$0xff] }
 0x6c1   :  { %v4302_v26 = vpop.eup %4301 }
 0x6c2   :  { %v2869_v21 = vmul.f32 %v4302_v26, %v2863_v5 }
 0x6c3   :  { %3058 = vmatpush.bf16.msra.mxu0 %v5576_v55  ;;  %3084 = vmatpush.bf16.msrb.mxu2 %v5578_v44  ;;  %v8003_v55 = vld [vmem:[#allocation81_spill] sm:$0xff] }
 0x6c4   :  { %v2898_v48 = vpack.c.bf16 %v2869_v21, %v2869_v21  ;;  %v8004_v44 = vld [vmem:[#allocation129_spill] sm:$0xff] }
 0x6c6   :  { %2920 = vmatmul.bf16.vlgmr.msrb.gmra.mxu1 %v2898_v48  ;;  %2946 = vmatmul.bf16.vlgmr.msra.gmra.mxu3 %v2898_v48 }
 0x6c7   :  { %3016 = vmatpush.bf16.msrb.mxu1 %v7400_v59  ;;  %3042 = vmatpush.bf16.msra.mxu3 %v7401_v36  ;;  %v8005_v59 = vld [vmem:[#allocation130_spill] sm:$0xff]  ;;  %v8006_v36 = vld [vmem:[#allocation87_spill] sm:$0xff] }
 0x6c8   :  { %3059 = vmatpush.bf16.msra.mxu0 %v5598_v32  ;;  %3085 = vmatpush.bf16.msrb.mxu2 %v5600_v47  ;;  %v8007_v32 = vld [vmem:[#allocation84_spill] sm:$0xff] }
 0x6c9   :  { %v8008_v47 = vld [vmem:[#allocation132_spill] sm:$0xff] }
 0x6cb   :  { %3017 = vmatpush.bf16.msrb.mxu1 %v7402_v17  ;;  %3043 = vmatpush.bf16.msra.mxu3 %v7999_v19  ;;  %v8009_v17 = vld [vmem:[#allocation133_spill] sm:$0xff] }
 0x6cc   :  { %3060 = vmatpush.bf16.msra.mxu0 %v8000_v63  ;;  %3086 = vmatpush.bf16.msrb.mxu2 %v8001_v51  ;;  %v4134_v51 = vld [vmem:[%s6963_s5 + $0x30] sm:$0xff] }
 0x6cf   :  { %3018 = vmatpush.bf16.msrb.mxu1 %v8002_v13  ;;  %3044 = vmatpush.bf16.msra.mxu3 %v8003_v55  ;;  %v4133_v55 = vld [vmem:[%s6963_s5 + $0x28] sm:$0xff] }
 0x6d0   :  { %3061 = vmatpush.bf16.msra.mxu0 %v8004_v44  ;;  %3087 = vmatpush.bf16.msrb.mxu2 %v8005_v59  ;;  %v4132_v59 = vld [vmem:[%s6963_s5 + $0x20] sm:$0xff] }
 0x6d3   :  { %3019 = vmatpush.bf16.msrb.mxu1 %v8006_v36  ;;  %3045 = vmatpush.bf16.msra.mxu3 %v8007_v32  ;;  %v4131_v32 = vld [vmem:[%s6963_s5 + $0x18] sm:$0xff] }
 0x6d4   :  { %3062 = vmatpush.bf16.msra.mxu0 %v8008_v47  ;;  %3088 = vmatpush.bf16.msrb.mxu2 %v8009_v17  ;;  %v4130_v17 = vld [vmem:[%s6963_s5 + $0x10] sm:$0xff] }
 0x6d6   :  { %2972 = vmatmul.bf16.vlgmr.msra.gmra.mxu1 %v2898_v48  ;;  %2998 = vmatmul.bf16.vlgmr.msrb.gmra.mxu3 %v2898_v48 }
 0x6d7   :  { %3020 = vmatpush.bf16.msrb.mxu1 %v8010_v25  ;;  %3046 = vmatpush.bf16.msra.mxu3 %v8011_v58  ;;  %v4129_v58 = vld [vmem:[%s6963_s5 + $0x8] sm:$0xff] }
 0x6d8   :  { %3063 = vmatmul.bf16.vlgmr.msra.gmra.mxu0 %v6804_v9  ;;  %3089 = vmatmul.bf16.vlgmr.msrb.gmra.mxu2 %v6804_v9  ;;  %v8027_v9 = vld [vmem:[#allocation109_spill] sm:$0xff] }
 0x6db   :  { %3021 = vmatpush.bf16.msrb.mxu1 %v8012_v57  ;;  %3047 = vmatpush.bf16.msra.mxu3 %v8013_v15 }
 0x6df   :  { %3022 = vmatpush.bf16.msrb.mxu1 %v8014_v30  ;;  %3048 = vmatpush.bf16.msra.mxu3 %v8015_v37  ;;  %v4128_v30 = vld [vmem:[%s6963_s5] sm:$0xff] }
 0x6e3   :  { %3023 = vmatpush.bf16.msrb.mxu1 %v8016_v56  ;;  %3049 = vmatpush.bf16.msra.mxu3 %v8017_v18 }
 0x6e6   :  { %3024 = vmatmul.bf16.vlgmr.msrb.gmra.mxu1 %v2898_v48  ;;  %3050 = vmatmul.bf16.vlgmr.msra.gmra.mxu3 %v2898_v48 }
 0x6e7   :  { %3068 = vmatpush.bf16.msra.mxu1 %v8018_v62  ;;  %3094 = vmatpush.bf16.msrb.mxu3 %v8019_v3 }
 0x6eb   :  { %3069 = vmatpush.bf16.msra.mxu1 %v8020_v61  ;;  %3095 = vmatpush.bf16.msrb.mxu3 %v8021_v34 }
 0x6ef   :  { %3070 = vmatpush.bf16.msra.mxu1 %v8022_v22  ;;  %3096 = vmatpush.bf16.msrb.mxu3 %v8023_v8 }
 0x6f3   :  { %3071 = vmatpush.bf16.msra.mxu1 %v8024_v46  ;;  %3097 = vmatpush.bf16.msrb.mxu3 %v8025_v54 }
 0x6f7   :  { %3072 = vmatpush.bf16.msra.mxu1 %v8026_v14  ;;  %3098 = vmatpush.bf16.msrb.mxu3 %v8027_v9 }
 0x6fb   :  { %3073 = vmatpush.bf16.msra.mxu1 %v8028_v29  ;;  %3099 = vmatpush.bf16.msrb.mxu3 %v8029_v43 }
 0x6ff   :  { %3074 = vmatpush.bf16.msra.mxu1 %v8030_v6  ;;  %3100 = vmatpush.bf16.msrb.mxu3 %v8031_v41 }
 0x703   :  { %3075 = vmatpush.bf16.msra.mxu1 %v8032_v50  ;;  %3101 = vmatpush.bf16.msrb.mxu3 %v8033_v31 }
 0x706   :  { %3076 = vmatmul.bf16.vlgmr.msra.gmra.mxu1 %v2898_v48  ;;  %3102 = vmatmul.bf16.vlgmr.msrb.gmra.mxu3 %v2898_v48  ;;  %v4135_v48 = vld [vmem:[%s6963_s5 + $0x38] sm:$0xff] }
 0x707   :  { %3208 = vmatpush.bf16.msrb.mxu0 %v4135_v48 }
 0x70b   :  { %3209 = vmatpush.bf16.msrb.mxu0 %v4134_v51  ;;  %v4141_v51 = vld [vmem:[%s6965_s9 + $0x28] sm:$0xff] }
 0x70f   :  { %3210 = vmatpush.bf16.msrb.mxu0 %v4133_v55 }
 0x713   :  { %v2908_v53 = vpop.f32.mrf.mxu0  ;;  %3211 = vmatpush.bf16.msrb.mxu0 %v4132_v59 }
 0x717   :  { %3212 = vmatpush.bf16.msrb.mxu0 %v4131_v32  ;;  %v4139_v32 = vld [vmem:[%s6965_s9 + $0x18] sm:$0xff] }
 0x719   :  { %v2934_v11 = vpop.f32.mrf.mxu2 }
 0x71b   :  { %v2910_v4 = vpop.f32.mrf.mxu0  ;;  %3213 = vmatpush.bf16.msrb.mxu0 %v4130_v17 }
 0x71f   :  { %3214 = vmatpush.bf16.msrb.mxu0 %v4129_v58 }
 0x721   :  { %v2936_v40 = vpop.f32.mrf.mxu2 }
 0x723   :  { %v2960_v24 = vpop.f32.mrf.mxu0  ;;  %3215 = vmatpush.bf16.msrb.mxu0 %v4128_v30 }
 0x724   :  { %v3221_v24 = vlaneseq }
 0x729   :  { %v2986_v60 = vpop.f32.mrf.mxu2 }
 0x72a   :  { %v4320_v60 = vmov 2.0  }
 0x72b   :  { %v2962_v33 = vpop.f32.mrf.mxu0 }
 0x72c   :  { %v3222_v33 = vshrl.u32 %v3221_v24, 7 }
 0x72e   :  { %vm3223_vm1 = vcmp.lt.s32.totalorder %v3222_v33, 2 }
 0x731   :  { %v2988_v49 = vpop.f32.mrf.mxu2 }
 0x733   :  { %v3012_v27 = vpop.f32.mrf.mxu0 }
 0x739   :  { %v3038_v45 = vpop.f32.mrf.mxu2 }
 0x73b   :  { %v3014_v10 = vpop.f32.mrf.mxu0 }
 0x73c   :  { %v4321_v10 = vmov 0.0  }
 0x741   :  { %v3040_v38 = vpop.f32.mrf.mxu2 }
 0x743   :  { %v2921_v7 = vpop.f32.mrf.mxu1 }
 0x744   :  { %v3959_v7 = vsel %vm3223_vm1, 1.0, %v4321_v10 }
 0x749   :  { %v2947_v39 = vpop.f32.mrf.mxu3 }
 0x74b   :  { %v2923_v16 = vpop.f32.mrf.mxu1 }
 0x751   :  { %v2949_v23 = vpop.f32.mrf.mxu3 }
 0x753   :  { %v2973_v12 = vpop.f32.mrf.mxu1 }
 0x755   :  { %v3064_v52 = vpop.f32.mrf.mxu0 }
 0x759   :  { %v2999_v42 = vpop.f32.mrf.mxu3 }
 0x75b   :  { %v3090_v20 = vpop.f32.mrf.mxu2  ;;  %v2975_v5 = vpop.f32.mrf.mxu1 }
 0x75d   :  { %v3066_v26 = vpop.f32.mrf.mxu0 }
 0x761   :  { %v3001_v21 = vpop.f32.mrf.mxu3 }
 0x762   :  { %v4142_v21 = vld [vmem:[%s6965_s9 + $0x30] sm:$0xff] }
 0x763   :  { %v3092_v19 = vpop.f32.mrf.mxu2  ;;  %v3025_v63 = vpop.f32.mrf.mxu1 }
 0x764   :  { %v3026_v25 = vadd.f32 %v3025_v63, %v3012_v27  ;;  %v4149_v27 = vld [vmem:[%s6960_s6] ss:$0 sm:$0xff] }
 0x766   :  { %v3107_v15 = vadd.f32 %v3026_v25, %v7484_v0  ;;  %v4138_v25 = vld [vmem:[%s6965_s9 + $0x10] sm:$0xff] }
 0x768   :  { %v3111_v56 = vmul.f32 0.5, %v3107_v15  ;;  %v4137_v15 = vld [vmem:[%s6965_s9 + $0x8] sm:$0xff] }
 0x769   :  { %v3051_v13 = vpop.f32.mrf.mxu3 }
 0x76a   :  { %v3052_v47 = vadd.f32 %v3051_v13, %v3038_v45 }
 0x76b   :  { %v3027_v44 = vpop.f32.mrf.mxu1 }
 0x76c   :  { %v3108_v57 = vadd.f32 %v3052_v47, %v5778_v1  ;;  %v4140_v44 = vld [vmem:[%s6965_s9 + $0x20] sm:$0xff] }
 0x76e   :  { %v3112_v37 = vmul.f32 0.5, %v3108_v57 }
 0x770   :  { %4303 = vtanh.f32 %v3112_v37 }
 0x771   :  { %v3053_v36 = vpop.f32.mrf.mxu3  ;;  %4305 = vtanh.f32 %v3111_v56  ;;  %v4136_v56 = vld [vmem:[%s6965_s9] sm:$0xff] }
 0x776   :  { %v4304_v34 = vpop.eup %4303 }
 0x777   :  { %v4306_v8 = vpop.eup %4305  ;;  %v3118_v46 = vmul.f32 0.5, %v4304_v34 }
 0x778   :  { %v3117_v14 = vmul.f32 0.5, %v4306_v8 }
 0x779   :  { %v3121_v9 = vadd.f32 0.5, %v3118_v46  ;;  %v4150_v46 = vld [vmem:[%s6961_s7] ss:$0 sm:$0xff] }
 0x77a   :  { %v3120_v43 = vadd.f32 0.5, %v3117_v14 }
 0x77b   :  { %v3124_v41 = vmul.f32 %v3121_v9, %v6834_v2  ;;  %v4151_v9 = vld [vmem:[%s6962_s8] ss:$0 sm:$0xff] }
 0x783   :  { %v3077_v18 = vpop.f32.mrf.mxu1 }
 0x784   :  { %v3078_v62 = vadd.f32 %v3077_v18, %v3064_v52  ;;  %v4143_v52 = vld [vmem:[%s6965_s9 + $0x38] sm:$0xff] }
 0x785   :  { %3345 = vmatpush.bf16.msrb.mxu1 %v4143_v52 }
 0x786   :  { %v3109_v3 = vadd.f32 %v3078_v62, %v7490_v35 }
 0x788   :  { %v3113_v54 = vmul.f32 0.5, %v3109_v3 }
 0x789   :  { %v3103_v61 = vpop.f32.mrf.mxu3  ;;  %3346 = vmatpush.bf16.msrb.mxu1 %v4142_v21 }
 0x78a   :  { %v3104_v22 = vadd.f32 %v3103_v61, %v3090_v20 }
 0x78b   :  { %v3079_v1 = vpop.f32.mrf.mxu1 }
 0x78c   :  { %v3110_v0 = vadd.f32 %v3104_v22, %v5799_v28 }
 0x78d   :  { %3347 = vmatpush.bf16.msrb.mxu1 %v4141_v51 }
 0x78e   :  { %4307 = vtanh.f32 %v3110_v0 }
 0x78f   :  { %4309 = vtanh.f32 %v3113_v54 }
 0x791   :  { %v3105_v29 = vpop.f32.mrf.mxu3  ;;  %3348 = vmatpush.bf16.msrb.mxu1 %v4140_v44 }
 0x794   :  { %v4308_v6 = vpop.eup %4307 }
 0x795   :  { %v3125_v50 = vmul.f32 %v4308_v6, %v3120_v43  ;;  %v4310_v35 = vpop.eup %4309  ;;  %3349 = vmatpush.bf16.msrb.mxu1 %v4139_v32 }
 0x796   :  { %v3119_v53 = vmul.f32 0.5, %v4310_v35  ;;  %v4152_v35 = vld [vmem:[%s6964_s10] ss:$0 sm:$0xff] }
 0x797   :  { %v3126_v31 = vadd.f32 %v3125_v50, %v3124_v41 }
 0x798   :  { %v3122_v11 = vadd.f32 0.5, %v3119_v53 }
 0x799   :  { %4311 = vtanh.f32 %v3126_v31  ;;  %3350 = vmatpush.bf16.msrb.mxu1 %v4138_v25 }
 0x79a   :  { %4313 = vrcp.f32 %v4320_v60 }
 0x79d   :  { %3351 = vmatpush.bf16.msrb.mxu1 %v4137_v15 }
 0x79f   :  { %v4312_v4 = vpop.eup %4311 }
 0x7a0   :  { %v3128_v40 = vmul.f32 %v4312_v4, %v3122_v11  ;;  %v4314_v49 = vpop.eup %4313 }
 0x7a1   :  { %v3234_v2 = vmul.f32 2.0, %v4314_v49  ;;  %vm3238_vm2 = vweird.f32 %v4314_v49  ;;  %3352 = vmatpush.bf16.msrb.mxu1 %v4136_v56 }
 0x7a2   :  { %v3139_v28 = vpack.c.bf16 %v3128_v40, %v3128_v40 }
 0x7a3   :  { %v3235_v39 = vsub.f32 1.0, %v3234_v2 }
 0x7a4   :  { %3216 = vmatmul.bf16.vlgmr.msrb.gmra.mxu0 %v3139_v28 }
 0x7a5   :  { %v3236_v12 = vmul.f32 %v4314_v49, %v3235_v39 }
 0x7a7   :  { %v3237_v26 = vadd.f32 %v4314_v49, %v3236_v12 }
 0x7a9   :  { %v3239_v63 = vsel %vm3238_vm2, %v4314_v49, %v3237_v26 }
 0x821   :  { %v3217_v45 = vpop.f32.mrf.mxu0 }
 0x822   :  { %v3218_v38 = vadd.f32 %v4149_v27, %v3217_v45 }
 0x824   :  { %v3226_v16 = vmul.f32 %v3959_v7, %v3218_v38 }
 0x826   :  { %v3227_v23 = vrot.slane %v3226_v16, 4 }
 0x828   :  { %v3228_v42 = vadd.f32 %v3227_v23, %v3226_v16 }
 0x829   :  { %v3219_v20 = vpop.f32.mrf.mxu0 }
 0x82a   :  { %v3229_v5 = vrot.slane %v3228_v42, 2 }
 0x82c   :  { %v3230_v48 = vadd.f32 %v3229_v5, %v3228_v42 }
 0x82e   :  { %v3231_v19 = vrot.slane %v3230_v48, 1 }
 0x830   :  { %v3232_v13 = vadd.f32 %v3231_v19, %v3230_v48 }
 0x832   :  { %v3240_v55 = vmul.f32 %v3239_v63, %v3232_v13 }
 0x834   :  { %v3241_v59 = vsub.f32 %v3218_v38, %v3240_v55 }
 0x836   :  { %v3242_v36 = vmul.f32 %v3959_v7, %v3241_v59 }
 0x838   :  { %v3243_v47 = vmul.f32 %v3242_v36, %v3242_v36 }
 0x83a   :  { %v3244_v17 = vrot.slane %v3243_v47, 4 }
 0x83c   :  { %v3245_v58 = vadd.f32 %v3244_v17, %v3243_v47 }
 0x83e   :  { %v3246_v57 = vrot.slane %v3245_v58, 2 }
 0x840   :  { %v3247_v30 = vadd.f32 %v3246_v57, %v3245_v58 }
 0x842   :  { %v3248_v37 = vrot.slane %v3247_v30, 1 }
 0x844   :  { %v3249_v18 = vadd.f32 %v3248_v37, %v3247_v30 }
 0x846   :  { %v3250_v62 = vmul.f32 %v3249_v18, %v3239_v63 }
 0x848   :  { %v3251_v3 = vadd.f32 1e-05, %v3250_v62 }
 0x84a   :  { %4315 = vrsqrt.f32 %v3251_v3  ;;  %vm3258_vm4 = vweird.f32 %v3251_v3 }
 0x850   :  { %v4316_v61 = vpop.eup %4315 }
 0x851   :  { %v3253_v34 = vmul.f32 %v4316_v61, %v3251_v3  ;;  %vm3259_vm3 = vweird.f32 %v4316_v61 }
 0x852   :  { %vm3260_vm5 = vmor %vm3258_vm4, %vm3259_vm3 }
 0x853   :  { %v3254_v22 = vmul.f32 %v4316_v61, %v3253_v34 }
 0x855   :  { %v3255_v1 = vmul.f32 0.5, %v3254_v22 }
 0x857   :  { %v3256_v8 = vsub.f32 1.5, %v3255_v1 }
 0x859   :  { %v3257_v0 = vmul.f32 %v4316_v61, %v3256_v8 }
 0x85b   :  { %v3261_v54 = vsel %vm3260_vm5, %v4316_v61, %v3257_v0 }
 0x85c   :  { %v3262_v14 = vmul.f32 %v3261_v54, %v3241_v59 }
 0x85e   :  { %v3267_v29 = vmul.f32 %v4150_v46, %v3262_v14 }
 0x860   :  { %v3272_v43 = vadd.f32 %v4151_v9, %v3267_v29 }
 0x862   :  { %vm3273_vm6 = vcmp.gt.f32.partialorder %v3272_v43, 0.0  ;;  %v3274_v6 = vmul.f32 0.01, %v3272_v43 }
 0x864   :  { %v3275_v41 = vsel %vm3273_vm6, %v3272_v43, %v3274_v6 }
 0x865   :  { %v3276_v50 = vpack.c.bf16 %v3275_v41, %v3275_v41 }
 0x867   :  { %3353 = vmatmul.bf16.vlgmr.msrb.gmra.mxu1 %v3276_v50 }
 0x8e4   :  { %v3354_v31 = vpop.f32.mrf.mxu1 }
 0x8e5   :  { %v3355_v53 = vadd.f32 %v4152_v35, %v3354_v31 }
 0x8e7   :  { %v3358_v11 = vmul.f32 0.5, %v3355_v53 }
 0x8e9   :  { %4317 = vtanh.f32 %v3358_v11 }
 0x8ec   :  { %v3356_v4 = vpop.f32.mrf.mxu1 }
 0x8ef   :  { %v4318_v40 = vpop.eup %4317 }
 0x8f0   :  { %v3360_v28 = vmul.f32 0.5, %v4318_v40 }
 0x8f2   :  { %v3361_v24 = vadd.f32 0.5, %v3360_v28 }
 0x8f4   :  { %3362 = vst [vmem:[%s6966_s11] sm:$0xff] %v3361_v24 }

</bundles_post_ra>
